<compile_context>
chip_gen: v7x
topology: tpu7x:2x2x1
jax: 0.10.0
libtpu: 0.0.40
codegen_flags: <defaults>
</compile_context>

<pallas_src>
import jax
import jax.numpy as jnp
from jax.experimental import pallas as pl
from jax.experimental.pallas import tpu as pltpu

_VMEM_LIMIT = 48 * 1024 * 1024   # safe on v5e/v6e (128 MiB phys) and v7x (64 MiB phys)
_TILE_CAP = 512                  # points per tile; keeps matmul M >= 256 at large N


# ------------------------------- pass 1 kernel ------------------------------ #
def pass1_kernel(x_ref, w0, b0, w1, b1, w2, b2, w3, b3, h_ref, g_ref):
    nt = pl.program_id(1)
    _, tn, cin = x_ref.shape

    x = x_ref[...].reshape(tn, cin).astype(jnp.bfloat16)

    def lin_relu(a, w, b):
        y = jnp.dot(a, w[...], preferred_element_type=jnp.float32) + b[...]
        return jnp.maximum(y, 0.0).astype(jnp.bfloat16)

    # input_mlp (Conv2d[1,9] + SharedMLP), conv+BN+ReLU folded.
    h = lin_relu(x, w0, b0)          # (tn, 64)
    h = lin_relu(h, w1, b1)          # (tn, 64)
    h = lin_relu(h, w2, b2)          # (tn, 128)
    h = lin_relu(h, w3, b3)          # (tn, 1024)

    h3 = h.reshape(1, tn, 1024)
    h_ref[...] = h3                  # bf16 point features back to HBM

    # adaptive_max_pool2d: running per-batch max in the resident output block.
    # Reduce in bf16 (order preserving); cast only the (1,1,1024) result.
    tile_max = jnp.max(h3, axis=1, keepdims=True).astype(jnp.float32)

    @pl.when(nt == 0)
    def _():
        g_ref[...] = tile_max

    @pl.when(nt != 0)
    def _():
        g_ref[...] = jnp.maximum(g_ref[...], tile_max)


# ------------------------------- pass 2 kernel ------------------------------ #
def pass2_kernel(h_ref, g_ref, wf1, bf1, wf2, bf2,
                 wc1a, wc1b, bc1, wc2, bc2, wc3, bc3, o_ref):
    _, tn, _ = h_ref.shape
    c_pad = o_ref.shape[-1]

    h = h_ref[...].reshape(tn, 1024)                        # bf16 point features
    g = g_ref[...].reshape(1, 1024).astype(jnp.bfloat16)    # global feature

    def lin_relu(a, w, b):
        y = jnp.dot(a, w[...], preferred_element_type=jnp.float32) + b[...]
        return jnp.maximum(y, 0.0).astype(jnp.bfloat16)

    # feat1_fc (tiny: ~0.3 MFLOP, recomputed per tile -- negligible vs the head).
    f = lin_relu(g, wf1, bf1)                               # (1, 256)
    f = lin_relu(f, wf2, bf2)                               # (1, 128)

    # concat(points_feat, tiled global_feat) @ W1152x512  (1x1 conv)
    #   == points_feat @ W[:1024] + global_feat @ W[1024:]; bc1 folded into fb.
    fb = jnp.dot(f, wc1b[...], preferred_element_type=jnp.float32) + bc1[...]  # (1,512)
    y = jnp.dot(h, wc1a[...], preferred_element_type=jnp.float32) + fb         # (tn,512)
    y = jnp.maximum(y, 0.0).astype(jnp.bfloat16)

    # TODO(synk): Dropout2d(p=0.3) is identity at inference; not implemented.
    y = lin_relu(y, wc2, bc2)                               # (tn, 256)

    # final Conv2d(256, num_classes), no BN/ReLU; zero-padded to 128 lanes.
    out = jnp.dot(y, wc3[...], preferred_element_type=jnp.float32) + bc3[...]
    o_ref[...] = out.reshape(1, tn, c_pad).astype(o_ref.dtype)


# -------------------------------- host wrapper ------------------------------ #
def _choose_tile(n, cap=_TILE_CAP):
    # Largest multiple-of-8 divisor of n that is <= cap; fall back to the full axis.
    for t in range(min(n, cap), 7, -1):
        if n % t == 0 and t % 8 == 0:
            return t
    return n


def _bytes(arrs):
    return sum(int(a.size) * a.dtype.itemsize for a in arrs)


def _const_specs(params, single_buffer):
    # Weight/bias blocks never change across the grid -> constant index map;
    # single-buffer them to avoid 2x VMEM for blocks that are fetched once.
    specs = []
    for p in params:
        kwargs = {"pipeline_mode": pl.Buffered(1)} if single_buffer else {}
        specs.append(pl.BlockSpec(p.shape,
                                  (lambda b, t, _nd=p.ndim: (0,) * _nd),
                                  **kwargs))
    return specs


def _forward(points, params, single_buffer):
    (w0, b0, w1, b1, w2, b2, w3, b3,
     wf1, bf1, wf2, bf2,
     wc1a, wc1b, bc1, wc2, bc2, wc3, bc3) = params
    B, N, feat_in = points.shape
    c_pad = wc3.shape[-1]
    tn = _choose_tile(N)
    ntiles = N // tn

    mlp_params = (w0, b0, w1, b1, w2, b2, w3, b3)
    head_params = (wf1, bf1, wf2, bf2, wc1a, wc1b, bc1, wc2, bc2, wc3, bc3)

    # ---- pass 1: per-point MLP + global max-pool ----
    flops1 = 2 * B * N * (feat_in * 64 + 64 * 64 + 64 * 128 + 128 * 1024)
    bytes1 = _bytes((points,) + mlp_params) + B * N * 1024 * 2 + B * 1024 * 4
    h_feat, g = pl.pallas_call(
        pass1_kernel,
        out_shape=(jax.ShapeDtypeStruct((B, N, 1024), jnp.bfloat16),
                   jax.ShapeDtypeStruct((B, 1, 1024), jnp.float32)),
        grid=(B, ntiles),
        in_specs=[pl.BlockSpec((1, tn, feat_in), lambda b, t: (b, t, 0))]
                 + _const_specs(mlp_params, single_buffer),
        out_specs=(pl.BlockSpec((1, tn, 1024), lambda b, t: (b, t, 0)),
                   pl.BlockSpec((1, 1, 1024), lambda b, t: (b, 0, 0))),
        compiler_params=pltpu.CompilerParams(
            dimension_semantics=("parallel", "arbitrary"),
            vmem_limit_bytes=_VMEM_LIMIT),
        cost_estimate=pl.CostEstimate(flops=flops1, transcendentals=0,
                                      bytes_accessed=bytes1),
    )(points, *mlp_params)

    # ---- pass 2: feat1_fc + concat head + classifier ----
    flops2 = (2 * B * N * (1024 * 512 + 512 * 256 + 256 * c_pad)
              + 2 * B * ntiles * (1024 * 256 + 256 * 128 + 128 * 512))
    bytes2 = (_bytes(head_params)
              + B * N * 1024 * 2 + B * 1024 * 4 + B * N * c_pad * 2)
    out = pl.pallas_call(
        pass2_kernel,
        out_shape=jax.ShapeDtypeStruct((B, N, c_pad), jnp.bfloat16),
        grid=(B, ntiles),
        in_specs=[pl.BlockSpec((1, tn, 1024), lambda b, t: (b, t, 0)),
                  pl.BlockSpec((1, 1, 1024), lambda b, t: (b, 0, 0))]
                 + _const_specs(head_params, single_buffer),
        out_specs=pl.BlockSpec((1, tn, c_pad), lambda b, t: (b, t, 0)),
        compiler_params=pltpu.CompilerParams(
            dimension_semantics=("parallel", "parallel"),
            vmem_limit_bytes=_VMEM_LIMIT),
        cost_estimate=pl.CostEstimate(flops=flops2, transcendentals=0,
                                      bytes_accessed=bytes2),
    )(h_feat, g, *head_params)
    return out


def pointnet_semseg(points, params, num_classes):
    try:
        out = _forward(points, params, single_buffer=True)
    except Exception:
        # Older Pallas without single-buffer pipeline_mode: default 2-deep buffering.
        out = _forward(points, params, single_buffer=False)
    # Strip the 128-lane classifier padding -> (B, N, num_classes), matching PyTorch.
    return out[:, :, :num_classes].astype(jnp.float32)


# --------------------------- parameter construction ------------------------- #
def _xavier_relu(key, shape):
    # xavier_normal with gain = calculate_gain('relu') = sqrt(2)  ->  std = 2/sqrt(fi+fo)
    fan_in, fan_out = shape
    std = 2.0 / float(fan_in + fan_out) ** 0.5
    return std * jax.random.normal(key, shape, jnp.float32)


def _fold_bn(w, b, gamma, beta, mean, var, eps=1e-5):
    # eval-mode BatchNorm folded into the preceding linear layer (in f32)
    scale = gamma / jnp.sqrt(var + eps)
    return w * scale[None, :], (b - mean) * scale + beta


def init_params(key, num_classes):
    keys = jax.random.split(key, 10)
    c_pad = max(128, ((num_classes + 127) // 128) * 128)

    def layer(k, cin, cout, bn=True):
        w = _xavier_relu(k, (cin, cout))
        b = jnp.zeros((cout,), jnp.float32)
        if bn:  # torch defaults: gamma=1, beta=0, running_mean=0, running_var=1
            w, b = _fold_bn(w, b, jnp.ones(cout), jnp.zeros(cout),
                            jnp.zeros(cout), jnp.ones(cout))
        return w.astype(jnp.bfloat16), b.reshape(1, cout).astype(jnp.float32)

    w0, b0 = layer(keys[0], 9, 64)          # Conv2d(1, 64, [1, 9], bn=True)
    w1, b1 = layer(keys[1], 64, 64)         # SharedMLP
    w2, b2 = layer(keys[2], 64, 128)
    w3, b3 = layer(keys[3], 128, 1024)
    wf1, bf1 = layer(keys[4], 1024, 256)    # FC(1024, 256, bn=True)
    wf2, bf2 = layer(keys[5], 256, 128)     # FC(256, 128, bn=True)

    # SharedMLP([1152, 512, 256]); first layer split into [points; global] halves.
    wc1 = _xavier_relu(keys[6], (1152, 512))
    bc1 = jnp.zeros((512,), jnp.float32)
    wc1, bc1 = _fold_bn(wc1, bc1, jnp.ones(512), jnp.zeros(512),
                        jnp.zeros(512), jnp.ones(512))
    wc1 = wc1.astype(jnp.bfloat16)
    wc1a, wc1b = wc1[:1024], wc1[1024:]
    bc1 = bc1.reshape(1, 512).astype(jnp.float32)

    wc2, bc2 = layer(keys[7], 512, 256)

    # Final classifier Conv2d(256, C, activation=None), zero-padded to c_pad lanes.
    wc3 = _xavier_relu(keys[8], (256, num_classes))
    bc3 = jnp.zeros((num_classes,), jnp.float32)
    wc3p = jnp.zeros((256, c_pad), jnp.float32).at[:, :num_classes].set(wc3)
    wc3p = wc3p.astype(jnp.bfloat16)
    bc3p = jnp.zeros((1, c_pad), jnp.float32).at[:, :num_classes].set(bc3)

    return (w0, b0, w1, b1, w2, b2, w3, b3,
            wf1, bf1, wf2, bf2,
            wc1a, wc1b, bc1, wc2, bc2, wc3p, bc3p)


# ---------------------------- plain-JAX reference --------------------------- #
def reference_forward(points, params, num_classes):
    (w0, b0, w1, b1, w2, b2, w3, b3,
     wf1, bf1, wf2, bf2,
     wc1a, wc1b, bc1, wc2, bc2, wc3, bc3) = params

    def lr(a, w, b):
        y = jnp.dot(a, w, preferred_element_type=jnp.float32) + b
        return jnp.maximum(y, 0.0).astype(jnp.bfloat16)

    h = lr(points.astype(jnp.bfloat16), w0, b0)
    h = lr(h, w1, b1)
    h = lr(h, w2, b2)
    h = lr(h, w3, b3)                                          # (B, N, 1024) bf16
    g = jnp.max(h, axis=1)                                     # (B, 1024) bf16
    f = lr(g, wf1, bf1)
    f = lr(f, wf2, bf2)                                        # (B, 128)
    fb = jnp.dot(f, wc1b, preferred_element_type=jnp.float32) + bc1          # (B, 512)
    y = jnp.dot(h, wc1a, preferred_element_type=jnp.float32) + fb[:, None, :]
    y = jnp.maximum(y, 0.0).astype(jnp.bfloat16)
    y = lr(y, wc2, bc2)                                        # (B, N, 256)
    out = jnp.dot(y, wc3, preferred_element_type=jnp.float32) + bc3
    out = out.astype(jnp.bfloat16)                             # matches kernel output dtype
    return out[:, :, :num_classes].astype(jnp.float32)         # (B, N, C)


# ------------------------------------ main ---------------------------------- #
if __name__ == "__main__":
    key = jax.random.PRNGKey(0)
    B, N, IN_FEAT, NUM_CLASSES = 2, 128, 9, 13

    params = init_params(key, NUM_CLASSES)
    points = jax.random.normal(jax.random.fold_in(key, 123),
                               (B, N, IN_FEAT), jnp.float32)

    out = pointnet_semseg(points, params, NUM_CLASSES)
    out = jax.block_until_ready(out)
    assert out.shape == (B, N, NUM_CLASSES), out.shape

    ref = jax.block_until_ready(reference_forward(points, params, NUM_CLASSES))
    max_err = float(jnp.max(jnp.abs(out - ref)))
    assert jnp.allclose(out, ref, atol=2e-2, rtol=2e-2), f"mismatch vs reference: {max_err}"

    print("KERNEL_OK")
</pallas_src>

<mosaic_0001>
module attributes {stable_mosaic.version = 11 : i64} {
  func.func @pass1_kernel(%arg0: i32, %arg1: i32, %arg2: memref<1x128x9xf32, #tpu.memory_space<vmem>>, %arg3: memref<9x64xbf16, #tpu.memory_space<vmem>>, %arg4: memref<1x64xf32, #tpu.memory_space<vmem>>, %arg5: memref<64x64xbf16, #tpu.memory_space<vmem>>, %arg6: memref<1x64xf32, #tpu.memory_space<vmem>>, %arg7: memref<64x128xbf16, #tpu.memory_space<vmem>>, %arg8: memref<1x128xf32, #tpu.memory_space<vmem>>, %arg9: memref<128x1024xbf16, #tpu.memory_space<vmem>>, %arg10: memref<1x1024xf32, #tpu.memory_space<vmem>>, %arg11: memref<1x128x1024xbf16, #tpu.memory_space<vmem>>, %arg12: memref<1x1x1024xf32, #tpu.memory_space<vmem>>) attributes {dimension_semantics = [#tpu.dimension_semantics<parallel>, #tpu.dimension_semantics<arbitrary>], iteration_bounds = array<i64: 2, 1>, scalar_prefetch = 0 : i64, scratch_operands = 0 : i64, tpu.core_type = #tpu.core_type<tc>, window_params = [{transform_indices = @transform_0, window_bounds = array<i64: 1, 128, 9>}, {pipeline_mode = #tpu.pipeline_mode<synchronous>, transform_indices = @transform_1, window_bounds = array<i64: 9, 64>}, {pipeline_mode = #tpu.pipeline_mode<synchronous>, transform_indices = @transform_2, window_bounds = array<i64: 1, 64>}, {pipeline_mode = #tpu.pipeline_mode<synchronous>, transform_indices = @transform_3, window_bounds = array<i64: 64, 64>}, {pipeline_mode = #tpu.pipeline_mode<synchronous>, transform_indices = @transform_4, window_bounds = array<i64: 1, 64>}, {pipeline_mode = #tpu.pipeline_mode<synchronous>, transform_indices = @transform_5, window_bounds = array<i64: 64, 128>}, {pipeline_mode = #tpu.pipeline_mode<synchronous>, transform_indices = @transform_6, window_bounds = array<i64: 1, 128>}, {pipeline_mode = #tpu.pipeline_mode<synchronous>, transform_indices = @transform_7, window_bounds = array<i64: 128, 1024>}, {pipeline_mode = #tpu.pipeline_mode<synchronous>, transform_indices = @transform_8, window_bounds = array<i64: 1, 1024>}, {transform_indices = @transform_9, window_bounds = array<i64: 1, 128, 1024>}, {transform_indices = @transform_10, window_bounds = array<i64: 1, 1, 1024>}]} {
    %c0 = arith.constant 0 : index
    %c0_0 = arith.constant 0 : index
    %c0_1 = arith.constant 0 : index
    %0 = vector.load %arg2[%c0, %c0_0, %c0_1] : memref<1x128x9xf32, #tpu.memory_space<vmem>>, vector<1x128x9xf32>
    %1 = vector.shape_cast %0 : vector<1x128x9xf32> to vector<128x9xf32>
    %2 = arith.truncf %1 : vector<128x9xf32> to vector<128x9xbf16>
    %c0_2 = arith.constant 0 : index
    %c0_3 = arith.constant 0 : index
    %3 = vector.load %arg3[%c0_2, %c0_3] : memref<9x64xbf16, #tpu.memory_space<vmem>>, vector<9x64xbf16>
    %cst = arith.constant dense<0.000000e+00> : vector<128x64xf32>
    %4 = tpu.matmul %2, %3, %cst {dimension_numbers = #tpu.dot_dimension_numbers<[1], [0], [0], [1], [0, 0, 1, 1], [], []>} : vector<128x9xbf16>, vector<9x64xbf16>, vector<128x64xf32> -> vector<128x64xf32>
    %c0_4 = arith.constant 0 : index
    %c0_5 = arith.constant 0 : index
    %5 = vector.load %arg4[%c0_4, %c0_5] : memref<1x64xf32, #tpu.memory_space<vmem>>, vector<1x64xf32>
    %6 = vector.broadcast %5 : vector<1x64xf32> to vector<128x64xf32>
    %7 = arith.addf %4, %6 : vector<128x64xf32>
    %cst_6 = arith.constant 0.000000e+00 : f32
    %8 = vector.broadcast %cst_6 : f32 to vector<128x64xf32>
    %9 = arith.maximumf %7, %8 : vector<128x64xf32>
    %10 = arith.truncf %9 : vector<128x64xf32> to vector<128x64xbf16>
    %c0_7 = arith.constant 0 : index
    %c0_8 = arith.constant 0 : index
    %11 = vector.load %arg5[%c0_7, %c0_8] : memref<64x64xbf16, #tpu.memory_space<vmem>>, vector<64x64xbf16>
    %cst_9 = arith.constant dense<0.000000e+00> : vector<128x64xf32>
    %12 = tpu.matmul %10, %11, %cst_9 {dimension_numbers = #tpu.dot_dimension_numbers<[1], [0], [0], [1], [0, 0, 1, 1], [], []>} : vector<128x64xbf16>, vector<64x64xbf16>, vector<128x64xf32> -> vector<128x64xf32>
    %c0_10 = arith.constant 0 : index
    %c0_11 = arith.constant 0 : index
    %13 = vector.load %arg6[%c0_10, %c0_11] : memref<1x64xf32, #tpu.memory_space<vmem>>, vector<1x64xf32>
    %14 = vector.broadcast %13 : vector<1x64xf32> to vector<128x64xf32>
    %15 = arith.addf %12, %14 : vector<128x64xf32>
    %cst_12 = arith.constant 0.000000e+00 : f32
    %16 = vector.broadcast %cst_12 : f32 to vector<128x64xf32>
    %17 = arith.maximumf %15, %16 : vector<128x64xf32>
    %18 = arith.truncf %17 : vector<128x64xf32> to vector<128x64xbf16>
    %c0_13 = arith.constant 0 : index
    %c0_14 = arith.constant 0 : index
    %19 = vector.load %arg7[%c0_13, %c0_14] : memref<64x128xbf16, #tpu.memory_space<vmem>>, vector<64x128xbf16>
    %cst_15 = arith.constant dense<0.000000e+00> : vector<128x128xf32>
    %20 = tpu.matmul %18, %19, %cst_15 {dimension_numbers = #tpu.dot_dimension_numbers<[1], [0], [0], [1], [0, 0, 1, 1], [], []>} : vector<128x64xbf16>, vector<64x128xbf16>, vector<128x128xf32> -> vector<128x128xf32>
    %c0_16 = arith.constant 0 : index
    %c0_17 = arith.constant 0 : index
    %21 = vector.load %arg8[%c0_16, %c0_17] : memref<1x128xf32, #tpu.memory_space<vmem>>, vector<1x128xf32>
    %22 = vector.broadcast %21 : vector<1x128xf32> to vector<128x128xf32>
    %23 = arith.addf %20, %22 : vector<128x128xf32>
    %cst_18 = arith.constant 0.000000e+00 : f32
    %24 = vector.broadcast %cst_18 : f32 to vector<128x128xf32>
    %25 = arith.maximumf %23, %24 : vector<128x128xf32>
    %26 = arith.truncf %25 : vector<128x128xf32> to vector<128x128xbf16>
    %c0_19 = arith.constant 0 : index
    %c0_20 = arith.constant 0 : index
    %27 = vector.load %arg9[%c0_19, %c0_20] : memref<128x1024xbf16, #tpu.memory_space<vmem>>, vector<128x1024xbf16>
    %cst_21 = arith.constant dense<0.000000e+00> : vector<128x1024xf32>
    %28 = tpu.matmul %26, %27, %cst_21 {dimension_numbers = #tpu.dot_dimension_numbers<[1], [0], [0], [1], [0, 0, 1, 1], [], []>} : vector<128x128xbf16>, vector<128x1024xbf16>, vector<128x1024xf32> -> vector<128x1024xf32>
    %c0_22 = arith.constant 0 : index
    %c0_23 = arith.constant 0 : index
    %29 = vector.load %arg10[%c0_22, %c0_23] : memref<1x1024xf32, #tpu.memory_space<vmem>>, vector<1x1024xf32>
    %30 = vector.broadcast %29 : vector<1x1024xf32> to vector<128x1024xf32>
    %31 = arith.addf %28, %30 : vector<128x1024xf32>
    %cst_24 = arith.constant 0.000000e+00 : f32
    %32 = vector.broadcast %cst_24 : f32 to vector<128x1024xf32>
    %33 = arith.maximumf %31, %32 : vector<128x1024xf32>
    %34 = arith.truncf %33 : vector<128x1024xf32> to vector<128x1024xbf16>
    %35 = vector.shape_cast %34 : vector<128x1024xbf16> to vector<1x128x1024xbf16>
    %c0_25 = arith.constant 0 : index
    %c0_26 = arith.constant 0 : index
    %c0_27 = arith.constant 0 : index
    %36 = vector.load %arg11[%c0_25, %c0_26, %c0_27] : memref<1x128x1024xbf16, #tpu.memory_space<vmem>>, vector<1x128x1024xbf16>
    tpu.vector_store %arg11[%c0_25, %c0_26, %c0_27], %35 {strides = array<i32>} : memref<1x128x1024xbf16, #tpu.memory_space<vmem>>, vector<1x128x1024xbf16>,
    %cst_28 = arith.constant dense<0xFF80> : vector<1x1024xbf16>
    %37 = vector.multi_reduction <maximumf>, %35, %cst_28 [1] : vector<1x128x1024xbf16> to vector<1x1024xbf16>
    %38 = vector.shape_cast %37 : vector<1x1024xbf16> to vector<1x1x1024xbf16>
    %39 = arith.extf %38 : vector<1x1x1024xbf16> to vector<1x1x1024xf32>
    %c0_i32 = arith.constant 0 : i32
    %40 = arith.cmpi eq, %arg1, %c0_i32 : i32
    %41 = arith.extui %40 : i1 to i32
    %c0_i32_29 = arith.constant 0 : i32
    %42 = arith.cmpi ne, %41, %c0_i32_29 : i32
    scf.if %42 {
      %c0_32 = arith.constant 0 : index
      %c0_33 = arith.constant 0 : index
      %c0_34 = arith.constant 0 : index
      %46 = vector.load %arg12[%c0_32, %c0_33, %c0_34] : memref<1x1x1024xf32, #tpu.memory_space<vmem>>, vector<1x1x1024xf32>
      tpu.vector_store %arg12[%c0_32, %c0_33, %c0_34], %39 {strides = array<i32>} : memref<1x1x1024xf32, #tpu.memory_space<vmem>>, vector<1x1x1024xf32>,
    } else {
    }
    %c0_i32_30 = arith.constant 0 : i32
    %43 = arith.cmpi ne, %arg1, %c0_i32_30 : i32
    %44 = arith.extui %43 : i1 to i32
    %c0_i32_31 = arith.constant 0 : i32
    %45 = arith.cmpi ne, %44, %c0_i32_31 : i32
    scf.if %45 {
      %c0_32 = arith.constant 0 : index
      %c0_33 = arith.constant 0 : index
      %c0_34 = arith.constant 0 : index
      %46 = vector.load %arg12[%c0_32, %c0_33, %c0_34] : memref<1x1x1024xf32, #tpu.memory_space<vmem>>, vector<1x1x1024xf32>
      %47 = arith.maximumf %46, %39 : vector<1x1x1024xf32>
      %c0_35 = arith.constant 0 : index
      %c0_36 = arith.constant 0 : index
      %c0_37 = arith.constant 0 : index
      %48 = vector.load %arg12[%c0_35, %c0_36, %c0_37] : memref<1x1x1024xf32, #tpu.memory_space<vmem>>, vector<1x1x1024xf32>
      tpu.vector_store %arg12[%c0_35, %c0_36, %c0_37], %47 {strides = array<i32>} : memref<1x1x1024xf32, #tpu.memory_space<vmem>>, vector<1x1x1024xf32>,
    } else {
    }
    return
  }
  func.func @transform_0(%arg0: i32, %arg1: i32) -> (i32, i32, i32) {
    %c0_i32 = arith.constant 0 : i32
    %c0_i32_0 = arith.constant 0 : i32
    return %arg0, %arg1, %c0_i32 : i32, i32, i32
  }
  func.func @transform_1(%arg0: i32, %arg1: i32) -> (i32, i32) {
    %c0_i32 = arith.constant 0 : i32
    %c0_i32_0 = arith.constant 0 : i32
    %c0_i32_1 = arith.constant 0 : i32
    return %c0_i32, %c0_i32_0 : i32, i32
  }
  func.func @transform_2(%arg0: i32, %arg1: i32) -> (i32, i32) {
    %c0_i32 = arith.constant 0 : i32
    %c0_i32_0 = arith.constant 0 : i32
    %c0_i32_1 = arith.constant 0 : i32
    return %c0_i32, %c0_i32_0 : i32, i32
  }
  func.func @transform_3(%arg0: i32, %arg1: i32) -> (i32, i32) {
    %c0_i32 = arith.constant 0 : i32
    %c0_i32_0 = arith.constant 0 : i32
    %c0_i32_1 = arith.constant 0 : i32
    return %c0_i32, %c0_i32_0 : i32, i32
  }
  func.func @transform_4(%arg0: i32, %arg1: i32) -> (i32, i32) {
    %c0_i32 = arith.constant 0 : i32
    %c0_i32_0 = arith.constant 0 : i32
    %c0_i32_1 = arith.constant 0 : i32
    return %c0_i32, %c0_i32_0 : i32, i32
  }
  func.func @transform_5(%arg0: i32, %arg1: i32) -> (i32, i32) {
    %c0_i32 = arith.constant 0 : i32
    %c0_i32_0 = arith.constant 0 : i32
    %c0_i32_1 = arith.constant 0 : i32
    return %c0_i32, %c0_i32_0 : i32, i32
  }
  func.func @transform_6(%arg0: i32, %arg1: i32) -> (i32, i32) {
    %c0_i32 = arith.constant 0 : i32
    %c0_i32_0 = arith.constant 0 : i32
    %c0_i32_1 = arith.constant 0 : i32
    return %c0_i32, %c0_i32_0 : i32, i32
  }
  func.func @transform_7(%arg0: i32, %arg1: i32) -> (i32, i32) {
    %c0_i32 = arith.constant 0 : i32
    %c0_i32_0 = arith.constant 0 : i32
    %c0_i32_1 = arith.constant 0 : i32
    return %c0_i32, %c0_i32_0 : i32, i32
  }
  func.func @transform_8(%arg0: i32, %arg1: i32) -> (i32, i32) {
    %c0_i32 = arith.constant 0 : i32
    %c0_i32_0 = arith.constant 0 : i32
    %c0_i32_1 = arith.constant 0 : i32
    return %c0_i32, %c0_i32_0 : i32, i32
  }
  func.func @transform_9(%arg0: i32, %arg1: i32) -> (i32, i32, i32) {
    %c0_i32 = arith.constant 0 : i32
    %c0_i32_0 = arith.constant 0 : i32
    return %arg0, %arg1, %c0_i32 : i32, i32, i32
  }
  func.func @transform_10(%arg0: i32, %arg1: i32) -> (i32, i32, i32) {
    %c0_i32 = arith.constant 0 : i32
    %c0_i32_0 = arith.constant 0 : i32
    %c0_i32_1 = arith.constant 0 : i32
    return %arg0, %c0_i32, %c0_i32_0 : i32, i32, i32
  }
}

module attributes {stable_mosaic.version = 11 : i64} {
  func.func @pass1_kernel(%arg0: i32, %arg1: i32, %arg2: memref<1x128x9xf32, #tpu.memory_space<vmem>>, %arg3: memref<9x64xbf16, #tpu.memory_space<vmem>>, %arg4: memref<1x64xf32, #tpu.memory_space<vmem>>, %arg5: memref<64x64xbf16, #tpu.memory_space<vmem>>, %arg6: memref<1x64xf32, #tpu.memory_space<vmem>>, %arg7: memref<64x128xbf16, #tpu.memory_space<vmem>>, %arg8: memref<1x128xf32, #tpu.memory_space<vmem>>, %arg9: memref<128x1024xbf16, #tpu.memory_space<vmem>>, %arg10: memref<1x1024xf32, #tpu.memory_space<vmem>>, %arg11: memref<1x128x1024xbf16, #tpu.memory_space<vmem>>, %arg12: memref<1x1x1024xf32, #tpu.memory_space<vmem>>) attributes {dimension_semantics = [#tpu.dimension_semantics<parallel>, #tpu.dimension_semantics<arbitrary>], iteration_bounds = array<i64: 2, 1>, scalar_prefetch = 0 : i64, scratch_operands = 0 : i64, tpu.core_type = #tpu.core_type<tc>, window_params = [{transform_indices = @transform_0, window_bounds = array<i64: 1, 128, 9>}, {pipeline_mode = #tpu.pipeline_mode<synchronous>, transform_indices = @transform_1, window_bounds = array<i64: 9, 64>}, {pipeline_mode = #tpu.pipeline_mode<synchronous>, transform_indices = @transform_2, window_bounds = array<i64: 1, 64>}, {pipeline_mode = #tpu.pipeline_mode<synchronous>, transform_indices = @transform_3, window_bounds = array<i64: 64, 64>}, {pipeline_mode = #tpu.pipeline_mode<synchronous>, transform_indices = @transform_4, window_bounds = array<i64: 1, 64>}, {pipeline_mode = #tpu.pipeline_mode<synchronous>, transform_indices = @transform_5, window_bounds = array<i64: 64, 128>}, {pipeline_mode = #tpu.pipeline_mode<synchronous>, transform_indices = @transform_6, window_bounds = array<i64: 1, 128>}, {pipeline_mode = #tpu.pipeline_mode<synchronous>, transform_indices = @transform_7, window_bounds = array<i64: 128, 1024>}, {pipeline_mode = #tpu.pipeline_mode<synchronous>, transform_indices = @transform_8, window_bounds = array<i64: 1, 1024>}, {transform_indices = @transform_9, window_bounds = array<i64: 1, 128, 1024>}, {transform_indices = @transform_10, window_bounds = array<i64: 1, 1, 1024>}]} {
    %c0 = arith.constant 0 : index
    %c0_0 = arith.constant 0 : index
    %c0_1 = arith.constant 0 : index
    %0 = vector.load %arg2[%c0, %c0_0, %c0_1] : memref<1x128x9xf32, #tpu.memory_space<vmem>>, vector<1x128x9xf32>
    %1 = vector.shape_cast %0 : vector<1x128x9xf32> to vector<128x9xf32>
    %2 = arith.truncf %1 : vector<128x9xf32> to vector<128x9xbf16>
    %c0_2 = arith.constant 0 : index
    %c0_3 = arith.constant 0 : index
    %3 = vector.load %arg3[%c0_2, %c0_3] : memref<9x64xbf16, #tpu.memory_space<vmem>>, vector<9x64xbf16>
    %cst = arith.constant dense<0.000000e+00> : vector<128x64xf32>
    %4 = tpu.matmul %2, %3, %cst {dimension_numbers = #tpu.dot_dimension_numbers<[1], [0], [0], [1], [0, 0, 1, 1], [], []>} : vector<128x9xbf16>, vector<9x64xbf16>, vector<128x64xf32> -> vector<128x64xf32>
    %c0_4 = arith.constant 0 : index
    %c0_5 = arith.constant 0 : index
    %5 = vector.load %arg4[%c0_4, %c0_5] : memref<1x64xf32, #tpu.memory_space<vmem>>, vector<1x64xf32>
    %6 = vector.broadcast %5 : vector<1x64xf32> to vector<128x64xf32>
    %7 = arith.addf %4, %6 : vector<128x64xf32>
    %cst_6 = arith.constant 0.000000e+00 : f32
    %8 = vector.broadcast %cst_6 : f32 to vector<128x64xf32>
    %9 = arith.maximumf %7, %8 : vector<128x64xf32>
    %10 = arith.truncf %9 : vector<128x64xf32> to vector<128x64xbf16>
    %c0_7 = arith.constant 0 : index
    %c0_8 = arith.constant 0 : index
    %11 = vector.load %arg5[%c0_7, %c0_8] : memref<64x64xbf16, #tpu.memory_space<vmem>>, vector<64x64xbf16>
    %cst_9 = arith.constant dense<0.000000e+00> : vector<128x64xf32>
    %12 = tpu.matmul %10, %11, %cst_9 {dimension_numbers = #tpu.dot_dimension_numbers<[1], [0], [0], [1], [0, 0, 1, 1], [], []>} : vector<128x64xbf16>, vector<64x64xbf16>, vector<128x64xf32> -> vector<128x64xf32>
    %c0_10 = arith.constant 0 : index
    %c0_11 = arith.constant 0 : index
    %13 = vector.load %arg6[%c0_10, %c0_11] : memref<1x64xf32, #tpu.memory_space<vmem>>, vector<1x64xf32>
    %14 = vector.broadcast %13 : vector<1x64xf32> to vector<128x64xf32>
    %15 = arith.addf %12, %14 : vector<128x64xf32>
    %cst_12 = arith.constant 0.000000e+00 : f32
    %16 = vector.broadcast %cst_12 : f32 to vector<128x64xf32>
    %17 = arith.maximumf %15, %16 : vector<128x64xf32>
    %18 = arith.truncf %17 : vector<128x64xf32> to vector<128x64xbf16>
    %c0_13 = arith.constant 0 : index
    %c0_14 = arith.constant 0 : index
    %19 = vector.load %arg7[%c0_13, %c0_14] : memref<64x128xbf16, #tpu.memory_space<vmem>>, vector<64x128xbf16>
    %cst_15 = arith.constant dense<0.000000e+00> : vector<128x128xf32>
    %20 = tpu.matmul %18, %19, %cst_15 {dimension_numbers = #tpu.dot_dimension_numbers<[1], [0], [0], [1], [0, 0, 1, 1], [], []>} : vector<128x64xbf16>, vector<64x128xbf16>, vector<128x128xf32> -> vector<128x128xf32>
    %c0_16 = arith.constant 0 : index
    %c0_17 = arith.constant 0 : index
    %21 = vector.load %arg8[%c0_16, %c0_17] : memref<1x128xf32, #tpu.memory_space<vmem>>, vector<1x128xf32>
    %22 = vector.broadcast %21 : vector<1x128xf32> to vector<128x128xf32>
    %23 = arith.addf %20, %22 : vector<128x128xf32>
    %cst_18 = arith.constant 0.000000e+00 : f32
    %24 = vector.broadcast %cst_18 : f32 to vector<128x128xf32>
    %25 = arith.maximumf %23, %24 : vector<128x128xf32>
    %26 = arith.truncf %25 : vector<128x128xf32> to vector<128x128xbf16>
    %c0_19 = arith.constant 0 : index
    %c0_20 = arith.constant 0 : index
    %27 = vector.load %arg9[%c0_19, %c0_20] : memref<128x1024xbf16, #tpu.memory_space<vmem>>, vector<128x1024xbf16>
    %cst_21 = arith.constant dense<0.000000e+00> : vector<128x1024xf32>
    %28 = tpu.matmul %26, %27, %cst_21 {dimension_numbers = #tpu.dot_dimension_numbers<[1], [0], [0], [1], [0, 0, 1, 1], [], []>} : vector<128x128xbf16>, vector<128x1024xbf16>, vector<128x1024xf32> -> vector<128x1024xf32>
    %c0_22 = arith.constant 0 : index
    %c0_23 = arith.constant 0 : index
    %29 = vector.load %arg10[%c0_22, %c0_23] : memref<1x1024xf32, #tpu.memory_space<vmem>>, vector<1x1024xf32>
    %30 = vector.broadcast %29 : vector<1x1024xf32> to vector<128x1024xf32>
    %31 = arith.addf %28, %30 : vector<128x1024xf32>
    %cst_24 = arith.constant 0.000000e+00 : f32
    %32 = vector.broadcast %cst_24 : f32 to vector<128x1024xf32>
    %33 = arith.maximumf %31, %32 : vector<128x1024xf32>
    %34 = arith.truncf %33 : vector<128x1024xf32> to vector<128x1024xbf16>
    %35 = vector.shape_cast %34 : vector<128x1024xbf16> to vector<1x128x1024xbf16>
    %c0_25 = arith.constant 0 : index
    %c0_26 = arith.constant 0 : index
    %c0_27 = arith.constant 0 : index
    %36 = vector.load %arg11[%c0_25, %c0_26, %c0_27] : memref<1x128x1024xbf16, #tpu.memory_space<vmem>>, vector<1x128x1024xbf16>
    tpu.vector_store %arg11[%c0_25, %c0_26, %c0_27], %35 {strides = array<i32>} : memref<1x128x1024xbf16, #tpu.memory_space<vmem>>, vector<1x128x1024xbf16>,
    %cst_28 = arith.constant dense<0xFF80> : vector<1x1024xbf16>
    %37 = vector.multi_reduction <maximumf>, %35, %cst_28 [1] : vector<1x128x1024xbf16> to vector<1x1024xbf16>
    %38 = vector.shape_cast %37 : vector<1x1024xbf16> to vector<1x1x1024xbf16>
    %39 = arith.extf %38 : vector<1x1x1024xbf16> to vector<1x1x1024xf32>
    %c0_i32 = arith.constant 0 : i32
    %40 = arith.cmpi eq, %arg1, %c0_i32 : i32
    %41 = arith.extui %40 : i1 to i32
    %c0_i32_29 = arith.constant 0 : i32
    %42 = arith.cmpi ne, %41, %c0_i32_29 : i32
    scf.if %42 {
      %c0_32 = arith.constant 0 : index
      %c0_33 = arith.constant 0 : index
      %c0_34 = arith.constant 0 : index
      %46 = vector.load %arg12[%c0_32, %c0_33, %c0_34] : memref<1x1x1024xf32, #tpu.memory_space<vmem>>, vector<1x1x1024xf32>
      tpu.vector_store %arg12[%c0_32, %c0_33, %c0_34], %39 {strides = array<i32>} : memref<1x1x1024xf32, #tpu.memory_space<vmem>>, vector<1x1x1024xf32>,
    } else {
    }
    %c0_i32_30 = arith.constant 0 : i32
    %43 = arith.cmpi ne, %arg1, %c0_i32_30 : i32
    %44 = arith.extui %43 : i1 to i32
    %c0_i32_31 = arith.constant 0 : i32
    %45 = arith.cmpi ne, %44, %c0_i32_31 : i32
    scf.if %45 {
      %c0_32 = arith.constant 0 : index
      %c0_33 = arith.constant 0 : index
      %c0_34 = arith.constant 0 : index
      %46 = vector.load %arg12[%c0_32, %c0_33, %c0_34] : memref<1x1x1024xf32, #tpu.memory_space<vmem>>, vector<1x1x1024xf32>
      %47 = arith.maximumf %46, %39 : vector<1x1x1024xf32>
      %c0_35 = arith.constant 0 : index
      %c0_36 = arith.constant 0 : index
      %c0_37 = arith.constant 0 : index
      %48 = vector.load %arg12[%c0_35, %c0_36, %c0_37] : memref<1x1x1024xf32, #tpu.memory_space<vmem>>, vector<1x1x1024xf32>
      tpu.vector_store %arg12[%c0_35, %c0_36, %c0_37], %47 {strides = array<i32>} : memref<1x1x1024xf32, #tpu.memory_space<vmem>>, vector<1x1x1024xf32>,
    } else {
    }
    return
  }
  func.func @transform_0(%arg0: i32, %arg1: i32) -> (i32, i32, i32) {
    %c0_i32 = arith.constant 0 : i32
    %c0_i32_0 = arith.constant 0 : i32
    return %arg0, %arg1, %c0_i32 : i32, i32, i32
  }
  func.func @transform_1(%arg0: i32, %arg1: i32) -> (i32, i32) {
    %c0_i32 = arith.constant 0 : i32
    %c0_i32_0 = arith.constant 0 : i32
    %c0_i32_1 = arith.constant 0 : i32
    return %c0_i32, %c0_i32_0 : i32, i32
  }
  func.func @transform_2(%arg0: i32, %arg1: i32) -> (i32, i32) {
    %c0_i32 = arith.constant 0 : i32
    %c0_i32_0 = arith.constant 0 : i32
    %c0_i32_1 = arith.constant 0 : i32
    return %c0_i32, %c0_i32_0 : i32, i32
  }
  func.func @transform_3(%arg0: i32, %arg1: i32) -> (i32, i32) {
    %c0_i32 = arith.constant 0 : i32
    %c0_i32_0 = arith.constant 0 : i32
    %c0_i32_1 = arith.constant 0 : i32
    return %c0_i32, %c0_i32_0 : i32, i32
  }
  func.func @transform_4(%arg0: i32, %arg1: i32) -> (i32, i32) {
    %c0_i32 = arith.constant 0 : i32
    %c0_i32_0 = arith.constant 0 : i32
    %c0_i32_1 = arith.constant 0 : i32
    return %c0_i32, %c0_i32_0 : i32, i32
  }
  func.func @transform_5(%arg0: i32, %arg1: i32) -> (i32, i32) {
    %c0_i32 = arith.constant 0 : i32
    %c0_i32_0 = arith.constant 0 : i32
    %c0_i32_1 = arith.constant 0 : i32
    return %c0_i32, %c0_i32_0 : i32, i32
  }
  func.func @transform_6(%arg0: i32, %arg1: i32) -> (i32, i32) {
    %c0_i32 = arith.constant 0 : i32
    %c0_i32_0 = arith.constant 0 : i32
    %c0_i32_1 = arith.constant 0 : i32
    return %c0_i32, %c0_i32_0 : i32, i32
  }
  func.func @transform_7(%arg0: i32, %arg1: i32) -> (i32, i32) {
    %c0_i32 = arith.constant 0 : i32
    %c0_i32_0 = arith.constant 0 : i32
    %c0_i32_1 = arith.constant 0 : i32
    return %c0_i32, %c0_i32_0 : i32, i32
  }
  func.func @transform_8(%arg0: i32, %arg1: i32) -> (i32, i32) {
    %c0_i32 = arith.constant 0 : i32
    %c0_i32_0 = arith.constant 0 : i32
    %c0_i32_1 = arith.constant 0 : i32
    return %c0_i32, %c0_i32_0 : i32, i32
  }
  func.func @transform_9(%arg0: i32, %arg1: i32) -> (i32, i32, i32) {
    %c0_i32 = arith.constant 0 : i32
    %c0_i32_0 = arith.constant 0 : i32
    return %arg0, %arg1, %c0_i32 : i32, i32, i32
  }
  func.func @transform_10(%arg0: i32, %arg1: i32) -> (i32, i32, i32) {
    %c0_i32 = arith.constant 0 : i32
    %c0_i32_0 = arith.constant 0 : i32
    %c0_i32_1 = arith.constant 0 : i32
    return %arg0, %c0_i32, %c0_i32_0 : i32, i32, i32
  }
}

</mosaic_0001>

<bundles_post_ra>
// kernel: tpu_custom_call.1
= control target key start
LH: loop header
LB: loop body
LE: loop exit
PB: predicated region body
PF: predicated region fallthrough
CT: control target
= control target key end

     0   :  { %16 = vsyncpa [#allocation3], 0  ;;  %s4245_s0 = inlined_call_operand.vmem [shape: f32[2,128,9], index: 0, kind: input, shape index: {}]   ;;  %s4246_s1 = inlined_call_operand.vmem [shape: bf16[9,64], index: 1, kind: input, shape index: {}]   ;;  %s4247_s2 = inlined_call_operand.vmem [shape: f32[1,64], index: 2, kind: input, shape index: {}]   ;;  %s4248_s3 = inlined_call_operand.vmem [shape: bf16[64,64], index: 3, kind: input, shape index: {}]   ;;  %s4249_s4 = inlined_call_operand.vmem [shape: f32[1,64], index: 4, kind: input, shape index: {}]   ;;  %s4250_s5 = inlined_call_operand.vmem [shape: bf16[64,128], index: 5, kind: input, shape index: {}]   ;;  %s4251_s6 = inlined_call_operand.vmem [shape: f32[1,128], index: 6, kind: input, shape index: {}]   ;;  %s4252_s7 = inlined_call_operand.hbm [shape: bf16[128,1024], index: 7, kind: input, shape index: {}]   ;;  %s4253_s8 = inlined_call_operand.vmem [shape: f32[1,1024], index: 8, kind: input, shape index: {}]   ;;  %s4254_s9 = inlined_call_operand.hbm [shape: bf16[2,128,1024], index: 9, kind: output, shape index: {0}]   ;;  %s4255_s10 = inlined_call_operand.hbm [shape: f32[2,1,1024], index: 10, kind: output, shape index: {1}]  }
   0x1   :  { %17 = vsyncpa [#allocation4], 0 }
   0x2   :  { %19 = vsyncpa [#allocation4 + $0x1], 0 }
   0x3   :  { %20 = vsyncpa [#allocation7], 0 }
   0x4   :  { %22 = vsyncpa [#allocation7 + $0x1], 0  ;;  %s3508_s13 = smov 0   ;;  %s3510_s14 = smov 0  }
   0x5   :  { %s3512_s15 = smov 0   ;;  %s3514_s16 = smov 0  }
   0x6   :  { %s3516_s17 = smov 0   ;;  %s3518_s18 = smov 0  }
   0x7 LB: > { %4262 = sst [smem:[#allocation11_spill]] %s3437_s17  ;;  %s2861_s19 = sadd.s32 4294967295, %s3441_s18   ;;  %s3441_s18 = sphi %s3518_s18, %s28_s18   ;;  %s3437_s17 = sphi %s3516_s17, %s4274_s17   ;;  %s3433_s16 = sphi %s3514_s16, %s4273_s16   ;;  %s3429_s15 = sphi %s3512_s15, %s4277_s15   ;;  %s3425_s14 = sphi %s3510_s14, %s4276_s14   ;;  %s3421_s13 = sphi %s3508_s13, %s4275_s13  }
   0x8   : > { %s2862_s20 = sadd.s32 4294967294, %s3441_s18   ;;  %s40_s21 = sadd.s32 1, %s3437_s17 }
   0x9   : > { %s245_s22 = sadd.s32 1, %s3429_s15  ;;  %p42_p0 = scmp.ge.s32.totalorder %s40_s21, 2 }
   0xa   : > { %p255_p1 = scmp.ne.s32.totalorder %s3429_s15, %s3425_s14  ;;  %p256_p2 = scmp.eq.s32.totalorder %s2861_s19, 1 }
   0xb   : > { %p261_p3 = scmp.ne.s32.totalorder %s3425_s14, %s3421_s13  ;;  %s4279_s21 = smov (%p42_p0, %s40_s21), 0 }
   0xc   : > { %4263 = sst [smem:[#allocation12_spill]] %s4279_s21  ;;  %p3548_p4 = por %p256_p2, %p255_p1 }
   0xd   : > { %p262_p5 = scmp.eq.s32.totalorder %s2862_s20, 1  ;;  %s240_s24 = ssub.s32 %s3437_s17, %s4279_s21 }
   0xe   : > { %s4264_s23 = scalar_select %p3548_p4, 1, 0 }
   0xf   : > { %p2863_p6 = scmp.ge.s32.totalorder %s3441_s18, 1  ;;  %p243_p7 = scmp.eq.s32.totalorder %s240_s24, 0 }
  0x10   : > { %p3555_p8 = por %p262_p5, %p261_p3  ;;  %p295_p9 = scmp.lt.s32.totalorder %s3441_s18, 3 }
  0x11   : > { %s3561_s26 = scalar_select %p243_p7, %s3429_s15, %s245_s22  }
  0x12   : > { %s4265_s25 = scalar_select %p3555_p8, 1, 0 }
  0x13   : > { %p3563_p10 = pnand %p2863_p6, %p295_p9  ;;  %p3567_p11 = scmp.eq.s32.totalorder %s2861_s19, 0 }
  0x14   : > { %s3443_s29 = smov [#allocation2]   ;;  %s3299_s22 = scalar_lea.hbm %s4252_s7, 8192 }
  0x15   : > { %s4266_s27 = scalar_select %p3563_p10, 1, 0 }
  0x16   : > { %s4267_s28 = scalar_select %p3567_p11, 1, 0 }
  0x17   : > { %p3220_p12 = pneg %p3563_p10  ;;  %s325_s30 = sshll.u32 %s3443_s29, 4  ;;  %s326_s30 = int_to_ptr.vmem [resolvable:$true] %s325_s30 }
  0x18   : > { %p3300_p0 = scmp.ne.s32.totalorder %s4252_s7, %s3299_s22  ;;  %p3306_p5 = scmp.lt.u32.totalorder %s3299_s22, %s4252_s7 }
  0x19   : > { %p3575_p13 = pnand %p3567_p11, %p3220_p12 }
  0x1b   : > { %p3301_p1 = pneg %p3575_p13 }
  0x1d   : > { %p3302_p2 = pnand %p3301_p1, %p3300_p0 }
  0x1f   : > { %p3303_p3 = pneg %p3302_p2 }
  0x21   : > { %p3308_p6 = pnand %p3306_p5, %p3303_p3 }
  0x23   : > { %3311 = shalt.err (!%p3308_p6)
}
  0x24   : > { %s3312_s17 = scalar_lea.vmem %s326_s30, 8192  ;;  %p3320_p8 = scmp.lt.s32.totalorder %s326_s30, %s326_s30 }
  0x25   : > { %p3313_p7 = scmp.ne.s32.totalorder %s326_s30, %s3312_s17  ;;  %p3321_p4 = scmp.lt.s32.totalorder %s3312_s17, %s3312_s17 }
  0x27   : > { %p3315_p9 = pnand %p3313_p7, %p3301_p1  ;;  %p3322_p11 = por %p3321_p4, %p3320_p8 }
  0x29   : > { %p3316_p12 = pneg %p3315_p9 }
  0x2b   : > { %p3323_p10 = pnand %p3322_p11, %p3316_p12 }
  0x2d   : > { %3326 = shalt.err (!%p3323_p10)
}
  0x2e   : > { %s3444_s12 = smov 512   ;;  %s3445_s20 = smov 32  }
  0x2f   : > { %3223 = dma.hbm_to_vmem [thread:$0]  (!%p3575_p13), %s4252_s7, 8192, %s326_s30, [#allocation3], %s3444_s12, %s3444_s12, %s3445_s20  }
  0x30   : > { %p4269_p0 = scmp.ne.s32.totalorder %s4266_s27, 0 }
  0x31   : > { %p4270_p2 = scmp.ne.s32.totalorder (!%p4269_p0), %s4267_s28, 0 }
  0x32   : > { %357 = sbr.rel (%p4269_p0) target bundleno = 1137 (0x471), region = 56 }
  0x39   : > { %3408 = dma.done.wait (%p4270_p2), [#allocation3], 8192  }
  0x3a   : > { %3410 = vsyncadd (%p4270_p2), [#allocation3], 4294959104  ;;  %vm479_vm0 = vcmask 1043456   ;;  %p405_p4 = scmp.lt.s32.totalorder %s3433_s16, 1  ;;  %vm480_vm1 = vcmask 1044480   ;;  %v3446_v0 = vmov 65535  }
  0x3b   : > { %v481_v1 = vsel %vm479_vm0, 4294967295, %v3446_v0  ;;  %v3290_v3 = vld [vmem:[%s4246_s1] sm:$0x1f]   ;;  %vm454_vm2 = vcmask 72704   ;;  %v3292_v28 = vld [vmem:[%s4248_s3 + $0x8] sm:$0xff]   ;;  %v3293_v31 = vld [vmem:[%s4248_s3 + $0x10] sm:$0xff]  }
  0x3c   : > { %s406_s17 = scalar_select %p405_p4, %s3433_s16, 1  ;;  %v482_v2 = vsel %vm480_vm1, %v481_v1, 0  ;;  %v3291_v25 = vld [vmem:[%s4248_s3] sm:$0xff]   ;;  %v3294_v32 = vld [vmem:[%s4248_s3 + $0x18] sm:$0xff]   ;;  %v3296_v34 = vld [vmem:[%s4250_s5 + $0x8] sm:$0xff]   ;;  %vm646_vm3 = vcmask 523264  }
  0x3d   : > { %v484_v7 = vand.u32 %v3290_v3, %v482_v2  ;;  %v3295_v33 = vld [vmem:[%s4250_s5] sm:$0xff]   ;;  %s3829_s29 = sand.u32 1, %s3425_s14   ;;  %s3109_s19 = sshll.u32 %s3433_s16, 13 }
  0x3e   : > { %s3044_s21 = sshll.u32 %s406_s17, 7  ;;  %v2872_v35 = vld [vmem:[%s4247_s2] ss:$0 sm:$0xff]  ;;  %s2868_s12 = sshll.u32 %s3829_s29, 9 }
  0x3f   : > { %s3606_s27 = scalar_lea.vmem %s4245_s0, %s3044_s21  ;;  %3144 = vmatprep.subr.bf16.mxu0 %v484_v7  ;;  %3210 = vmatprep.subr.bf16.mxu1 %v484_v7  ;;  %s3844_s20 = scalar_lea.vmem [#allocation5], %s2868_s12 }
  0x40   : > { %v416_v4 = vld [vmem:[%s3606_s27] sm:$0xff]  ;;  %v417_v5 = vld [vmem:[%s3606_s27 + $0x8] sm:$0xff]  ;;  %v418_v6 = vld [vmem:[%s3606_s27 + $0x10] sm:$0xff]  ;;  %3145 = vmatpush3.bf16.msra.mxu0 %v484_v7  ;;  %3211 = vmatpush3.bf16.msra.mxu1 %v484_v7  ;;  %s2724_s24 = sshll.u32 %s3844_s20, 4  ;;  %s4153_s11 = scalar_lea.hbm %s4254_s9, %s3109_s19  ;;  %s4155_s24 = int_to_ptr.vmem [resolvable:$true] %s2724_s24 }
  0x41   : > { %v432_v8 = vpack.c.bf16 %v417_v5, %v416_v4  ;;  %v419_v9 = vld [vmem:[%s3606_s27 + $0x18] sm:$0xff]  ;;  %v420_v10 = vld [vmem:[%s3606_s27 + $0x20] sm:$0xff]  ;;  %v421_v11 = vld [vmem:[%s3606_s27 + $0x28] sm:$0xff]  ;;  %3162 = vmatprep.subr.bf16.mxu1 %v3291_v25  ;;  %3186 = vmatprep.subr.bf16.mxu0 %v3295_v33  ;;  %s2703_s30 = scalar_lea.sflag [#allocation4], %s3829_s29  ;;  %p4271_p10 = scmp.ne.s32.totalorder %s4264_s23, 0 }
  0x42   : > { %v424_v12 = vld [vmem:[%s3606_s27 + $0x40] sm:$0xff]  ;;  %v433_v13 = vpack.c.bf16 %v419_v9, %v418_v6  ;;  %v425_v14 = vld [vmem:[%s3606_s27 + $0x48] sm:$0xff]  ;;  %v426_v15 = vld [vmem:[%s3606_s27 + $0x50] sm:$0xff]  ;;  %v434_v17 = vpack.c.bf16 %v421_v11, %v420_v10  ;;  %s3449_s28 = smov [#allocation5]  }
  0x43   : > { %3146 = vmatprep.mubr.msk.bf16.mxu0 %vm454_vm2, %v432_v8  ;;  %v427_v16 = vld [vmem:[%s3606_s27 + $0x58] sm:$0xff]  ;;  %v436_v18 = vpack.c.bf16 %v425_v14, %v424_v12  ;;  %v428_v20 = vld [vmem:[%s3606_s27 + $0x60] sm:$0xff]  ;;  %v429_v21 = vld [vmem:[%s3606_s27 + $0x68] sm:$0xff]  ;;  %s3331_s22 = sshll.u32 %s3449_s28, 4  ;;  %s3332_s22 = int_to_ptr.vmem [resolvable:$false] %s3331_s22 }
  0x44   : > { %v437_v19 = vpack.c.bf16 %v427_v16, %v426_v15  ;;  %v438_v22 = vpack.c.bf16 %v429_v21, %v428_v20  ;;  %v422_v23 = vld [vmem:[%s3606_s27 + $0x30] sm:$0xff]  ;;  %v423_v24 = vld [vmem:[%s3606_s27 + $0x38] sm:$0xff]  ;;  %3147 = vmatmul.mubr.msk.bf16.vlgmr.msra.gmra.mrb[0].mxu0 %vm454_vm2, %v433_v13  ;;  %s3333_s12 = scalar_lea.vmem %s3332_s22, 16384  ;;  %p3334_p1 = scmp.lt.s32.totalorder %s4155_s24, %s3332_s22 }
  0x45   : > { %3154 = vmatprep.mubr.msk.bf16.mxu1 %vm454_vm2, %v436_v18  ;;  %v430_v26 = vld [vmem:[%s3606_s27 + $0x70] sm:$0xff]  ;;  %v431_v27 = vld [vmem:[%s3606_s27 + $0x78] sm:$0xff]  ;;  %3150 = vmatprep.mubr.msk.bf16.mxu0 %vm454_vm2, %v434_v17  ;;  %v435_v29 = vpack.c.bf16 %v423_v24, %v422_v23  ;;  %s3327_s27 = scalar_lea.vmem %s4155_s24, 8192 }
  0x46   : > { %3155 = vmatmul.mubr.msk.bf16.vlgmr.msra.gmra.mrb[0].mxu1 %vm454_vm2, %v437_v19  ;;  %v439_v30 = vpack.c.bf16 %v431_v27, %v430_v26  ;;  %3187 = vmatpush3.bf16.msra.mxu0 %v3295_v33  ;;  %p3328_p8 = scmp.ne.s32.totalorder %s4155_s24, %s3327_s27  ;;  %p3335_p3 = scmp.lt.s32.totalorder %s3333_s12, %s3327_s27 }
  0x47   : > { %3158 = vmatprep.mubr.msk.bf16.mxu1 %vm454_vm2, %v438_v22  ;;  %3163 = vmatpush3.bf16.msra.mxu1 %v3291_v25 }
  0x48   : > { %3164 = vmatprep.subr.bf16.mxu1 %v3292_v28  ;;  %3188 = vmatprep.subr.bf16.mxu0 %v3296_v34  ;;  %p3329_p11 = pnand %p3328_p8, %p4271_p10  ;;  %p3336_p5 = por %p3335_p3, %p3334_p1 }
  0x4a   : > { %3189 = vmatpush3.bf16.msra.mxu0 %v3296_v34  ;;  %p3330_p13 = pneg %p3329_p11 }
  0x4b   : > { %3165 = vmatpush3.bf16.msra.mxu1 %v3292_v28  ;;  %v3297_v28 = vld [vmem:[%s4250_s5 + $0x10] sm:$0xff]  }
  0x4c   : > { %3151 = vmatmul.mubr.msk.bf16.gmra.mrb[4].mxu0 %vm454_vm2, %v435_v29  ;;  %3166 = vmatprep.subr.bf16.mxu1 %v3293_v31  ;;  %v3298_v29 = vld [vmem:[%s4250_s5 + $0x18] sm:$0xff]   ;;  %p3337_p6 = pnand %p3336_p5, %p3330_p13 }
  0x4d   : > { %3190 = vmatprep.subr.bf16.mxu0 %v3297_v28 }
  0x4e   : > { %3159 = vmatmul.mubr.msk.bf16.gmra.mrb[4].mxu1 %vm454_vm2, %v439_v30  ;;  %3191 = vmatpush3.bf16.msra.mxu0 %v3297_v28  ;;  %v976_v30 = vld [vmem:[#allocation2] sm:$0xff]  ;;  %v1001_v28 = vld [vmem:[#allocation2 + $0xc8] sm:$0xff] }
  0x4f   : > { %3167 = vmatpush3.bf16.msra.mxu1 %v3293_v31  ;;  %3192 = vmatprep.subr.bf16.mxu0 %v3298_v29  ;;  %v980_v31 = vld [vmem:[#allocation2 + $0x20] sm:$0xff] }
  0x50   : > { %3168 = vmatprep.subr.bf16.mxu1 %v3294_v32  ;;  %v2908_v33 = vcombine.low %v976_v30, %v980_v31  ;;  %v2909_v34 = vcombine.high %v976_v30, %v980_v31 }
  0x52   : > { %3193 = vmatpush3.bf16.msra.mxu0 %v3298_v29  ;;  %v1005_v29 = vld [vmem:[#allocation2 + $0xe8] sm:$0xff] }
  0x53   : > { %3169 = vmatpush3.bf16.msra.mxu1 %v3294_v32  ;;  %v3670_v32 = vld [vmem:[#allocation2 + $0x8] sm:$0xff] }
  0x54   : > { %1402 = vmatprep.subr.bf16.mxu1 %v2909_v34 }
 0x117   : > { %v3148_v36 = vpop.f32.mrb[0].mxu0 }
 0x118   : > { %v529_v37 = vadd.f32 %v3148_v36, %v2872_v35  ;;  %v520_v38 = vpop.f32.mrb[1].mxu0  ;;  %v984_v36 = vld [vmem:[#allocation2 + $0x40] sm:$0xff] }
 0x119   : > { %v3156_v39 = vpop.f32.mrb[0].mxu1  ;;  %v521_v40 = vadd.f32 %v2872_v35, %v520_v38  ;;  %v3149_v41 = vpop.f32.mrb[2].mxu0 }
 0x11a   : > { %v561_v42 = vadd.f32 %v3156_v39, %v2872_v35  ;;  %v552_v43 = vpop.f32.mrb[1].mxu1  ;;  %v532_v44 = vadd.f32 %v3149_v41, %v2872_v35  ;;  %v523_v45 = vpop.f32.mrb[3].mxu0  ;;  %v585_v52 = vmax.f32 %v529_v37, 0.0  ;;  %v988_v37 = vld [vmem:[#allocation2 + $0x60] sm:$0xff] }
 0x11b   : > { %v553_v46 = vadd.f32 %v2872_v35, %v552_v43  ;;  %v3157_v47 = vpop.f32.mrb[2].mxu1  ;;  %v524_v48 = vadd.f32 %v2872_v35, %v523_v45  ;;  %v583_v56 = vmax.f32 %v521_v40, 0.0  ;;  %v2917_v40 = vcombine.high %v984_v36, %v988_v37  ;;  %v992_v41 = vld [vmem:[#allocation2 + $0x80] sm:$0xff] }
 0x11c   : > { %v593_v49 = vmax.f32 %v561_v42, 0.0  ;;  %v564_v50 = vadd.f32 %v3157_v47, %v2872_v35  ;;  %v555_v51 = vpop.f32.mrb[3].mxu1  ;;  %v586_v53 = vmax.f32 %v532_v44, 0.0  ;;  %v996_v42 = vld [vmem:[#allocation2 + $0xa0] sm:$0xff]  ;;  %v2916_v43 = vcombine.low %v984_v36, %v988_v37 }
 0x11d   : > { %v591_v54 = vmax.f32 %v553_v46, 0.0  ;;  %v556_v55 = vadd.f32 %v2872_v35, %v555_v51  ;;  %v584_v57 = vmax.f32 %v524_v48, 0.0  ;;  %v2925_v44 = vcombine.high %v992_v41, %v996_v42  ;;  %v1000_v45 = vld [vmem:[#allocation2 + $0xc0] sm:$0xff] }
 0x11e   : > { %v594_v58 = vmax.f32 %v564_v50, 0.0  ;;  %v600_v59 = vpack.c.bf16 %v586_v53, %v585_v52  ;;  %v1004_v46 = vld [vmem:[#allocation2 + $0xe0] sm:$0xff]  ;;  %v2924_v47 = vcombine.low %v992_v41, %v996_v42 }
 0x11f   : > { %v592_v60 = vmax.f32 %v556_v55, 0.0  ;;  %v599_v61 = vpack.c.bf16 %v584_v57, %v583_v56  ;;  %v3152_v62 = vpop.f32.mrb[4].mxu0  ;;  %v2933_v48 = vcombine.high %v1000_v45, %v1004_v46  ;;  %v1012_v50 = vld [vmem:[#allocation2 + $0x120] sm:$0xff]  ;;  %v2932_v51 = vcombine.low %v1000_v45, %v1004_v46 }
 0x120   : > { %v604_v63 = vpack.c.bf16 %v594_v58, %v593_v49  ;;  %v545_v0 = vadd.f32 %v3152_v62, %v2872_v35  ;;  %v536_v1 = vpop.f32.mrb[5].mxu0  ;;  %v1008_v49 = vld [vmem:[#allocation2 + $0x100] sm:$0xff]  ;;  %v2934_v46 = vcombine.low %v1001_v28, %v1005_v29 }
 0x121   : > { %v603_v2 = vpack.c.bf16 %v592_v60, %v591_v54  ;;  %v3160_v3 = vpop.f32.mrb[4].mxu1  ;;  %v537_v4 = vadd.f32 %v2872_v35, %v536_v1  ;;  %v3153_v5 = vpop.f32.mrb[6].mxu0  ;;  %3170 = vmatprep.mubr.msk.bf16.mxu1 %vm646_vm3, %v599_v61  ;;  %v2941_v52 = vcombine.high %v1008_v49, %v1012_v50  ;;  %v1016_v53 = vld [vmem:[#allocation2 + $0x140] sm:$0xff]  ;;  %v2940_v55 = vcombine.low %v1008_v49, %v1012_v50  ;;  %v1017_v50 = vld [vmem:[#allocation2 + $0x148] sm:$0xff] }
 0x122   : > { %v577_v6 = vadd.f32 %v3160_v3, %v2872_v35  ;;  %v568_v7 = vpop.f32.mrb[5].mxu1  ;;  %v589_v8 = vmax.f32 %v545_v0, 0.0  ;;  %v548_v9 = vadd.f32 %v3153_v5, %v2872_v35  ;;  %v539_v10 = vpop.f32.mrb[7].mxu0  ;;  %3171 = vmatmul.mubr.msk.bf16.vlgmr.msra.gmra.mrb[8].mxu1 %vm646_vm3, %v600_v59  ;;  %v1020_v54 = vld [vmem:[#allocation2 + $0x160] sm:$0xff] }
 0x123   : > { %v569_v11 = vadd.f32 %v2872_v35, %v568_v7  ;;  %v3161_v12 = vpop.f32.mrb[6].mxu1  ;;  %v587_v13 = vmax.f32 %v537_v4, 0.0  ;;  %v540_v14 = vadd.f32 %v2872_v35, %v539_v10  ;;  %1403 = vmatpush1.bf16.msra.mxu1 %v2908_v33  ;;  %v2949_v56 = vcombine.high %v1016_v53, %v1020_v54  ;;  %v3681_v58 = vld [vmem:[%s4249_s4] ss:$0 sm:$0xff]  ;;  %v985_v7 = vld [vmem:[#allocation2 + $0x48] sm:$0xff] }
 0x124   : > { %v597_v15 = vmax.f32 %v577_v6, 0.0  ;;  %v580_v16 = vadd.f32 %v3161_v12, %v2872_v35  ;;  %v571_v17 = vpop.f32.mrb[7].mxu1  ;;  %v590_v18 = vmax.f32 %v548_v9, 0.0  ;;  %1404 = vmatprep.subr.bf16.mxu1 %v2917_v40  ;;  %v2948_v57 = vcombine.low %v1016_v53, %v1020_v54  ;;  %v1013_v40 = vld [vmem:[#allocation2 + $0x128] sm:$0xff] }
 0x125   : > { %v595_v19 = vmax.f32 %v569_v11, 0.0  ;;  %v572_v20 = vadd.f32 %v2872_v35, %v571_v17  ;;  %v588_v21 = vmax.f32 %v540_v14, 0.0  ;;  %v3672_v35 = vld [vmem:[#allocation2 + $0x28] sm:$0xff] }
 0x126   : > { %v598_v22 = vmax.f32 %v580_v16, 0.0  ;;  %v602_v23 = vpack.c.bf16 %v590_v18, %v589_v8  ;;  %v2910_v38 = vcombine.low %v3670_v32, %v3672_v35  ;;  %v2911_v39 = vcombine.high %v3670_v32, %v3672_v35  ;;  %v989_v8 = vld [vmem:[#allocation2 + $0x68] sm:$0xff] }
 0x127   : > { %v596_v24 = vmax.f32 %v572_v20, 0.0  ;;  %v601_v25 = vpack.c.bf16 %v588_v21, %v587_v13  ;;  %1405 = vmatpush1.bf16.msra.mxu1 %v2916_v43  ;;  %v2919_v14 = vcombine.high %v985_v7, %v989_v8  ;;  %v993_v17 = vld [vmem:[#allocation2 + $0x88] sm:$0xff] }
 0x128   : > { %v606_v26 = vpack.c.bf16 %v598_v22, %v597_v15  ;;  %1515 = vmatprep.subr.bf16.mxu0 %v2911_v39  ;;  %1406 = vmatprep.subr.bf16.mxu1 %v2925_v44  ;;  %v997_v18 = vld [vmem:[#allocation2 + $0xa8] sm:$0xff]  ;;  %v2935_v39 = vcombine.high %v1001_v28, %v1005_v29  ;;  %v983_v29 = vld [vmem:[#allocation2 + $0x38] sm:$0xff] }
 0x129   : > { %v605_v27 = vpack.c.bf16 %v596_v24, %v595_v19  ;;  %3174 = vmatprep.mubr.msk.bf16.mxu1 %vm646_vm3, %v601_v25  ;;  %v2918_v24 = vcombine.low %v985_v7, %v989_v8  ;;  %v2926_v34 = vcombine.low %v993_v17, %v997_v18  ;;  %v1024_v8 = vld [vmem:[#allocation2 + $0x180] sm:$0xff] }
 0x12a   : > { %3175 = vmatmul.mubr.msk.bf16.gmra.mrb[12].mxu1 %vm646_vm3, %v602_v23 }
 0x12b   : > { %3178 = vmatprep.mubr.msk.bf16.mxu1 %vm646_vm3, %v603_v2  ;;  %1407 = vmatpush1.bf16.msra.mxu1 %v2924_v47 }
 0x12c   : > { %1408 = vmatprep.subr.bf16.mxu1 %v2933_v48 }
 0x12f   : > { %1409 = vmatpush1.bf16.msra.mxu1 %v2932_v51  ;;  %v1021_v51 = vld [vmem:[#allocation2 + $0x168] sm:$0xff] }
 0x130   : > { %1410 = vmatprep.subr.bf16.mxu1 %v2941_v52 }
 0x132   : > { %3179 = vmatmul.mubr.msk.bf16.gmra.mrb[16].mxu1 %vm646_vm3, %v604_v63 }
 0x133   : > { %3182 = vmatprep.mubr.msk.bf16.mxu1 %vm646_vm3, %v605_v27  ;;  %1411 = vmatpush1.bf16.msra.mxu1 %v2940_v55 }
 0x134   : > { %1412 = vmatprep.subr.bf16.mxu1 %v2949_v56 }
 0x137   : > { %1413 = vmatpush1.bf16.msra.mxu1 %v2948_v57 }
 0x13a   : > { %3183 = vmatmul.mubr.msk.bf16.gmra.mrb[20].mxu1 %vm646_vm3, %v606_v26  ;;  %v2927_v26 = vcombine.high %v993_v17, %v997_v18  ;;  %v1033_v17 = vld [vmem:[#allocation2 + $0x1c8] sm:$0xff] }
 0x1f5   : > { %v3172_v59 = vpop.f32.mrb[8].mxu1 }
 0x1f6   : > { %v714_v60 = vadd.f32 %v3172_v59, %v3681_v58  ;;  %v705_v61 = vpop.f32.mrb[9].mxu1  ;;  %v2951_v59 = vcombine.high %v1017_v50, %v1021_v51 }
 0x1f7   : > { %v706_v62 = vadd.f32 %v3681_v58, %v705_v61  ;;  %v3173_v63 = vpop.f32.mrb[10].mxu1 }
 0x1f8   : > { %v717_v0 = vadd.f32 %v3173_v63, %v3681_v58  ;;  %v708_v1 = vpop.f32.mrb[11].mxu1  ;;  %v770_v3 = vmax.f32 %v714_v60, 0.0 }
 0x1f9   : > { %v709_v2 = vadd.f32 %v3681_v58, %v708_v1  ;;  %v768_v5 = vmax.f32 %v706_v62, 0.0 }
 0x1fa   : > { %v771_v4 = vmax.f32 %v717_v0, 0.0 }
 0x1fb   : > { %v769_v6 = vmax.f32 %v709_v2, 0.0 }
 0x1fc   : > { %v785_v9 = vpack.c.bf16 %v771_v4, %v770_v3  ;;  %v2950_v3 = vcombine.low %v1017_v50, %v1021_v51 }
 0x1fd   : > { %v784_v10 = vpack.c.bf16 %v769_v6, %v768_v5  ;;  %v3176_v11 = vpop.f32.mrb[12].mxu1 }
 0x1fe   : > { %v730_v12 = vadd.f32 %v3176_v11, %v3681_v58  ;;  %v721_v13 = vpop.f32.mrb[13].mxu1 }
 0x1ff   : > { %v722_v15 = vadd.f32 %v3681_v58, %v721_v13  ;;  %v3177_v16 = vpop.f32.mrb[14].mxu1  ;;  %3194 = vmatprep.mubr.msk.bf16.mxu0 %vm646_vm3, %v784_v10  ;;  %v1025_v10 = vld [vmem:[#allocation2 + $0x188] sm:$0xff] }
 0x200   : > { %v774_v19 = vmax.f32 %v730_v12, 0.0  ;;  %v733_v20 = vadd.f32 %v3177_v16, %v3681_v58  ;;  %v724_v21 = vpop.f32.mrb[15].mxu1  ;;  %3195 = vmatmul.mubr.msk.bf16.vlgmr.msra.gmra.mrb[8].mxu0 %vm646_vm3, %v785_v9  ;;  %v1028_v9 = vld [vmem:[#allocation2 + $0x1a0] sm:$0xff]  ;;  %v1029_v12 = vld [vmem:[#allocation2 + $0x1a8] sm:$0xff] }
 0x201   : > { %v772_v22 = vmax.f32 %v722_v15, 0.0  ;;  %v725_v23 = vadd.f32 %v3681_v58, %v724_v21  ;;  %1516 = vmatpush1.bf16.msra.mxu0 %v2910_v38  ;;  %v1009_v38 = vld [vmem:[#allocation2 + $0x108] sm:$0xff]  ;;  %v2957_v11 = vcombine.high %v1024_v8, %v1028_v9  ;;  %v2956_v13 = vcombine.low %v1024_v8, %v1028_v9  ;;  %v1032_v15 = vld [vmem:[#allocation2 + $0x1c0] sm:$0xff]  ;;  %v1002_v8 = vld [vmem:[#allocation2 + $0xd0] sm:$0xff] }
 0x202   : > { %v775_v25 = vmax.f32 %v733_v20, 0.0  ;;  %1517 = vmatprep.subr.bf16.mxu0 %v2919_v14  ;;  %v2943_v48 = vcombine.high %v1009_v38, %v1013_v40  ;;  %v2942_v55 = vcombine.low %v1009_v38, %v1013_v40  ;;  %v2958_v14 = vcombine.low %v1025_v10, %v1029_v12  ;;  %v1036_v16 = vld [vmem:[#allocation2 + $0x1e0] sm:$0xff] }
 0x203   : > { %v773_v27 = vmax.f32 %v725_v23, 0.0  ;;  %1414 = vmatprep.subr.bf16.mxu1 %v2957_v11  ;;  %v2965_v18 = vcombine.high %v1032_v15, %v1036_v16  ;;  %v2964_v20 = vcombine.low %v1032_v15, %v1036_v16  ;;  %v3447_v23 = vmov 0   ;;  %v1006_v11 = vld [vmem:[#allocation2 + $0xf0] sm:$0xff] }
 0x204   : > { %v787_v30 = vpack.c.bf16 %v775_v25, %v774_v19  ;;  %1415 = vmatpush1.bf16.msra.mxu1 %v2956_v13  ;;  %v1037_v19 = vld [vmem:[#allocation2 + $0x1e8] sm:$0xff]  ;;  %1434 = vmatprep.mubr.bf16.mxu1 %v3447_v23  ;;  %v982_v25 = vld [vmem:[#allocation2 + $0x30] sm:$0xff]  ;;  %v1007_v13 = vld [vmem:[#allocation2 + $0xf8] sm:$0xff] }
 0x205   : > { %v786_v31 = vpack.c.bf16 %v773_v27, %v772_v22  ;;  %v3180_v33 = vpop.f32.mrb[16].mxu1  ;;  %1518 = vmatpush1.bf16.msra.mxu0 %v2918_v24  ;;  %v2966_v21 = vcombine.low %v1033_v17, %v1037_v19  ;;  %v2967_v22 = vcombine.high %v1033_v17, %v1037_v19  ;;  %1416 = vmatprep.subr.bf16.mxu1 %v2965_v18  ;;  %v978_v24 = vld [vmem:[#allocation2 + $0x10] sm:$0xff] }
 0x206   : > { %v746_v36 = vadd.f32 %v3180_v33, %v3681_v58  ;;  %v737_v37 = vpop.f32.mrb[17].mxu1  ;;  %1519 = vmatprep.subr.bf16.mxu0 %v2927_v26  ;;  %v979_v26 = vld [vmem:[#allocation2 + $0x18] sm:$0xff]  ;;  %v2912_v27 = vcombine.low %v978_v24, %v982_v25  ;;  %v2913_v28 = vcombine.high %v978_v24, %v982_v25  ;;  %v3715_v33 = vld [vmem:[%s4251_s6] ss:$0 sm:$0xff] }
 0x207   : > { %3198 = vmatprep.mubr.msk.bf16.mxu0 %vm646_vm3, %v786_v31  ;;  %v738_v32 = vadd.f32 %v3681_v58, %v737_v37  ;;  %v3181_v35 = vpop.f32.mrb[18].mxu1  ;;  %v2915_v31 = vcombine.high %v979_v26, %v983_v29 }
 0x208   : > { %3199 = vmatmul.mubr.msk.bf16.gmra.mrb[12].mxu0 %vm646_vm3, %v787_v30  ;;  %v778_v41 = vmax.f32 %v746_v36, 0.0  ;;  %v749_v42 = vadd.f32 %v3181_v35, %v3681_v58  ;;  %v740_v43 = vpop.f32.mrb[19].mxu1  ;;  %1417 = vmatpush1.bf16.msra.mxu1 %v2964_v20  ;;  %v2914_v30 = vcombine.low %v979_v26, %v983_v29  ;;  %v2937_v20 = vcombine.high %v1002_v8, %v1006_v11  ;;  %v1014_v26 = vld [vmem:[#allocation2 + $0x130] sm:$0xff] }
 0x209   : > { %v776_v44 = vmax.f32 %v738_v32, 0.0  ;;  %v741_v45 = vadd.f32 %v3681_v58, %v740_v43  ;;  %1520 = vmatpush1.bf16.msra.mxu0 %v2926_v34  ;;  %1628 = vmatprep.subr.bf16.mxu1 %v2913_v28  ;;  %v986_v43 = vld [vmem:[#allocation2 + $0x50] sm:$0xff]  ;;  %v1015_v28 = vld [vmem:[#allocation2 + $0x138] sm:$0xff] }
 0x20a   : > { %v779_v47 = vmax.f32 %v749_v42, 0.0  ;;  %1521 = vmatprep.subr.bf16.mxu0 %v2935_v39 }
 0x20b   : > { %v777_v49 = vmax.f32 %v741_v45, 0.0 }
 0x20c   : > { %v789_v52 = vpack.c.bf16 %v779_v47, %v778_v41  ;;  %v987_v47 = vld [vmem:[#allocation2 + $0x58] sm:$0xff] }
 0x20d   : > { %v788_v53 = vpack.c.bf16 %v777_v49, %v776_v44  ;;  %v3184_v54 = vpop.f32.mrb[20].mxu1  ;;  %1522 = vmatpush1.bf16.msra.mxu0 %v2934_v46  ;;  %v990_v46 = vld [vmem:[#allocation2 + $0x70] sm:$0xff] }
 0x20e   : > { %v762_v56 = vadd.f32 %v3184_v54, %v3681_v58  ;;  %v753_v57 = vpop.f32.mrb[21].mxu1  ;;  %1523 = vmatprep.subr.bf16.mxu0 %v2943_v48  ;;  %v991_v48 = vld [vmem:[#allocation2 + $0x78] sm:$0xff] }
 0x20f   : > { %3202 = vmatprep.mubr.msk.bf16.mxu0 %vm646_vm3, %v788_v53  ;;  %v754_v60 = vadd.f32 %v3681_v58, %v753_v57  ;;  %v3185_v61 = vpop.f32.mrb[22].mxu1  ;;  %v998_v57 = vld [vmem:[#allocation2 + $0xb0] sm:$0xff] }
 0x210   : > { %3203 = vmatmul.mubr.msk.bf16.gmra.mrb[16].mxu0 %vm646_vm3, %v789_v52  ;;  %v782_v62 = vmax.f32 %v762_v56, 0.0  ;;  %v765_v63 = vadd.f32 %v3185_v61, %v3681_v58  ;;  %v756_v0 = vpop.f32.mrb[23].mxu1  ;;  %v994_v52 = vld [vmem:[#allocation2 + $0x90] sm:$0xff]  ;;  %v2923_v56 = vcombine.high %v987_v47, %v991_v48 }
 0x211   : > { %v780_v1 = vmax.f32 %v754_v60, 0.0  ;;  %v757_v2 = vadd.f32 %v3681_v58, %v756_v0  ;;  %1524 = vmatpush1.bf16.msra.mxu0 %v2942_v55  ;;  %v2959_v58 = vcombine.high %v1025_v10, %v1029_v12  ;;  %v2921_v55 = vcombine.high %v986_v43, %v990_v46  ;;  %v999_v60 = vld [vmem:[#allocation2 + $0xb8] sm:$0xff] }
 0x212   : > { %v783_v4 = vmax.f32 %v765_v63, 0.0  ;;  %1525 = vmatprep.subr.bf16.mxu0 %v2951_v59  ;;  %v995_v59 = vld [vmem:[#allocation2 + $0x98] sm:$0xff]  ;;  %v2928_v16 = vcombine.low %v994_v52, %v998_v57 }
 0x213   : > { %v781_v5 = vmax.f32 %v757_v2, 0.0  ;;  %v2922_v2 = vcombine.low %v987_v47, %v991_v48  ;;  %v1003_v12 = vld [vmem:[#allocation2 + $0xd8] sm:$0xff]  ;;  %v2930_v17 = vcombine.low %v995_v59, %v999_v60 }
 0x214   : > { %v791_v6 = vpack.c.bf16 %v783_v4, %v782_v62  ;;  %v2929_v4 = vcombine.high %v994_v52, %v998_v57 }
 0x215   : > { %v790_v7 = vpack.c.bf16 %v781_v5, %v780_v1  ;;  %1526 = vmatpush1.bf16.msra.mxu0 %v2950_v3  ;;  %v2920_v1 = vcombine.low %v986_v43, %v990_v46  ;;  %v2931_v5 = vcombine.high %v995_v59, %v999_v60  ;;  %v1019_v43 = vld [vmem:[#allocation2 + $0x158] sm:$0xff]  ;;  %v1030_v60 = vld [vmem:[#allocation2 + $0x1b0] sm:$0xff] }
 0x216   : > { %1527 = vmatprep.subr.bf16.mxu0 %v2959_v58 }
 0x217   : > { %3206 = vmatprep.mubr.msk.bf16.mxu0 %vm646_vm3, %v790_v7 }
 0x218   : > { %3207 = vmatmul.mubr.msk.bf16.gmra.mrb[20].mxu0 %vm646_vm3, %v791_v6 }
 0x219   : > { %1528 = vmatpush1.bf16.msra.mxu0 %v2958_v14  ;;  %1547 = vmatprep.mubr.bf16.mxu0 %v3447_v23 }
 0x21a   : > { %1529 = vmatprep.subr.bf16.mxu0 %v2967_v22  ;;  %v1010_v22 = vld [vmem:[#allocation2 + $0x110] sm:$0xff] }
 0x21b   : > { %v2944_v48 = vcombine.low %v1010_v22, %v1014_v26 }
 0x21d   : > { %1530 = vmatpush1.bf16.msra.mxu0 %v2966_v21  ;;  %v2939_v21 = vcombine.high %v1003_v12, %v1007_v13 }
 0x21e   : > { %1741 = vmatprep.subr.bf16.mxu0 %v2915_v31 }
 0x2d3   : > { %v3196_v34 = vpop.f32.mrb[8].mxu0 }
 0x2d4   : > { %v898_v36 = vadd.f32 %v3196_v34, %v3715_v33  ;;  %v889_v37 = vpop.f32.mrb[9].mxu0 }
 0x2d5   : > { %v890_v39 = vadd.f32 %v3715_v33, %v889_v37  ;;  %v3197_v32 = vpop.f32.mrb[10].mxu0  ;;  %v2936_v37 = vcombine.low %v1002_v8, %v1006_v11  ;;  %v1038_v11 = vld [vmem:[#allocation2 + $0x1f0] sm:$0xff] }
 0x2d6   : > { %v901_v35 = vadd.f32 %v3197_v32, %v3715_v33  ;;  %v892_v38 = vpop.f32.mrb[11].mxu0  ;;  %v954_v41 = vmax.f32 %v898_v36, 0.0 }
 0x2d7   : > { %v893_v40 = vadd.f32 %v3715_v33, %v892_v38  ;;  %v952_v44 = vmax.f32 %v890_v39, 0.0  ;;  %v2938_v39 = vcombine.low %v1003_v12, %v1007_v13  ;;  %v1035_v12 = vld [vmem:[#allocation2 + $0x1d8] sm:$0xff] }
 0x2d8   : > { %v955_v42 = vmax.f32 %v901_v35, 0.0  ;;  %v2945_v35 = vcombine.high %v1010_v22, %v1014_v26  ;;  %v1039_v13 = vld [vmem:[#allocation2 + $0x1f8] sm:$0xff]  ;;  %v3812_v22 = vld [vmem:[%s4253_s8] sm:$0xff] }
 0x2d9   : > { %v953_v45 = vmax.f32 %v893_v40, 0.0  ;;  %v1018_v40 = vld [vmem:[#allocation2 + $0x150] sm:$0xff] }
 0x2da   : > { %v3721_v49 = vpack.c.bf16 %v955_v42, %v954_v41  ;;  %v1022_v42 = vld [vmem:[#allocation2 + $0x170] sm:$0xff] }
 0x2db   : > { %v3723_v50 = vpack.c.bf16 %v953_v45, %v952_v44  ;;  %v3200_v51 = vpop.f32.mrb[12].mxu0  ;;  %v1023_v44 = vld [vmem:[#allocation2 + $0x178] sm:$0xff] }
 0x2dc   : > { %v914_v53 = vadd.f32 %v3200_v51, %v3715_v33  ;;  %v905_v54 = vpop.f32.mrb[13].mxu0 }
 0x2dd   : > { %v906_v61 = vadd.f32 %v3715_v33, %v905_v54  ;;  %v3201_v62 = vpop.f32.mrb[14].mxu0  ;;  %1435 = vmatmul.mubr.bf16.vlgmr.msra.gmra.mrb[24].mxu1 %v3723_v50  ;;  %1548 = vmatmul.mubr.bf16.vlgmr.msra.gmra.mrb[24].mxu0 %v3723_v50  ;;  %v2953_v54 = vcombine.high %v1018_v40, %v1022_v42 }
 0x2de   : > { %v917_v63 = vadd.f32 %v3201_v62, %v3715_v33  ;;  %1629 = vmatpush1.bf16.msra.mxu1 %v2912_v27  ;;  %1742 = vmatpush1.bf16.msra.mxu0 %v2914_v30  ;;  %v908_v0 = vpop.f32.mrb[15].mxu0  ;;  %v958_v6 = vmax.f32 %v914_v53, 0.0  ;;  %v1011_v27 = vld [vmem:[#allocation2 + $0x118] sm:$0xff] }
 0x2df   : > { %v909_v3 = vadd.f32 %v3715_v33, %v908_v0  ;;  %1444 = vmatprep.mubr.bf16.mxu1 %v3447_v23  ;;  %1557 = vmatprep.mubr.bf16.mxu0 %v3447_v23  ;;  %v956_v9 = vmax.f32 %v906_v61, 0.0  ;;  %v2947_v38 = vcombine.high %v1011_v27, %v1015_v28  ;;  %v2946_v51 = vcombine.low %v1011_v27, %v1015_v28  ;;  %v1027_v61 = vld [vmem:[#allocation2 + $0x198] sm:$0xff] }
 0x2e0   : > { %v959_v7 = vmax.f32 %v917_v63, 0.0  ;;  %1630 = vmatprep.subr.bf16.mxu1 %v2921_v55  ;;  %1743 = vmatprep.subr.bf16.mxu0 %v2923_v56  ;;  %v2955_v55 = vcombine.high %v1019_v43, %v1023_v44  ;;  %v1026_v56 = vld [vmem:[#allocation2 + $0x190] sm:$0xff]  ;;  %v1031_v62 = vld [vmem:[#allocation2 + $0x1b8] sm:$0xff] }
 0x2e1   : > { %v957_v10 = vmax.f32 %v909_v3, 0.0  ;;  %v2963_v8 = vcombine.high %v1027_v61, %v1031_v62 }
 0x2e2   : > { %v3733_v14 = vpack.c.bf16 %v959_v7, %v958_v6  ;;  %1631 = vmatpush1.bf16.msra.mxu1 %v2920_v1  ;;  %1744 = vmatpush1.bf16.msra.mxu0 %v2922_v2  ;;  %v2961_v7 = vcombine.high %v1026_v56, %v1030_v60 }
 0x2e3   : > { %v3735_v58 = vpack.c.bf16 %v957_v10, %v956_v9  ;;  %v3204_v15 = vpop.f32.mrb[16].mxu0  ;;  %1632 = vmatprep.subr.bf16.mxu1 %v2929_v4  ;;  %1745 = vmatprep.subr.bf16.mxu0 %v2931_v5  ;;  %v2952_v4 = vcombine.low %v1018_v40, %v1022_v42  ;;  %v2954_v5 = vcombine.low %v1019_v43, %v1023_v44  ;;  %v1034_v9 = vld [vmem:[#allocation2 + $0x1d0] sm:$0xff] }
 0x2e4   : > { %v930_v18 = vadd.f32 %v3204_v15, %v3715_v33  ;;  %v921_v19 = vpop.f32.mrb[17].mxu0 }
 0x2e5   : > { %1445 = vmatmul.mubr.bf16.gmra.mrb[28].mxu1 %v3721_v49  ;;  %1558 = vmatmul.mubr.bf16.gmra.mrb[28].mxu0 %v3721_v49  ;;  %v922_v24 = vadd.f32 %v3715_v33, %v921_v19  ;;  %v3205_v25 = vpop.f32.mrb[18].mxu0  ;;  %v2971_v19 = vcombine.high %v1035_v12, %v1039_v13 }
 0x2e6   : > { %v962_v29 = vmax.f32 %v930_v18, 0.0  ;;  %v933_v30 = vadd.f32 %v3205_v25, %v3715_v33  ;;  %v924_v31 = vpop.f32.mrb[19].mxu0  ;;  %1454 = vmatprep.mubr.bf16.mxu1 %v3447_v23  ;;  %1567 = vmatprep.mubr.bf16.mxu0 %v3447_v23  ;;  %v2969_v18 = vcombine.high %v1034_v9, %v1038_v11 }
 0x2e7   : > { %v960_v34 = vmax.f32 %v922_v24, 0.0  ;;  %v925_v36 = vadd.f32 %v3715_v33, %v924_v31  ;;  %1633 = vmatpush1.bf16.msra.mxu1 %v2928_v16  ;;  %1746 = vmatpush1.bf16.msra.mxu0 %v2930_v17  ;;  %v2962_v17 = vcombine.low %v1027_v61, %v1031_v62 }
 0x2e8   : > { %v963_v32 = vmax.f32 %v933_v30, 0.0  ;;  %1634 = vmatprep.subr.bf16.mxu1 %v2937_v20  ;;  %1747 = vmatprep.subr.bf16.mxu0 %v2939_v21  ;;  %v2968_v20 = vcombine.low %v1034_v9, %v1038_v11  ;;  %v2970_v21 = vcombine.low %v1035_v12, %v1039_v13 }
 0x2e9   : > { %v961_v41 = vmax.f32 %v925_v36, 0.0 }
 0x2ea   : > { %v3745_v45 = vpack.c.bf16 %v963_v32, %v962_v29 }
 0x2eb   : > { %v3747_v46 = vpack.c.bf16 %v961_v41, %v960_v34  ;;  %1635 = vmatpush1.bf16.msra.mxu1 %v2936_v37  ;;  %1748 = vmatpush1.bf16.msra.mxu0 %v2938_v39  ;;  %v3208_v47 = vpop.f32.mrb[20].mxu0 }
 0x2ec   : > { %v946_v52 = vadd.f32 %v3208_v47, %v3715_v33  ;;  %v937_v53 = vpop.f32.mrb[21].mxu0  ;;  %1636 = vmatprep.subr.bf16.mxu1 %v2945_v35  ;;  %1749 = vmatprep.subr.bf16.mxu0 %v2947_v38 }
 0x2ed   : > { %1455 = vmatmul.mubr.bf16.gmra.mrb[32].mxu1 %v3735_v58  ;;  %1568 = vmatmul.mubr.bf16.gmra.mrb[32].mxu0 %v3735_v58  ;;  %v938_v57 = vadd.f32 %v3715_v33, %v937_v53  ;;  %v3209_v59 = vpop.f32.mrb[22].mxu0 }
 0x2ee   : > { %1464 = vmatprep.mubr.bf16.mxu1 %v3447_v23  ;;  %1577 = vmatprep.mubr.bf16.mxu0 %v3447_v23  ;;  %v966_v63 = vmax.f32 %v946_v52, 0.0  ;;  %v949_v0 = vadd.f32 %v3209_v59, %v3715_v33  ;;  %v940_v1 = vpop.f32.mrb[23].mxu0 }
 0x2ef   : > { %v964_v2 = vmax.f32 %v938_v57, 0.0  ;;  %v941_v3 = vadd.f32 %v3715_v33, %v940_v1  ;;  %1637 = vmatpush1.bf16.msra.mxu1 %v2944_v48  ;;  %1750 = vmatpush1.bf16.msra.mxu0 %v2946_v51  ;;  %v2960_v33 = vcombine.low %v1026_v56, %v1030_v60 }
 0x2f0   : > { %v967_v6 = vmax.f32 %v949_v0, 0.0  ;;  %1638 = vmatprep.subr.bf16.mxu1 %v2953_v54  ;;  %1751 = vmatprep.subr.bf16.mxu0 %v2955_v55 }
 0x2f1   : > { %v965_v10 = vmax.f32 %v941_v3, 0.0 }
 0x2f2   : > { %v3757_v15 = vpack.c.bf16 %v967_v6, %v966_v63 }
 0x2f3   : > { %v974_v16 = vpack.c.bf16 %v965_v10, %v964_v2  ;;  %1639 = vmatpush1.bf16.msra.mxu1 %v2952_v4  ;;  %1752 = vmatpush1.bf16.msra.mxu0 %v2954_v5 }
 0x2f4   : > { %1640 = vmatprep.subr.bf16.mxu1 %v2961_v7  ;;  %1753 = vmatprep.subr.bf16.mxu0 %v2963_v8 }
 0x2f5   : > { %1465 = vmatmul.mubr.bf16.gmra.mrb[36].mxu1 %v3733_v14  ;;  %1578 = vmatmul.mubr.bf16.gmra.mrb[36].mxu0 %v3733_v14 }
 0x2f6   : > { %1474 = vmatprep.mubr.bf16.mxu1 %v3447_v23  ;;  %1587 = vmatprep.mubr.bf16.mxu0 %v3447_v23 }
 0x2f7   : > { %1641 = vmatpush1.bf16.msra.mxu1 %v2960_v33  ;;  %1754 = vmatpush1.bf16.msra.mxu0 %v2962_v17 }
 0x2f8   : > { %1642 = vmatprep.subr.bf16.mxu1 %v2969_v18  ;;  %1755 = vmatprep.subr.bf16.mxu0 %v2971_v19 }
 0x2fb   : > { %1643 = vmatpush1.bf16.msra.mxu1 %v2968_v20  ;;  %1756 = vmatpush1.bf16.msra.mxu0 %v2970_v21 }
 0x2fd   : > { %1475 = vmatmul.mubr.bf16.gmra.mrb[40].mxu1 %v3747_v46  ;;  %1588 = vmatmul.mubr.bf16.gmra.mrb[40].mxu0 %v3747_v46 }
 0x2fe   : > { %1484 = vmatprep.mubr.bf16.mxu1 %v3447_v23  ;;  %1597 = vmatprep.mubr.bf16.mxu0 %v3447_v23 }
 0x305   : > { %1485 = vmatmul.mubr.bf16.gmra.mrb[44].mxu1 %v3745_v45  ;;  %1598 = vmatmul.mubr.bf16.gmra.mrb[44].mxu0 %v3745_v45 }
 0x306   : > { %1494 = vmatprep.mubr.bf16.mxu1 %v3447_v23  ;;  %1607 = vmatprep.mubr.bf16.mxu0 %v3447_v23 }
 0x30d   : > { %1495 = vmatmul.mubr.bf16.gmra.mrb[48].mxu1 %v974_v16  ;;  %1608 = vmatmul.mubr.bf16.gmra.mrb[48].mxu0 %v974_v16 }
 0x30e   : > { %1504 = vmatprep.mubr.bf16.mxu1 %v3447_v23  ;;  %1617 = vmatprep.mubr.bf16.mxu0 %v3447_v23 }
 0x315   : > { %1505 = vmatmul.mubr.bf16.gmra.mrb[52].mxu1 %v3757_v15  ;;  %1618 = vmatmul.mubr.bf16.gmra.mrb[52].mxu0 %v3757_v15 }
 0x316   : > { %1660 = vmatprep.mubr.bf16.mxu1 %v3447_v23  ;;  %1773 = vmatprep.mubr.bf16.mxu0 %v3447_v23 }
 0x31d   : > { %1661 = vmatmul.mubr.bf16.vlgmr.msra.gmra.mrb[56].mxu1 %v3723_v50  ;;  %1774 = vmatmul.mubr.bf16.vlgmr.msra.gmra.mrb[56].mxu0 %v3723_v50 }
 0x31e   : > { %1670 = vmatprep.mubr.bf16.mxu1 %v3447_v23  ;;  %1783 = vmatprep.mubr.bf16.mxu0 %v3447_v23 }
 0x325   : > { %1671 = vmatmul.mubr.bf16.gmra.mrb[60].mxu1 %v3721_v49  ;;  %1784 = vmatmul.mubr.bf16.gmra.mrb[60].mxu0 %v3721_v49  ;;  %v1042_v49 = vlaneseq }
 0x326   : > { %1680 = vmatprep.mubr.bf16.mxu1 %v3447_v23  ;;  %1793 = vmatprep.mubr.bf16.mxu0 %v3447_v23 }
 0x327   : > { %v3805_v50 = vshrl.u32 %v1042_v49, 7 }
 0x329   : > { %v1048_v24 = vsub.s32 1, %v3805_v50 }
 0x32b   : > { %v3823_v27 = vrot.slane %v3812_v22, %v1048_v24 }
 0x32d   : > { %1681 = vmatmul.mubr.bf16.gmra.mrb[64].mxu1 %v3735_v58  ;;  %1794 = vmatmul.mubr.bf16.gmra.mrb[64].mxu0 %v3735_v58  ;;  %v1052_v58 = vsub.s32 2, %v3805_v50 }
 0x32e   : > { %1690 = vmatprep.mubr.bf16.mxu1 %v3447_v23  ;;  %1803 = vmatprep.mubr.bf16.mxu0 %v3447_v23 }
 0x32f   : > { %v3820_v26 = vrot.slane %v3812_v22, %v1052_v58 }
 0x335   : > { %1691 = vmatmul.mubr.bf16.gmra.mrb[68].mxu1 %v3733_v14  ;;  %1804 = vmatmul.mubr.bf16.gmra.mrb[68].mxu0 %v3733_v14  ;;  %v1044_v14 = vsub.s32 0, %v3805_v50 }
 0x336   : > { %1700 = vmatprep.mubr.bf16.mxu1 %v3447_v23  ;;  %1813 = vmatprep.mubr.bf16.mxu0 %v3447_v23 }
 0x337   : > { %v3817_v25 = vrot.slane %v3812_v22, %v1044_v14 }
 0x33d   : > { %1701 = vmatmul.mubr.bf16.gmra.mrb[72].mxu1 %v3747_v46  ;;  %1814 = vmatmul.mubr.bf16.gmra.mrb[72].mxu0 %v3747_v46 }
 0x33e   : > { %1710 = vmatprep.mubr.bf16.mxu1 %v3447_v23  ;;  %1823 = vmatprep.mubr.bf16.mxu0 %v3447_v23 }
 0x345   : > { %1711 = vmatmul.mubr.bf16.gmra.mrb[76].mxu1 %v3745_v45  ;;  %1824 = vmatmul.mubr.bf16.gmra.mrb[76].mxu0 %v3745_v45 }
 0x346   : > { %1720 = vmatprep.mubr.bf16.mxu1 %v3447_v23  ;;  %1833 = vmatprep.mubr.bf16.mxu0 %v3447_v23 }
 0x34d   : > { %1721 = vmatmul.mubr.bf16.gmra.mrb[80].mxu1 %v974_v16  ;;  %1834 = vmatmul.mubr.bf16.gmra.mrb[80].mxu0 %v974_v16 }
 0x34e   : > { %1730 = vmatprep.mubr.bf16.mxu1 %v3447_v23  ;;  %1843 = vmatprep.mubr.bf16.mxu0 %v3447_v23  ;;  %v1056_v23 = vsub.s32 3, %v3805_v50 }
 0x350   : > { %v3826_v28 = vrot.slane %v3812_v22, %v1056_v23 }
 0x355   : > { %1731 = vmatmul.mubr.bf16.gmra.mrb[84].mxu1 %v3757_v15  ;;  %1844 = vmatmul.mubr.bf16.gmra.mrb[84].mxu0 %v3757_v15 }
 0x3b0   : > { %v1436_v29 = vpop.f32.mrb[24].mxu1  ;;  %v1549_v30 = vpop.f32.mrb[24].mxu0 }
 0x3b1   : > { %v1437_v31 = vadd.f32 %v1436_v29, %v3817_v25  ;;  %v1550_v34 = vadd.f32 %v1549_v30, %v3820_v26  ;;  %v1438_v36 = vpop.f32.mrb[25].mxu1  ;;  %v1551_v37 = vpop.f32.mrb[25].mxu0 }
 0x3b2   : > { %v1439_v39 = vadd.f32 %v1438_v36, %v3823_v27  ;;  %v1552_v32 = vadd.f32 %v1551_v37, %v3826_v28  ;;  %v1440_v35 = vpop.f32.mrb[26].mxu1  ;;  %v1553_v38 = vpop.f32.mrb[26].mxu0 }
 0x3b3   : > { %v1854_v40 = vmax.f32 %v1437_v31, 0.0  ;;  %v1856_v41 = vmax.f32 %v1550_v34, 0.0  ;;  %v1441_v42 = vadd.f32 %v1440_v35, %v3817_v25  ;;  %v1554_v43 = vadd.f32 %v1553_v38, %v3820_v26  ;;  %v1442_v44 = vpop.f32.mrb[27].mxu1  ;;  %v1555_v45 = vpop.f32.mrb[27].mxu0 }
 0x3b4   : > { %v1855_v46 = vmax.f32 %v1439_v39, 0.0  ;;  %v1857_v47 = vmax.f32 %v1552_v32, 0.0  ;;  %v1443_v48 = vadd.f32 %v1442_v44, %v3823_v27  ;;  %v1556_v51 = vadd.f32 %v1555_v45, %v3826_v28 }
 0x3b5   : > { %v1862_v52 = vmax.f32 %v1441_v42, 0.0  ;;  %v1864_v53 = vmax.f32 %v1554_v43, 0.0 }
 0x3b6   : > { %v3045_v54 = vpack.c.bf16 %v1855_v46, %v1854_v40  ;;  %v3046_v55 = vpack.c.bf16 %v1857_v47, %v1856_v41  ;;  %v1863_v56 = vmax.f32 %v1443_v48, 0.0  ;;  %v1865_v57 = vmax.f32 %v1556_v51, 0.0 }
 0x3b7   : > { %v3840_v59 = vpack.c.bf16 %v1862_v52, %v1854_v40  ;;  %v3842_v60 = vpack.c.bf16 %v1864_v53, %v1856_v41 }
 0x3b8   : > { %2366 = vst [vmem:[%s3844_s20] sm:$0xff] %v3045_v54  ;;  %2367 = vst [vmem:[%s3844_s20 + $0x8] sm:$0xff] %v3046_v55  ;;  %v3848_v61 = vpack.c.bf16 %v1863_v56, %v1855_v46  ;;  %v3049_v62 = vpack.c.bf16 %v1863_v56, %v1862_v52  ;;  %v3850_v63 = vpack.c.bf16 %v1865_v57, %v1857_v47  ;;  %v1446_v1 = vpop.f32.mrb[28].mxu1  ;;  %v1559_v2 = vpop.f32.mrb[28].mxu0 }
 0x3b9   : > { %v3050_v0 = vpack.c.bf16 %v1865_v57, %v1864_v53  ;;  %v1447_v3 = vadd.f32 %v1446_v1, %v3817_v25  ;;  %v1560_v4 = vadd.f32 %v1559_v2, %v3820_v26  ;;  %v1448_v5 = vpop.f32.mrb[29].mxu1  ;;  %v1561_v6 = vpop.f32.mrb[29].mxu0 }
 0x3ba   : > { %2370 = vst [vmem:[%s3844_s20 + $0x20] sm:$0xff] %v3049_v62  ;;  %v1449_v7 = vadd.f32 %v1448_v5, %v3823_v27  ;;  %v1562_v8 = vadd.f32 %v1561_v6, %v3826_v28  ;;  %v1450_v9 = vpop.f32.mrb[30].mxu1  ;;  %v1563_v10 = vpop.f32.mrb[30].mxu0 }
 0x3bb   : > { %2371 = vst [vmem:[%s3844_s20 + $0x28] sm:$0xff] %v3050_v0  ;;  %v1870_v11 = vmax.f32 %v1447_v3, 0.0  ;;  %v1872_v12 = vmax.f32 %v1560_v4, 0.0  ;;  %v1451_v13 = vadd.f32 %v1450_v9, %v3817_v25  ;;  %v1564_v15 = vadd.f32 %v1563_v10, %v3820_v26  ;;  %v1452_v16 = vpop.f32.mrb[31].mxu1  ;;  %v1565_v33 = vpop.f32.mrb[31].mxu0 }
 0x3bc   : > { %v1871_v17 = vmax.f32 %v1449_v7, 0.0  ;;  %v1873_v18 = vmax.f32 %v1562_v8, 0.0  ;;  %v1453_v19 = vadd.f32 %v1452_v16, %v3823_v27  ;;  %v1566_v20 = vadd.f32 %v1565_v33, %v3826_v28 }
 0x3bd   : > { %v1878_v21 = vmax.f32 %v1451_v13, 0.0  ;;  %v1880_v49 = vmax.f32 %v1564_v15, 0.0 }
 0x3be   : > { %v3053_v14 = vpack.c.bf16 %v1871_v17, %v1870_v11  ;;  %v3054_v58 = vpack.c.bf16 %v1873_v18, %v1872_v12  ;;  %v1879_v24 = vmax.f32 %v1453_v19, 0.0  ;;  %v1881_v23 = vmax.f32 %v1566_v20, 0.0 }
 0x3bf   : > { %v1990_v29 = vpack.c.bf16 %v1878_v21, %v1870_v11  ;;  %v1992_v30 = vpack.c.bf16 %v1880_v49, %v1872_v12 }
 0x3c0   : > { %2374 = vst [vmem:[%s3844_s20 + $0x40] sm:$0xff] %v3053_v14  ;;  %2375 = vst [vmem:[%s3844_s20 + $0x48] sm:$0xff] %v3054_v58  ;;  %v1991_v31 = vpack.c.bf16 %v1879_v24, %v1871_v17  ;;  %v3057_v34 = vpack.c.bf16 %v1879_v24, %v1878_v21  ;;  %v1993_v36 = vpack.c.bf16 %v1881_v23, %v1873_v18  ;;  %v1456_v39 = vpop.f32.mrb[32].mxu1  ;;  %v1569_v32 = vpop.f32.mrb[32].mxu0 }
 0x3c1   : > { %v3058_v37 = vpack.c.bf16 %v1881_v23, %v1880_v49  ;;  %v2430_v35 = vmax.bf16 %v1990_v29, %v3840_v59  ;;  %v2464_v38 = vmax.bf16 %v1992_v30, %v3842_v60  ;;  %v1457_v40 = vadd.f32 %v1456_v39, %v3817_v25  ;;  %v1458_v42 = vpop.f32.mrb[33].mxu1  ;;  %v1571_v43 = vpop.f32.mrb[33].mxu0 }
 0x3c2   : > { %v1570_v41 = vadd.f32 %v1569_v32, %v3820_v26  ;;  %2378 = vst [vmem:[%s3844_s20 + $0x60] sm:$0xff] %v3057_v34  ;;  %v2447_v44 = vmax.bf16 %v1991_v31, %v3848_v61  ;;  %v2481_v45 = vmax.bf16 %v1993_v36, %v3850_v63  ;;  %v1459_v46 = vadd.f32 %v1458_v42, %v3823_v27  ;;  %v1460_v48 = vpop.f32.mrb[34].mxu1  ;;  %v1573_v51 = vpop.f32.mrb[34].mxu0 }
 0x3c3   : > { %2379 = vst [vmem:[%s3844_s20 + $0x68] sm:$0xff] %v3058_v37  ;;  %v1572_v47 = vadd.f32 %v1571_v43, %v3826_v28  ;;  %v1886_v52 = vmax.f32 %v1457_v40, 0.0  ;;  %v1461_v54 = vadd.f32 %v1460_v48, %v3817_v25  ;;  %v1574_v55 = vadd.f32 %v1573_v51, %v3820_v26  ;;  %v1462_v56 = vpop.f32.mrb[35].mxu1  ;;  %v1575_v57 = vpop.f32.mrb[35].mxu0 }
 0x3c4   : > { %v1888_v53 = vmax.f32 %v1570_v41, 0.0  ;;  %v1887_v59 = vmax.f32 %v1459_v46, 0.0  ;;  %v1463_v61 = vadd.f32 %v1462_v56, %v3823_v27  ;;  %v1576_v62 = vadd.f32 %v1575_v57, %v3826_v28 }
 0x3c5   : > { %v1889_v60 = vmax.f32 %v1572_v47, 0.0  ;;  %v1894_v63 = vmax.f32 %v1461_v54, 0.0  ;;  %v1896_v0 = vmax.f32 %v1574_v55, 0.0 }
 0x3c6   : > { %v3061_v1 = vpack.c.bf16 %v1887_v59, %v1886_v52  ;;  %v1895_v3 = vmax.f32 %v1463_v61, 0.0  ;;  %v1897_v4 = vmax.f32 %v1576_v62, 0.0 }
 0x3c7   : > { %v3062_v2 = vpack.c.bf16 %v1889_v60, %v1888_v53  ;;  %v1998_v5 = vpack.c.bf16 %v1894_v63, %v1886_v52  ;;  %v2000_v6 = vpack.c.bf16 %v1896_v0, %v1888_v53 }
 0x3c8   : > { %2382 = vst [vmem:[%s3844_s20 + $0x80] sm:$0xff] %v3061_v1  ;;  %v1999_v7 = vpack.c.bf16 %v1895_v3, %v1887_v59  ;;  %v3065_v8 = vpack.c.bf16 %v1895_v3, %v1894_v63  ;;  %v2001_v9 = vpack.c.bf16 %v1897_v4, %v1889_v60  ;;  %v3066_v10 = vpack.c.bf16 %v1897_v4, %v1896_v0  ;;  %v1466_v11 = vpop.f32.mrb[36].mxu1  ;;  %v1579_v12 = vpop.f32.mrb[36].mxu0 }
 0x3c9   : > { %2383 = vst [vmem:[%s3844_s20 + $0x88] sm:$0xff] %v3062_v2  ;;  %v3880_v13 = vmax.bf16 %v2430_v35, %v1998_v5  ;;  %v3882_v15 = vmax.bf16 %v2464_v38, %v2000_v6  ;;  %v1467_v16 = vadd.f32 %v1466_v11, %v3817_v25  ;;  %v1580_v33 = vadd.f32 %v1579_v12, %v3820_v26  ;;  %v1468_v17 = vpop.f32.mrb[37].mxu1  ;;  %v1581_v18 = vpop.f32.mrb[37].mxu0 }
 0x3ca   : > { %2386 = vst [vmem:[%s3844_s20 + $0xa0] sm:$0xff] %v3065_v8  ;;  %v3887_v19 = vmax.bf16 %v2447_v44, %v1999_v7  ;;  %2387 = vst [vmem:[%s3844_s20 + $0xa8] sm:$0xff] %v3066_v10  ;;  %v3890_v20 = vmax.bf16 %v2481_v45, %v2001_v9  ;;  %v1469_v21 = vadd.f32 %v1468_v17, %v3823_v27  ;;  %v1470_v14 = vpop.f32.mrb[38].mxu1  ;;  %v1583_v58 = vpop.f32.mrb[38].mxu0 }
 0x3cb   : > { %v1582_v49 = vadd.f32 %v1581_v18, %v3826_v28  ;;  %v1902_v24 = vmax.f32 %v1467_v16, 0.0  ;;  %v1904_v23 = vmax.f32 %v1580_v33, 0.0  ;;  %v1471_v29 = vadd.f32 %v1470_v14, %v3817_v25  ;;  %v1472_v31 = vpop.f32.mrb[39].mxu1  ;;  %v1585_v34 = vpop.f32.mrb[39].mxu0 }
 0x3cc   : > { %v1584_v30 = vadd.f32 %v1583_v58, %v3820_v26  ;;  %v1903_v36 = vmax.f32 %v1469_v21, 0.0  ;;  %v1473_v39 = vadd.f32 %v1472_v31, %v3823_v27  ;;  %v1586_v32 = vadd.f32 %v1585_v34, %v3826_v28 }
 0x3cd   : > { %v1905_v37 = vmax.f32 %v1582_v49, 0.0  ;;  %v1910_v35 = vmax.f32 %v1471_v29, 0.0  ;;  %v1060_v21 = vsub.s32 4, %v3805_v50 }
 0x3ce   : > { %v1912_v38 = vmax.f32 %v1584_v30, 0.0  ;;  %v3069_v40 = vpack.c.bf16 %v1903_v36, %v1902_v24  ;;  %v1911_v42 = vmax.f32 %v1473_v39, 0.0  ;;  %v1913_v43 = vmax.f32 %v1586_v32, 0.0 }
 0x3cf   : > { %v3070_v41 = vpack.c.bf16 %v1905_v37, %v1904_v23  ;;  %v2006_v44 = vpack.c.bf16 %v1910_v35, %v1902_v24 }
 0x3d0   : > { %v2008_v45 = vpack.c.bf16 %v1912_v38, %v1904_v23  ;;  %2390 = vst [vmem:[%s3844_s20 + $0xc0] sm:$0xff] %v3069_v40  ;;  %v2007_v46 = vpack.c.bf16 %v1911_v42, %v1903_v36  ;;  %v3073_v47 = vpack.c.bf16 %v1911_v42, %v1910_v35  ;;  %v2009_v48 = vpack.c.bf16 %v1913_v43, %v1905_v37  ;;  %v1476_v52 = vpop.f32.mrb[40].mxu1  ;;  %v1589_v53 = vpop.f32.mrb[40].mxu0 }
 0x3d1   : > { %2391 = vst [vmem:[%s3844_s20 + $0xc8] sm:$0xff] %v3070_v41  ;;  %v3074_v51 = vpack.c.bf16 %v1913_v43, %v1912_v38  ;;  %v2432_v54 = vmax.bf16 %v3880_v13, %v2006_v44  ;;  %v1477_v56 = vadd.f32 %v1476_v52, %v3817_v25  ;;  %v1590_v57 = vadd.f32 %v1589_v53, %v3820_v26  ;;  %v1478_v59 = vpop.f32.mrb[41].mxu1  ;;  %v1591_v60 = vpop.f32.mrb[41].mxu0 }
 0x3d2   : > { %v2466_v55 = vmax.bf16 %v3882_v15, %v2008_v45  ;;  %2394 = vst [vmem:[%s3844_s20 + $0xe0] sm:$0xff] %v3073_v47  ;;  %v2449_v61 = vmax.bf16 %v3887_v19, %v2007_v46  ;;  %v2483_v62 = vmax.bf16 %v3890_v20, %v2009_v48  ;;  %v1479_v63 = vadd.f32 %v1478_v59, %v3823_v27  ;;  %v1480_v1 = vpop.f32.mrb[42].mxu1  ;;  %v1593_v2 = vpop.f32.mrb[42].mxu0 }
 0x3d3   : > { %2395 = vst [vmem:[%s3844_s20 + $0xe8] sm:$0xff] %v3074_v51  ;;  %v1592_v0 = vadd.f32 %v1591_v60, %v3826_v28  ;;  %v1918_v3 = vmax.f32 %v1477_v56, 0.0  ;;  %v1920_v4 = vmax.f32 %v1590_v57, 0.0  ;;  %v1481_v5 = vadd.f32 %v1480_v1, %v3817_v25  ;;  %v1482_v7 = vpop.f32.mrb[43].mxu1  ;;  %v1595_v8 = vpop.f32.mrb[43].mxu0 }
 0x3d4   : > { %v1594_v6 = vadd.f32 %v1593_v2, %v3820_v26  ;;  %v1919_v9 = vmax.f32 %v1479_v63, 0.0  ;;  %v1483_v11 = vadd.f32 %v1482_v7, %v3823_v27  ;;  %v1596_v12 = vadd.f32 %v1595_v8, %v3826_v28 }
 0x3d5   : > { %v1921_v10 = vmax.f32 %v1592_v0, 0.0  ;;  %v1926_v13 = vmax.f32 %v1481_v5, 0.0  ;;  %v3936_v57 = vrot.slane %v3812_v22, %v1060_v21  ;;  %v1068_v1 = vsub.s32 6, %v3805_v50 }
 0x3d6   : > { %v1928_v15 = vmax.f32 %v1594_v6, 0.0  ;;  %v3077_v16 = vpack.c.bf16 %v1919_v9, %v1918_v3  ;;  %v1927_v17 = vmax.f32 %v1483_v11, 0.0  ;;  %v1929_v18 = vmax.f32 %v1596_v12, 0.0 }
 0x3d7   : > { %v3078_v33 = vpack.c.bf16 %v1921_v10, %v1920_v4  ;;  %v2014_v19 = vpack.c.bf16 %v1926_v13, %v1918_v3  ;;  %v3448_v2 = vmov 1966171168  }
 0x3d8   : > { %v2016_v20 = vpack.c.bf16 %v1928_v15, %v1920_v4  ;;  %2398 = vst [vmem:[%s3844_s20 + $0x100] sm:$0xff] %v3077_v16  ;;  %v2015_v49 = vpack.c.bf16 %v1927_v17, %v1919_v9  ;;  %v3081_v14 = vpack.c.bf16 %v1927_v17, %v1926_v13  ;;  %v2017_v58 = vpack.c.bf16 %v1929_v18, %v1921_v10  ;;  %v1486_v23 = vpop.f32.mrb[44].mxu1  ;;  %v1599_v29 = vpop.f32.mrb[44].mxu0 }
 0x3d9   : > { %2399 = vst [vmem:[%s3844_s20 + $0x108] sm:$0xff] %v3078_v33  ;;  %v3082_v24 = vpack.c.bf16 %v1929_v18, %v1928_v15  ;;  %v3917_v30 = vmax.bf16 %v2432_v54, %v2014_v19  ;;  %v1487_v34 = vadd.f32 %v1486_v23, %v3817_v25  ;;  %v1600_v36 = vadd.f32 %v1599_v29, %v3820_v26  ;;  %v1488_v37 = vpop.f32.mrb[45].mxu1  ;;  %v1601_v39 = vpop.f32.mrb[45].mxu0 }
 0x3da   : > { %v3919_v31 = vmax.bf16 %v2466_v55, %v2016_v20  ;;  %2402 = vst [vmem:[%s3844_s20 + $0x120] sm:$0xff] %v3081_v14  ;;  %v3924_v32 = vmax.bf16 %v2449_v61, %v2015_v49  ;;  %v3927_v35 = vmax.bf16 %v2483_v62, %v2017_v58  ;;  %v1489_v38 = vadd.f32 %v1488_v37, %v3823_v27  ;;  %v1490_v41 = vpop.f32.mrb[46].mxu1  ;;  %v1603_v42 = vpop.f32.mrb[46].mxu0 }
 0x3db   : > { %2403 = vst [vmem:[%s3844_s20 + $0x128] sm:$0xff] %v3082_v24  ;;  %v1602_v40 = vadd.f32 %v1601_v39, %v3826_v28  ;;  %v1934_v43 = vmax.f32 %v1487_v34, 0.0  ;;  %v1936_v44 = vmax.f32 %v1600_v36, 0.0  ;;  %v1491_v45 = vadd.f32 %v1490_v41, %v3817_v25  ;;  %v1492_v47 = vpop.f32.mrb[47].mxu1  ;;  %v1605_v48 = vpop.f32.mrb[47].mxu0 }
 0x3dc   : > { %v1604_v46 = vadd.f32 %v1603_v42, %v3820_v26  ;;  %v1935_v51 = vmax.f32 %v1489_v38, 0.0  ;;  %v1493_v53 = vadd.f32 %v1492_v47, %v3823_v27  ;;  %v1606_v54 = vadd.f32 %v1605_v48, %v3826_v28 }
 0x3dd   : > { %v1937_v52 = vmax.f32 %v1602_v40, 0.0  ;;  %v1942_v55 = vmax.f32 %v1491_v45, 0.0  ;;  %v3939_v3 = vunpack.c.l.s4 %v3448_v2  ;;  %v3960_v45 = vrot.slane %v3812_v22, %v1068_v1 }
 0x3de   : > { %v1944_v56 = vmax.f32 %v1604_v46, 0.0  ;;  %v3085_v59 = vpack.c.bf16 %v1935_v51, %v1934_v43  ;;  %v1943_v61 = vmax.f32 %v1493_v53, 0.0  ;;  %v1945_v62 = vmax.f32 %v1606_v54, 0.0 }
 0x3df   : > { %v3086_v60 = vpack.c.bf16 %v1937_v52, %v1936_v44  ;;  %v2022_v63 = vpack.c.bf16 %v1942_v55, %v1934_v43  ;;  %v2592_v46 = vunpack.c.0.s8 %v3939_v3 }
 0x3e0   : > { %v2024_v0 = vpack.c.bf16 %v1944_v56, %v1936_v44  ;;  %2406 = vst [vmem:[%s3844_s20 + $0x140] sm:$0xff] %v3085_v59  ;;  %v2023_v4 = vpack.c.bf16 %v1943_v61, %v1935_v51  ;;  %v3089_v5 = vpack.c.bf16 %v1943_v61, %v1942_v55  ;;  %v2025_v6 = vpack.c.bf16 %v1945_v62, %v1937_v52  ;;  %v1496_v8 = vpop.f32.mrb[48].mxu1  ;;  %v1609_v9 = vpop.f32.mrb[48].mxu0 }
 0x3e1   : > { %2407 = vst [vmem:[%s3844_s20 + $0x148] sm:$0xff] %v3086_v60  ;;  %v3090_v7 = vpack.c.bf16 %v1945_v62, %v1944_v56  ;;  %v2434_v10 = vmax.bf16 %v3917_v30, %v2022_v63  ;;  %v1497_v12 = vadd.f32 %v1496_v8, %v3817_v25  ;;  %v1610_v13 = vadd.f32 %v1609_v9, %v3820_v26  ;;  %v1498_v15 = vpop.f32.mrb[49].mxu1  ;;  %v1611_v16 = vpop.f32.mrb[49].mxu0 }
 0x3e2   : > { %v2468_v11 = vmax.bf16 %v3919_v31, %v2024_v0  ;;  %2410 = vst [vmem:[%s3844_s20 + $0x160] sm:$0xff] %v3089_v5  ;;  %v2451_v33 = vmax.bf16 %v3924_v32, %v2023_v4  ;;  %v2485_v17 = vmax.bf16 %v3927_v35, %v2025_v6  ;;  %v1499_v18 = vadd.f32 %v1498_v15, %v3823_v27  ;;  %v1500_v20 = vpop.f32.mrb[50].mxu1  ;;  %v1613_v21 = vpop.f32.mrb[50].mxu0 }
 0x3e3   : > { %2411 = vst [vmem:[%s3844_s20 + $0x168] sm:$0xff] %v3090_v7  ;;  %v1612_v19 = vadd.f32 %v1611_v16, %v3826_v28  ;;  %v1950_v49 = vmax.f32 %v1497_v12, 0.0  ;;  %v1952_v14 = vmax.f32 %v1610_v13, 0.0  ;;  %v1501_v58 = vadd.f32 %v1500_v20, %v3817_v25  ;;  %v1502_v23 = vpop.f32.mrb[51].mxu1  ;;  %v1615_v29 = vpop.f32.mrb[51].mxu0 }
 0x3e4   : > { %v1614_v24 = vadd.f32 %v1613_v21, %v3820_v26  ;;  %v1951_v30 = vmax.f32 %v1499_v18, 0.0  ;;  %v1503_v34 = vadd.f32 %v1502_v23, %v3823_v27  ;;  %v1616_v36 = vadd.f32 %v1615_v29, %v3826_v28 }
 0x3e5   : > { %v1953_v31 = vmax.f32 %v1612_v19, 0.0  ;;  %v1958_v37 = vmax.f32 %v1501_v58, 0.0  ;;  %v1064_v32 = vsub.s32 5, %v3805_v50  ;;  %v1072_v35 = vsub.s32 7, %v3805_v50 }
 0x3e6   : > { %v1960_v39 = vmax.f32 %v1614_v24, 0.0  ;;  %v3093_v38 = vpack.c.bf16 %v1951_v30, %v1950_v49  ;;  %v1959_v41 = vmax.f32 %v1503_v34, 0.0  ;;  %v1961_v42 = vmax.f32 %v1616_v36, 0.0 }
 0x3e7   : > { %v3094_v40 = vpack.c.bf16 %v1953_v31, %v1952_v14  ;;  %v2030_v43 = vpack.c.bf16 %v1958_v37, %v1950_v49  ;;  %v3979_v18 = vrot.slane %v3812_v22, %v1072_v35 }
 0x3e8   : > { %v2032_v44 = vpack.c.bf16 %v1960_v39, %v1952_v14  ;;  %2414 = vst [vmem:[%s3844_s20 + $0x180] sm:$0xff] %v3093_v38  ;;  %v2031_v47 = vpack.c.bf16 %v1959_v41, %v1951_v30  ;;  %v3097_v48 = vpack.c.bf16 %v1959_v41, %v1958_v37  ;;  %v2033_v51 = vpack.c.bf16 %v1961_v42, %v1953_v31  ;;  %v1506_v53 = vpop.f32.mrb[52].mxu1  ;;  %v1619_v54 = vpop.f32.mrb[52].mxu0 }
 0x3e9   : > { %2415 = vst [vmem:[%s3844_s20 + $0x188] sm:$0xff] %v3094_v40  ;;  %v3098_v52 = vpack.c.bf16 %v1961_v42, %v1960_v39  ;;  %v2435_v55 = vmax.bf16 %v2434_v10, %v2030_v43  ;;  %v1507_v59 = vadd.f32 %v1506_v53, %v3817_v25  ;;  %v1620_v60 = vadd.f32 %v1619_v54, %v3820_v26  ;;  %v1508_v61 = vpop.f32.mrb[53].mxu1  ;;  %v1621_v62 = vpop.f32.mrb[53].mxu0 }
 0x3ea   : > { %v2469_v56 = vmax.bf16 %v2468_v11, %v2032_v44  ;;  %2418 = vst [vmem:[%s3844_s20 + $0x1a0] sm:$0xff] %v3097_v48  ;;  %v2452_v63 = vmax.bf16 %v2451_v33, %v2031_v47  ;;  %v2486_v0 = vmax.bf16 %v2485_v17, %v2033_v51  ;;  %v1509_v1 = vadd.f32 %v1508_v61, %v3823_v27  ;;  %v1510_v3 = vpop.f32.mrb[54].mxu1  ;;  %v1623_v4 = vpop.f32.mrb[54].mxu0 }
 0x3eb   : > { %2419 = vst [vmem:[%s3844_s20 + $0x1a8] sm:$0xff] %v3098_v52  ;;  %v1622_v2 = vadd.f32 %v1621_v62, %v3826_v28  ;;  %v1966_v5 = vmax.f32 %v1507_v59, 0.0  ;;  %v1968_v6 = vmax.f32 %v1620_v60, 0.0  ;;  %v1511_v7 = vadd.f32 %v1510_v3, %v3817_v25  ;;  %v1512_v9 = vpop.f32.mrb[55].mxu1  ;;  %v1625_v10 = vpop.f32.mrb[55].mxu0 }
 0x3ec   : > { %v1624_v8 = vadd.f32 %v1623_v4, %v3820_v26  ;;  %v1967_v11 = vmax.f32 %v1509_v1, 0.0  ;;  %v1513_v13 = vadd.f32 %v1512_v9, %v3823_v27  ;;  %v1626_v15 = vadd.f32 %v1625_v10, %v3826_v28 }
 0x3ed   : > { %v1969_v12 = vmax.f32 %v1622_v2, 0.0  ;;  %v1974_v16 = vmax.f32 %v1511_v7, 0.0  ;;  %v3976_v17 = vrot.slane %v3812_v22, %v1064_v32  ;;  %v3982_v14 = vsub.s32 %v2592_v46, %v3805_v50 }
 0x3ee   : > { %v1976_v33 = vmax.f32 %v1624_v8, 0.0  ;;  %v3101_v25 = vpack.c.bf16 %v1967_v11, %v1966_v5  ;;  %v1975_v19 = vmax.f32 %v1513_v13, 0.0  ;;  %v1977_v20 = vmax.f32 %v1626_v15, 0.0 }
 0x3ef   : > { %v3102_v26 = vpack.c.bf16 %v1969_v12, %v1968_v6  ;;  %v2038_v21 = vpack.c.bf16 %v1974_v16, %v1966_v5 }
 0x3f0   : > { %v2040_v49 = vpack.c.bf16 %v1976_v33, %v1968_v6  ;;  %2422 = vst [vmem:[%s3844_s20 + $0x1c0] sm:$0xff] %v3101_v25  ;;  %v2039_v27 = vpack.c.bf16 %v1975_v19, %v1967_v11  ;;  %v3105_v28 = vpack.c.bf16 %v1975_v19, %v1974_v16  ;;  %v2041_v58 = vpack.c.bf16 %v1977_v20, %v1969_v12  ;;  %v1662_v23 = vpop.f32.mrb[56].mxu1  ;;  %v1775_v22 = vpop.f32.mrb[56].mxu0 }
 0x3f1   : > { %2423 = vst [vmem:[%s3844_s20 + $0x1c8] sm:$0xff] %v3102_v26  ;;  %v3106_v24 = vpack.c.bf16 %v1977_v20, %v1976_v33  ;;  %v2436_v29 = vmax.bf16 %v2435_v55, %v2038_v21  ;;  %v1663_v31 = vadd.f32 %v1662_v23, %v3936_v57  ;;  %v1776_v34 = vadd.f32 %v1775_v22, %v3960_v45  ;;  %v1664_v36 = vpop.f32.mrb[57].mxu1  ;;  %v1777_v37 = vpop.f32.mrb[57].mxu0 }
 0x3f2   : > { %v2470_v30 = vmax.bf16 %v2469_v56, %v2040_v49  ;;  %2426 = vst [vmem:[%s3844_s20 + $0x1e0] sm:$0xff] %v3105_v28  ;;  %v2453_v50 = vmax.bf16 %v2452_v63, %v2039_v27  ;;  %v2487_v39 = vmax.bf16 %v2486_v0, %v2041_v58  ;;  %v3991_v32 = vadd.f32 %v1664_v36, %v3976_v17  ;;  %v1666_v38 = vpop.f32.mrb[58].mxu1  ;;  %v1779_v40 = vpop.f32.mrb[58].mxu0 }
 0x3f3   : > { %2427 = vst [vmem:[%s3844_s20 + $0x1e8] sm:$0xff] %v3106_v24  ;;  %v3994_v35 = vadd.f32 %v1777_v37, %v3979_v18  ;;  %v2437_v41 = vunpack.i.l.bf16 %v2436_v29  ;;  %v2438_v42 = vunpack.i.h.bf16 %v2436_v29  ;;  %v1668_v46 = vpop.f32.mrb[59].mxu1  ;;  %v1781_v47 = vpop.f32.mrb[59].mxu0  ;;  %v1858_v56 = vmax.f32 %v1663_v31, 0.0 }
 0x3f4   : > { %v2471_v43 = vunpack.i.l.bf16 %v2470_v30  ;;  %v2472_v44 = vunpack.i.h.bf16 %v2470_v30  ;;  %v2454_v48 = vunpack.i.l.bf16 %v2453_v50  ;;  %v2455_v51 = vunpack.i.h.bf16 %v2453_v50 }
 0x3f5   : > { %v2488_v52 = vunpack.i.l.bf16 %v2487_v39  ;;  %v2489_v53 = vunpack.i.h.bf16 %v2487_v39  ;;  %v2439_v54 = vmax.f32 %v2437_v41, %v2438_v42  ;;  %v1860_v59 = vmax.f32 %v1776_v34, 0.0 }
 0x3f6   : > { %v2473_v55 = vmax.f32 %v2471_v43, %v2472_v44  ;;  %v2456_v60 = vmax.f32 %v2454_v48, %v2455_v51  ;;  %v1859_v62 = vmax.f32 %v3991_v32, 0.0  ;;  %v1861_v63 = vmax.f32 %v3994_v35, 0.0 }
 0x3f7   : > { %v2490_v61 = vmax.f32 %v2488_v52, %v2489_v53  ;;  %v2440_v0 = vrot.slane %v2439_v54, 4  ;;  %v1667_v2 = vadd.f32 %v1666_v38, %v3936_v57  ;;  %v1780_v3 = vadd.f32 %v1779_v40, %v3960_v45 }
 0x3f8   : > { %v2474_v1 = vrot.slane %v2473_v55, 4  ;;  %v2457_v4 = vrot.slane %v2456_v60, 4  ;;  %v3047_v6 = vpack.c.bf16 %v1859_v62, %v1858_v56  ;;  %v3048_v7 = vpack.c.bf16 %v1861_v63, %v1860_v59  ;;  %v1672_v8 = vpop.f32.mrb[60].mxu1  ;;  %v1785_v9 = vpop.f32.mrb[60].mxu0 }
 0x3f9   : > { %v2491_v5 = vrot.slane %v2490_v61, 4  ;;  %v2441_v10 = vmax.f32 %v2439_v54, %v2440_v0  ;;  %v1866_v12 = vmax.f32 %v1667_v2, 0.0  ;;  %v1868_v13 = vmax.f32 %v1780_v3, 0.0  ;;  %v1674_v15 = vpop.f32.mrb[61].mxu1  ;;  %v1787_v16 = vpop.f32.mrb[61].mxu0 }
 0x3fa   : > { %v2475_v11 = vmax.f32 %v2473_v55, %v2474_v1  ;;  %v2458_v33 = vmax.f32 %v2456_v60, %v2457_v4  ;;  %2368 = vst [vmem:[%s3844_s20 + $0x10] sm:$0xff] %v3047_v6  ;;  %2369 = vst [vmem:[%s3844_s20 + $0x18] sm:$0xff] %v3048_v7  ;;  %v1669_v26 = vadd.f32 %v1668_v46, %v3976_v17  ;;  %v1676_v20 = vpop.f32.mrb[62].mxu1  ;;  %v1789_v21 = vpop.f32.mrb[62].mxu0 }
 0x3fb   : > { %v2492_v25 = vmax.f32 %v2490_v61, %v2491_v5  ;;  %v1782_v19 = vadd.f32 %v1781_v47, %v3979_v18  ;;  %v2442_v49 = vrot.slane %v2441_v10, 2  ;;  %v4004_v28 = vpack.c.bf16 %v1866_v12, %v1858_v56  ;;  %v1678_v24 = vpop.f32.mrb[63].mxu1  ;;  %v1791_v23 = vpop.f32.mrb[63].mxu0 }
 0x3fc   : > { %v2476_v27 = vrot.slane %v2475_v11, 2  ;;  %v4006_v58 = vpack.c.bf16 %v1868_v13, %v1860_v59  ;;  %v2459_v22 = vrot.slane %v2458_v33, 2  ;;  %v1867_v30 = vmax.f32 %v1669_v26, 0.0 }
 0x3fd   : > { %v2493_v29 = vrot.slane %v2492_v25, 2  ;;  %v1869_v31 = vmax.f32 %v1782_v19, 0.0  ;;  %v2443_v34 = vmax.f32 %v2441_v10, %v2442_v49  ;;  %v1673_v37 = vadd.f32 %v1672_v8, %v3936_v57 }
 0x3fe   : > { %v2477_v36 = vmax.f32 %v2475_v11, %v2476_v27  ;;  %v1786_v50 = vadd.f32 %v1785_v9, %v3960_v45  ;;  %v2460_v39 = vmax.f32 %v2458_v33, %v2459_v22  ;;  %v4010_v35 = vpack.c.bf16 %v1867_v30, %v1859_v62 }
 0x3ff   : > { %v2494_v32 = vmax.f32 %v2492_v25, %v2493_v29  ;;  %v3051_v38 = vpack.c.bf16 %v1867_v30, %v1866_v12  ;;  %v2444_v40 = vrot.slane %v2443_v34, 1  ;;  %v4012_v42 = vpack.c.bf16 %v1869_v31, %v1861_v63 }
 0x400   : > { %v2478_v41 = vrot.slane %v2477_v36, 1  ;;  %v3052_v43 = vpack.c.bf16 %v1869_v31, %v1868_v13  ;;  %v2461_v44 = vrot.slane %v2460_v39, 1  ;;  %v1874_v47 = vmax.f32 %v1673_v37, 0.0  ;;  %v1682_v51 = vpop.f32.mrb[64].mxu1  ;;  %v1795_v52 = vpop.f32.mrb[64].mxu0 }
 0x401   : > { %v2495_v46 = vrot.slane %v2494_v32, 1  ;;  %2372 = vst [vmem:[%s3844_s20 + $0x30] sm:$0xff] %v3051_v38  ;;  %v1876_v48 = vmax.f32 %v1786_v50, 0.0  ;;  %v2445_v53 = vmax.f32 %v2443_v34, %v2444_v40  ;;  %v1675_v55 = vadd.f32 %v1674_v15, %v3976_v17  ;;  %v1684_v59 = vpop.f32.mrb[65].mxu1  ;;  %v1797_v60 = vpop.f32.mrb[65].mxu0 }
 0x402   : > { %v2479_v54 = vmax.f32 %v2477_v36, %v2478_v41  ;;  %2373 = vst [vmem:[%s3844_s20 + $0x38] sm:$0xff] %v3052_v43  ;;  %v1788_v56 = vadd.f32 %v1787_v16, %v3979_v18  ;;  %v2462_v61 = vmax.f32 %v2460_v39, %v2461_v44  ;;  %v1677_v63 = vadd.f32 %v1676_v20, %v3936_v57  ;;  %v1686_v1 = vpop.f32.mrb[66].mxu1  ;;  %v1799_v2 = vpop.f32.mrb[66].mxu0 }
 0x403   : > { %v2496_v62 = vmax.f32 %v2494_v32, %v2495_v46  ;;  %v1790_v0 = vadd.f32 %v1789_v21, %v3960_v45  ;;  %v2446_v3 = vpack.i.bf16 %v2445_v53, %v2445_v53  ;;  %v1875_v5 = vmax.f32 %v1675_v55, 0.0  ;;  %v1688_v7 = vpop.f32.mrb[67].mxu1  ;;  %v1801_v8 = vpop.f32.mrb[67].mxu0 }
 0x404   : > { %v2480_v4 = vpack.i.bf16 %v2479_v54, %v2479_v54  ;;  %v1877_v6 = vmax.f32 %v1788_v56, 0.0  ;;  %v2463_v9 = vpack.i.bf16 %v2462_v61, %v2462_v61  ;;  %v1882_v11 = vmax.f32 %v1677_v63, 0.0 }
 0x405   : > { %v2497_v10 = vpack.i.bf16 %v2496_v62, %v2496_v62  ;;  %v1884_v12 = vmax.f32 %v1790_v0, 0.0  ;;  %v4020_v13 = vunpack.c.l.bf16 %v2446_v3  ;;  %v3055_v16 = vpack.c.bf16 %v1875_v5, %v1874_v47 }
 0x406   : > { %v4022_v15 = vunpack.c.l.bf16 %v2480_v4  ;;  %v3056_v33 = vpack.c.bf16 %v1877_v6, %v1876_v48  ;;  %v4024_v25 = vunpack.c.l.bf16 %v2463_v9  ;;  %v1994_v19 = vpack.c.bf16 %v1882_v11, %v1874_v47 }
 0x407   : > { %v4026_v26 = vunpack.c.l.bf16 %v2497_v10  ;;  %v1996_v20 = vpack.c.bf16 %v1884_v12, %v1876_v48  ;;  %2376 = vst [vmem:[%s3844_s20 + $0x50] sm:$0xff] %v3055_v16  ;;  %v1679_v21 = vadd.f32 %v1678_v24, %v3976_v17  ;;  %v1792_v49 = vadd.f32 %v1791_v23, %v3979_v18 }
 0x408   : > { %2377 = vst [vmem:[%s3844_s20 + $0x58] sm:$0xff] %v3056_v33  ;;  %v1683_v27 = vadd.f32 %v1682_v51, %v3936_v57  ;;  %v1796_v22 = vadd.f32 %v1795_v52, %v3960_v45  ;;  %v2586_v29 = vcombine.low %v4020_v13, %v4024_v25  ;;  %v2498_v31 = vmax.bf16 %v1994_v19, %v4004_v28  ;;  %v1692_v36 = vpop.f32.mrb[68].mxu1  ;;  %v1805_v37 = vpop.f32.mrb[68].mxu0 }
 0x409   : > { %v2587_v30 = vcombine.low %v4022_v15, %v4026_v26  ;;  %v2532_v34 = vmax.bf16 %v1996_v20, %v4006_v58  ;;  %v1883_v50 = vmax.f32 %v1679_v21, 0.0  ;;  %v1885_v24 = vmax.f32 %v1792_v49, 0.0  ;;  %v1694_v32 = vpop.f32.mrb[69].mxu1  ;;  %v1807_v38 = vpop.f32.mrb[69].mxu0 }
 0x40a   : > { %v1890_v39 = vmax.f32 %v1683_v27, 0.0  ;;  %v1892_v23 = vmax.f32 %v1796_v22, 0.0  ;;  %v1685_v40 = vadd.f32 %v1684_v59, %v3976_v17  ;;  %v1798_v41 = vadd.f32 %v1797_v60, %v3979_v18  ;;  %v1696_v44 = vpop.f32.mrb[70].mxu1  ;;  %v1809_v58 = vpop.f32.mrb[70].mxu0 }
 0x40b   : > { %v1687_v43 = vadd.f32 %v1686_v1, %v3936_v57  ;;  %v1800_v28 = vadd.f32 %v1799_v2, %v3960_v45  ;;  %v1995_v46 = vpack.c.bf16 %v1883_v50, %v1875_v5  ;;  %v3059_v47 = vpack.c.bf16 %v1883_v50, %v1882_v11  ;;  %v1698_v52 = vpop.f32.mrb[71].mxu1  ;;  %v1811_v53 = vpop.f32.mrb[71].mxu0 }
 0x40c   : > { %v1997_v48 = vpack.c.bf16 %v1885_v24, %v1877_v6  ;;  %v3060_v51 = vpack.c.bf16 %v1885_v24, %v1884_v12  ;;  %v1891_v54 = vmax.f32 %v1685_v40, 0.0  ;;  %v1893_v55 = vmax.f32 %v1798_v41, 0.0 }
 0x40d   : > { %v1898_v56 = vmax.f32 %v1687_v43, 0.0  ;;  %v1900_v59 = vmax.f32 %v1800_v28, 0.0  ;;  %2380 = vst [vmem:[%s3844_s20 + $0x70] sm:$0xff] %v3059_v47  ;;  %v2515_v60 = vmax.bf16 %v1995_v46, %v4010_v35  ;;  %v1689_v62 = vadd.f32 %v1688_v7, %v3976_v17 }
 0x40e   : > { %2381 = vst [vmem:[%s3844_s20 + $0x78] sm:$0xff] %v3060_v51  ;;  %v2549_v61 = vmax.bf16 %v1997_v48, %v4012_v42  ;;  %v1802_v63 = vadd.f32 %v1801_v8, %v3979_v18  ;;  %v3063_v0 = vpack.c.bf16 %v1891_v54, %v1890_v39  ;;  %v3064_v1 = vpack.c.bf16 %v1893_v55, %v1892_v23 }
 0x40f   : > { %v2002_v2 = vpack.c.bf16 %v1898_v56, %v1890_v39  ;;  %v2004_v3 = vpack.c.bf16 %v1900_v59, %v1892_v23  ;;  %v1899_v4 = vmax.f32 %v1689_v62, 0.0  ;;  %v1693_v6 = vadd.f32 %v1692_v36, %v3936_v57 }
 0x410   : > { %v1901_v5 = vmax.f32 %v1802_v63, 0.0  ;;  %v1806_v9 = vadd.f32 %v1805_v37, %v3960_v45  ;;  %2384 = vst [vmem:[%s3844_s20 + $0x90] sm:$0xff] %v3063_v0  ;;  %2385 = vst [vmem:[%s3844_s20 + $0x98] sm:$0xff] %v3064_v1  ;;  %v1695_v42 = vadd.f32 %v1694_v32, %v3976_v17  ;;  %v1808_v7 = vadd.f32 %v1807_v38, %v3979_v18  ;;  %v1702_v8 = vpop.f32.mrb[72].mxu1  ;;  %v1815_v11 = vpop.f32.mrb[72].mxu0 }
 0x411   : > { %v4054_v35 = vmax.bf16 %v2498_v31, %v2002_v2  ;;  %v4056_v10 = vmax.bf16 %v2532_v34, %v2004_v3  ;;  %v2003_v12 = vpack.c.bf16 %v1899_v4, %v1891_v54  ;;  %v3067_v16 = vpack.c.bf16 %v1899_v4, %v1898_v56  ;;  %v1704_v20 = vpop.f32.mrb[73].mxu1  ;;  %v1817_v21 = vpop.f32.mrb[73].mxu0 }
 0x412   : > { %v2005_v33 = vpack.c.bf16 %v1901_v5, %v1893_v55  ;;  %v3068_v19 = vpack.c.bf16 %v1901_v5, %v1900_v59  ;;  %v1906_v49 = vmax.f32 %v1693_v6, 0.0  ;;  %v1908_v27 = vmax.f32 %v1806_v9, 0.0  ;;  %v1706_v34 = vpop.f32.mrb[74].mxu1  ;;  %v1819_v36 = vpop.f32.mrb[74].mxu0 }
 0x413   : > { %v1907_v22 = vmax.f32 %v1695_v42, 0.0  ;;  %v1909_v31 = vmax.f32 %v1808_v7, 0.0  ;;  %2388 = vst [vmem:[%s3844_s20 + $0xb0] sm:$0xff] %v3067_v16  ;;  %v4061_v37 = vmax.bf16 %v2515_v60, %v2003_v12  ;;  %v1697_v24 = vadd.f32 %v1696_v44, %v3936_v57  ;;  %v1708_v23 = vpop.f32.mrb[75].mxu1  ;;  %v1821_v32 = vpop.f32.mrb[75].mxu0 }
 0x414   : > { %2389 = vst [vmem:[%s3844_s20 + $0xb8] sm:$0xff] %v3068_v19  ;;  %v4064_v50 = vmax.bf16 %v2549_v61, %v2005_v33  ;;  %v1810_v39 = vadd.f32 %v1809_v58, %v3960_v45  ;;  %v1699_v41 = vadd.f32 %v1698_v52, %v3976_v17  ;;  %v1812_v43 = vadd.f32 %v1811_v53, %v3979_v18 }
 0x415   : > { %v3071_v38 = vpack.c.bf16 %v1907_v22, %v1906_v49  ;;  %v3072_v40 = vpack.c.bf16 %v1909_v31, %v1908_v27  ;;  %v1914_v28 = vmax.f32 %v1697_v24, 0.0  ;;  %v1703_v47 = vadd.f32 %v1702_v8, %v3936_v57 }
 0x416   : > { %v1916_v46 = vmax.f32 %v1810_v39, 0.0  ;;  %v1816_v48 = vadd.f32 %v1815_v11, %v3960_v45  ;;  %v1915_v51 = vmax.f32 %v1699_v41, 0.0  ;;  %v1917_v44 = vmax.f32 %v1812_v43, 0.0 }
 0x417   : > { %2392 = vst [vmem:[%s3844_s20 + $0xd0] sm:$0xff] %v3071_v38  ;;  %2393 = vst [vmem:[%s3844_s20 + $0xd8] sm:$0xff] %v3072_v40  ;;  %v1705_v58 = vadd.f32 %v1704_v20, %v3976_v17  ;;  %v1818_v54 = vadd.f32 %v1817_v21, %v3979_v18  ;;  %v2010_v55 = vpack.c.bf16 %v1914_v28, %v1906_v49  ;;  %v1922_v52 = vmax.f32 %v1703_v47, 0.0 }
 0x418   : > { %v2012_v56 = vpack.c.bf16 %v1916_v46, %v1908_v27  ;;  %v1924_v53 = vmax.f32 %v1816_v48, 0.0  ;;  %v2011_v59 = vpack.c.bf16 %v1915_v51, %v1907_v22  ;;  %v3075_v60 = vpack.c.bf16 %v1915_v51, %v1914_v28  ;;  %v1712_v63 = vpop.f32.mrb[76].mxu1  ;;  %v1825_v0 = vpop.f32.mrb[76].mxu0 }
 0x419   : > { %v2013_v61 = vpack.c.bf16 %v1917_v44, %v1909_v31  ;;  %v3076_v62 = vpack.c.bf16 %v1917_v44, %v1916_v46  ;;  %v2500_v1 = vmax.bf16 %v4054_v35, %v2010_v55  ;;  %v1923_v3 = vmax.f32 %v1705_v58, 0.0  ;;  %v1714_v5 = vpop.f32.mrb[77].mxu1  ;;  %v1827_v6 = vpop.f32.mrb[77].mxu0 }
 0x41a   : > { %v2534_v2 = vmax.bf16 %v4056_v10, %v2012_v56  ;;  %v1925_v4 = vmax.f32 %v1818_v54, 0.0  ;;  %2396 = vst [vmem:[%s3844_s20 + $0xf0] sm:$0xff] %v3075_v60  ;;  %v2517_v9 = vmax.bf16 %v4061_v37, %v2011_v59  ;;  %v1707_v7 = vadd.f32 %v1706_v34, %v3936_v57  ;;  %v1716_v11 = vpop.f32.mrb[78].mxu1  ;;  %v1829_v35 = vpop.f32.mrb[78].mxu0 }
 0x41b   : > { %2397 = vst [vmem:[%s3844_s20 + $0xf8] sm:$0xff] %v3076_v62  ;;  %v2551_v42 = vmax.bf16 %v4064_v50, %v2013_v61  ;;  %v1820_v8 = vadd.f32 %v1819_v36, %v3960_v45  ;;  %v3079_v12 = vpack.c.bf16 %v1923_v3, %v1922_v52  ;;  %v1709_v16 = vadd.f32 %v1708_v23, %v3976_v17  ;;  %v1718_v19 = vpop.f32.mrb[79].mxu1  ;;  %v1831_v20 = vpop.f32.mrb[79].mxu0 }
 0x41c   : > { %v3080_v10 = vpack.c.bf16 %v1925_v4, %v1924_v53  ;;  %v1822_v33 = vadd.f32 %v1821_v32, %v3979_v18  ;;  %v1930_v21 = vmax.f32 %v1707_v7, 0.0  ;;  %v1713_v27 = vadd.f32 %v1712_v63, %v3936_v57 }
 0x41d   : > { %v1932_v49 = vmax.f32 %v1820_v8, 0.0  ;;  %v1826_v22 = vadd.f32 %v1825_v0, %v3960_v45  ;;  %2400 = vst [vmem:[%s3844_s20 + $0x110] sm:$0xff] %v3079_v12  ;;  %v1931_v31 = vmax.f32 %v1709_v16, 0.0  ;;  %v1715_v36 = vadd.f32 %v1714_v5, %v3976_v17 }
 0x41e   : > { %2401 = vst [vmem:[%s3844_s20 + $0x118] sm:$0xff] %v3080_v10  ;;  %v1933_v34 = vmax.f32 %v1822_v33, 0.0  ;;  %v1828_v37 = vadd.f32 %v1827_v6, %v3979_v18  ;;  %v2018_v50 = vpack.c.bf16 %v1930_v21, %v1922_v52  ;;  %v1938_v39 = vmax.f32 %v1713_v27, 0.0 }
 0x41f   : > { %v2020_v24 = vpack.c.bf16 %v1932_v49, %v1924_v53  ;;  %v1940_v23 = vmax.f32 %v1826_v22, 0.0  ;;  %v2019_v32 = vpack.c.bf16 %v1931_v31, %v1923_v3  ;;  %v3083_v38 = vpack.c.bf16 %v1931_v31, %v1930_v21 }
 0x420   : > { %v2021_v40 = vpack.c.bf16 %v1933_v34, %v1925_v4  ;;  %v3084_v41 = vpack.c.bf16 %v1933_v34, %v1932_v49  ;;  %v4092_v43 = vmax.bf16 %v2500_v1, %v2018_v50  ;;  %v1939_v46 = vmax.f32 %v1715_v36, 0.0  ;;  %v1722_v48 = vpop.f32.mrb[80].mxu1  ;;  %v1835_v51 = vpop.f32.mrb[80].mxu0 }
 0x421   : > { %v4094_v28 = vmax.bf16 %v2534_v2, %v2020_v24  ;;  %v1941_v47 = vmax.f32 %v1828_v37, 0.0  ;;  %2404 = vst [vmem:[%s3844_s20 + $0x130] sm:$0xff] %v3083_v38  ;;  %v4097_v44 = vmax.bf16 %v2517_v9, %v2019_v32  ;;  %v1717_v54 = vadd.f32 %v1716_v11, %v3936_v57  ;;  %v1724_v56 = vpop.f32.mrb[81].mxu1  ;;  %v1837_v52 = vpop.f32.mrb[81].mxu0 }
 0x422   : > { %2405 = vst [vmem:[%s3844_s20 + $0x138] sm:$0xff] %v3084_v41  ;;  %v4100_v58 = vmax.bf16 %v2551_v42, %v2021_v40  ;;  %v1830_v55 = vadd.f32 %v1829_v35, %v3960_v45  ;;  %v3087_v53 = vpack.c.bf16 %v1939_v46, %v1938_v39  ;;  %v1719_v60 = vadd.f32 %v1718_v19, %v3976_v17  ;;  %v1726_v62 = vpop.f32.mrb[82].mxu1  ;;  %v1839_v63 = vpop.f32.mrb[82].mxu0 }
 0x423   : > { %v3088_v59 = vpack.c.bf16 %v1941_v47, %v1940_v23  ;;  %v1832_v61 = vadd.f32 %v1831_v20, %v3979_v18  ;;  %v1946_v0 = vmax.f32 %v1717_v54, 0.0  ;;  %v1723_v2 = vadd.f32 %v1722_v48, %v3936_v57  ;;  %v1728_v4 = vpop.f32.mrb[83].mxu1  ;;  %v1841_v5 = vpop.f32.mrb[83].mxu0 }
 0x424   : > { %v1948_v1 = vmax.f32 %v1830_v55, 0.0  ;;  %v1836_v3 = vadd.f32 %v1835_v51, %v3960_v45  ;;  %2408 = vst [vmem:[%s3844_s20 + $0x150] sm:$0xff] %v3087_v53  ;;  %v1947_v6 = vmax.f32 %v1719_v60, 0.0  ;;  %v1725_v42 = vadd.f32 %v1724_v56, %v3976_v17 }
 0x425   : > { %2409 = vst [vmem:[%s3844_s20 + $0x158] sm:$0xff] %v3088_v59  ;;  %v1949_v9 = vmax.f32 %v1832_v61, 0.0  ;;  %v1838_v7 = vadd.f32 %v1837_v52, %v3979_v18  ;;  %v2026_v8 = vpack.c.bf16 %v1946_v0, %v1938_v39  ;;  %v1954_v35 = vmax.f32 %v1723_v2, 0.0 }
 0x426   : > { %v2028_v11 = vpack.c.bf16 %v1948_v1, %v1940_v23  ;;  %v1956_v12 = vmax.f32 %v1836_v3, 0.0  ;;  %v2027_v10 = vpack.c.bf16 %v1947_v6, %v1939_v46  ;;  %v3091_v16 = vpack.c.bf16 %v1947_v6, %v1946_v0 }
 0x427   : > { %v2029_v33 = vpack.c.bf16 %v1949_v9, %v1941_v47  ;;  %v3092_v19 = vpack.c.bf16 %v1949_v9, %v1948_v1  ;;  %v2502_v20 = vmax.bf16 %v4092_v43, %v2026_v8  ;;  %v1955_v49 = vmax.f32 %v1725_v42, 0.0 }
 0x428   : > { %v2536_v21 = vmax.bf16 %v4094_v28, %v2028_v11  ;;  %v1957_v27 = vmax.f32 %v1838_v7, 0.0  ;;  %2412 = vst [vmem:[%s3844_s20 + $0x170] sm:$0xff] %v3091_v16  ;;  %v2519_v22 = vmax.bf16 %v4097_v44, %v2027_v10  ;;  %v1727_v34 = vadd.f32 %v1726_v62, %v3936_v57  ;;  %v1732_v37 = vpop.f32.mrb[84].mxu1  ;;  %v1845_v50 = vpop.f32.mrb[84].mxu0 }
 0x429   : > { %2413 = vst [vmem:[%s3844_s20 + $0x178] sm:$0xff] %v3092_v19  ;;  %v2553_v31 = vmax.bf16 %v4100_v58, %v2029_v33  ;;  %v1840_v36 = vadd.f32 %v1839_v63, %v3960_v45  ;;  %v3095_v24 = vpack.c.bf16 %v1955_v49, %v1954_v35  ;;  %v1729_v23 = vadd.f32 %v1728_v4, %v3976_v17  ;;  %v1734_v38 = vpop.f32.mrb[85].mxu1  ;;  %v1847_v40 = vpop.f32.mrb[85].mxu0 }
 0x42a   : > { %v3096_v39 = vpack.c.bf16 %v1957_v27, %v1956_v12  ;;  %v1842_v32 = vadd.f32 %v1841_v5, %v3979_v18  ;;  %v1962_v41 = vmax.f32 %v1727_v34, 0.0  ;;  %v1733_v28 = vadd.f32 %v1732_v37, %v3936_v57  ;;  %v1736_v47 = vpop.f32.mrb[86].mxu1  ;;  %v1849_v48 = vpop.f32.mrb[86].mxu0 }
 0x42b   : > { %v1964_v43 = vmax.f32 %v1840_v36, 0.0  ;;  %v1846_v46 = vadd.f32 %v1845_v50, %v3960_v45  ;;  %2416 = vst [vmem:[%s3844_s20 + $0x190] sm:$0xff] %v3095_v24  ;;  %v1963_v51 = vmax.f32 %v1729_v23, 0.0  ;;  %v1735_v58 = vadd.f32 %v1734_v38, %v3976_v17  ;;  %v1738_v55 = vpop.f32.mrb[87].mxu1  ;;  %v1851_v56 = vpop.f32.mrb[87].mxu0 }
 0x42c   : > { %2417 = vst [vmem:[%s3844_s20 + $0x198] sm:$0xff] %v3096_v39  ;;  %v1965_v44 = vmax.f32 %v1842_v32, 0.0  ;;  %v1848_v54 = vadd.f32 %v1847_v40, %v3979_v18  ;;  %v2034_v52 = vpack.c.bf16 %v1962_v41, %v1954_v35  ;;  %v1970_v59 = vmax.f32 %v1733_v28, 0.0 }
 0x42d   : > { %v2036_v53 = vpack.c.bf16 %v1964_v43, %v1956_v12  ;;  %v1972_v60 = vmax.f32 %v1846_v46, 0.0  ;;  %v2035_v61 = vpack.c.bf16 %v1963_v51, %v1955_v49  ;;  %v3099_v62 = vpack.c.bf16 %v1963_v51, %v1962_v41 }
 0x42e   : > { %v2037_v63 = vpack.c.bf16 %v1965_v44, %v1957_v27  ;;  %v3100_v0 = vpack.c.bf16 %v1965_v44, %v1964_v43  ;;  %v2503_v1 = vmax.bf16 %v2502_v20, %v2034_v52  ;;  %v1971_v3 = vmax.f32 %v1735_v58, 0.0 }
 0x42f   : > { %v2537_v2 = vmax.bf16 %v2536_v21, %v2036_v53  ;;  %v1973_v4 = vmax.f32 %v1848_v54, 0.0  ;;  %2420 = vst [vmem:[%s3844_s20 + $0x1b0] sm:$0xff] %v3099_v62  ;;  %v2520_v5 = vmax.bf16 %v2519_v22, %v2035_v61  ;;  %v1737_v9 = vadd.f32 %v1736_v47, %v3936_v57 }
 0x430   : > { %2421 = vst [vmem:[%s3844_s20 + $0x1b8] sm:$0xff] %v3100_v0  ;;  %v2554_v6 = vmax.bf16 %v2553_v31, %v2037_v63  ;;  %v1850_v42 = vadd.f32 %v1849_v48, %v3960_v45  ;;  %v3103_v7 = vpack.c.bf16 %v1971_v3, %v1970_v59  ;;  %v1739_v11 = vadd.f32 %v1738_v55, %v3976_v17 }
 0x431   : > { %v3104_v8 = vpack.c.bf16 %v1973_v4, %v1972_v60  ;;  %v1852_v35 = vadd.f32 %v1851_v56, %v3979_v18  ;;  %v1978_v12 = vmax.f32 %v1737_v9, 0.0  ;;  %v4140_v16 = vrot.slane %v2586_v29, %v3982_v14 }
 0x432   : > { %v1980_v10 = vmax.f32 %v1850_v42, 0.0  ;;  %v4146_v57 = vrot.slane %v2587_v30, %v3982_v14  ;;  %2424 = vst [vmem:[%s3844_s20 + $0x1d0] sm:$0xff] %v3103_v7  ;;  %v1979_v45 = vmax.f32 %v1739_v11, 0.0 }
 0x433   : > { %2425 = vst [vmem:[%s3844_s20 + $0x1d8] sm:$0xff] %v3104_v8  ;;  %v1981_v17 = vmax.f32 %v1852_v35, 0.0  ;;  %v2042_v18 = vpack.c.bf16 %v1978_v12, %v1970_v59 }
 0x434   : > { %v2044_v33 = vpack.c.bf16 %v1980_v10, %v1972_v60  ;;  %v2618_v13 = vcombine.low %v4140_v16, %v4146_v57  ;;  %v2043_v15 = vpack.c.bf16 %v1979_v45, %v1971_v3  ;;  %v3107_v25 = vpack.c.bf16 %v1979_v45, %v1978_v12 }
 0x435   : > { %v2045_v26 = vpack.c.bf16 %v1981_v17, %v1973_v4  ;;  %v3108_v29 = vpack.c.bf16 %v1981_v17, %v1980_v10  ;;  %v2504_v30 = vmax.bf16 %v2503_v1, %v2042_v18 }
 0x436   : > { %v2538_v19 = vmax.bf16 %v2537_v2, %v2044_v33  ;;  %2428 = vst [vmem:[%s3844_s20 + $0x1f0] sm:$0xff] %v3107_v25  ;;  %v2521_v20 = vmax.bf16 %v2520_v5, %v2043_v15 }
 0x437   : > { %2429 = vst [vmem:[%s3844_s20 + $0x1f8] sm:$0xff] %v3108_v29  ;;  %v2555_v21 = vmax.bf16 %v2554_v6, %v2045_v26  ;;  %v2505_v49 = vunpack.i.l.bf16 %v2504_v30  ;;  %v2506_v27 = vunpack.i.h.bf16 %v2504_v30 }
 0x438   : > { %v2539_v22 = vunpack.i.l.bf16 %v2538_v19  ;;  %v2540_v31 = vunpack.i.h.bf16 %v2538_v19 }
 0x439   : > { %3340 = shalt.err (!%p3337_p6)
}
 0x43a   : > { %s3341_s20 = scalar_lea.hbm %s4153_s11, 8192  ;;  %s3345_s21 = scalar_lea.hbm %s4254_s9, 16384 }
 0x43b   : > { %p3342_p7 = scmp.ne.s32.totalorder %s4153_s11, %s3341_s20  ;;  %p3346_p0 = scmp.lt.u32.totalorder %s4153_s11, %s4254_s9 }
 0x43c   : > { %p3347_p2 = scmp.lt.u32.totalorder %s3345_s21, %s3341_s20  ;;  %p3349_p8 = scmp.lt.u32.totalorder %s3341_s20, %s4153_s11 }
 0x43d   : > { %p3343_p9 = pnand %p3342_p7, %p4271_p10 }
 0x43e   : > { %p3348_p4 = por %p3347_p2, %p3346_p0 }
 0x43f   : > { %p3344_p12 = pneg %p3343_p9 }
 0x440   : > { %p3350_p11 = por %p3349_p8, %p3348_p4 }
 0x442   : > { %p3351_p13 = pnand %p3350_p11, %p3344_p12 }
 0x444   : > { %3354 = shalt.err (!%p3351_p13)
}
 0x445   : > { %s3450_s27 = smov 512   ;;  %s3451_s12 = smov 32   ;;  %v2522_v34 = vunpack.i.l.bf16 %v2521_v20  ;;  %v2523_v36 = vunpack.i.h.bf16 %v2521_v20  ;;  %v2556_v37 = vunpack.i.l.bf16 %v2555_v21  ;;  %v2557_v50 = vunpack.i.h.bf16 %v2555_v21 }
 0x446   : > { %3216 = dma.vmem_to_hbm [thread:$0]  (%p4271_p10), %s4155_s24, 8192, %s4153_s11, %s2703_s30, %s3450_s27, %s3450_s27, %s3451_s12   ;;  %v2507_v24 = vmax.f32 %v2505_v49, %v2506_v27  ;;  %v2541_v39 = vmax.f32 %v2539_v22, %v2540_v31  ;;  %v2626_v17 = vrot.slane %v2618_v13, %v3982_v14 }
 0x447   : > { %v2524_v23 = vmax.f32 %v2522_v34, %v2523_v36  ;;  %v2558_v32 = vmax.f32 %v2556_v37, %v2557_v50  ;;  %s2869_s24 = sshll.u32 %s3829_s29, 3  ;;  %s3110_s11 = sshll.u32 %s3433_s16, 7 }
 0x448   : > { %v2508_v38 = vrot.slane %v2507_v24, 4  ;;  %v2542_v40 = vrot.slane %v2541_v39, 4  ;;  %s403_s30 = scalar_lea.vmem [#allocation6], %s2869_s24  ;;  %s4197_s21 = scalar_lea.hbm %s4255_s10, %s3110_s11 }
 0x449   : > { %v2525_v41 = vrot.slane %v2524_v23, 4  ;;  %v2559_v43 = vrot.slane %v2558_v32, 4  ;;  %s2741_s20 = sshll.u32 %s403_s30, 4  ;;  %s2708_s16 = scalar_lea.sflag [#allocation7], %s3829_s29  ;;  %s4199_s20 = int_to_ptr.vmem [resolvable:$true] %s2741_s20 }
 0x44a   : > { %v2509_v28 = vmax.f32 %v2507_v24, %v2508_v38  ;;  %v2543_v46 = vmax.f32 %v2541_v39, %v2542_v40  ;;  %s3355_s28 = scalar_lea.vmem %s4199_s20, 128  ;;  %s3452_s22 = smov [#allocation6]  }
 0x44b   : > { %v2526_v47 = vmax.f32 %v2524_v23, %v2525_v41  ;;  %v2560_v48 = vmax.f32 %v2558_v32, %v2559_v43  ;;  %p3356_p1 = scmp.ne.s32.totalorder %s4199_s20, %s3355_s28  ;;  %s3359_s27 = sshll.u32 %s3452_s22, 4  ;;  %s3360_s27 = int_to_ptr.vmem [resolvable:$false] %s3359_s27 }
 0x44c   : > { %v2510_v51 = vrot.slane %v2509_v28, 2  ;;  %v2544_v44 = vrot.slane %v2543_v46, 2  ;;  %s3361_s12 = scalar_lea.vmem %s3360_s27, 256  ;;  %p3362_p6 = scmp.lt.s32.totalorder %s4199_s20, %s3360_s27 }
 0x44d   : > { %v2527_v58 = vrot.slane %v2526_v47, 2  ;;  %v2561_v54 = vrot.slane %v2560_v48, 2  ;;  %p3357_p3 = pnand %p3356_p1, %p4271_p10  ;;  %p3363_p7 = scmp.lt.s32.totalorder %s3361_s12, %s3355_s28 }
 0x44e   : > { %v2511_v55 = vmax.f32 %v2509_v28, %v2510_v51  ;;  %v2545_v56 = vmax.f32 %v2543_v46, %v2544_v44 }
 0x44f   : > { %v2528_v52 = vmax.f32 %v2526_v47, %v2527_v58  ;;  %v2562_v53 = vmax.f32 %v2560_v48, %v2561_v54  ;;  %p3358_p5 = pneg %p3357_p3  ;;  %p3364_p9 = por %p3363_p7, %p3362_p6 }
 0x450   : > { %v2512_v59 = vrot.slane %v2511_v55, 1  ;;  %v2546_v60 = vrot.slane %v2545_v56, 1 }
 0x451   : > { %v2529_v61 = vrot.slane %v2528_v52, 1  ;;  %v2563_v62 = vrot.slane %v2562_v53, 1  ;;  %p3365_p12 = pnand %p3364_p9, %p3358_p5 }
 0x452   : > { %v2513_v63 = vmax.f32 %v2511_v55, %v2512_v59  ;;  %v2547_v0 = vmax.f32 %v2545_v56, %v2546_v60 }
 0x453   : > { %v2530_v1 = vmax.f32 %v2528_v52, %v2529_v61  ;;  %v2564_v2 = vmax.f32 %v2562_v53, %v2563_v62 }
 0x454   : > { %v2514_v3 = vpack.i.bf16 %v2513_v63, %v2513_v63  ;;  %v2548_v4 = vpack.i.bf16 %v2547_v0, %v2547_v0 }
 0x455   : > { %v2531_v5 = vpack.i.bf16 %v2530_v1, %v2530_v1  ;;  %v2565_v6 = vpack.i.bf16 %v2564_v2, %v2564_v2 }
 0x456   : > { %v2570_v9 = vunpack.c.l.bf16 %v2514_v3  ;;  %v2572_v42 = vunpack.c.l.bf16 %v2548_v4 }
 0x457   : > { %v2571_v7 = vunpack.c.l.bf16 %v2531_v5  ;;  %v2573_v8 = vunpack.c.l.bf16 %v2565_v6 }
 0x459   : > { %v2588_v11 = vcombine.low %v2570_v9, %v2571_v7  ;;  %v2589_v35 = vcombine.low %v2572_v42, %v2573_v8 }
 0x45b   : > { %v2610_v12 = vrot.slane %v2588_v11, %v3982_v14  ;;  %v2617_v10 = vrot.slane %v2589_v35, %v3982_v14 }
 0x45d   : > { %v2619_v45 = vcombine.low %v2610_v12, %v2617_v10 }
 0x45f   : > { %v2633_v18 = vrot.slane %v2619_v45, %v3982_v14 }
 0x461   : > { %v2634_v33 = vcombine.low %v2626_v17, %v2633_v18 }
 0x463   : > { %2636 = vst [vmem:[%s403_s30] sm:$0xff] %v2634_v33 }
 0x464   : > { %3368 = shalt.err (!%p3365_p12)
}
 0x465   : > { %s3369_s29 = scalar_lea.hbm %s4197_s21, 128  ;;  %s3373_s30 = scalar_lea.hbm %s4255_s10, 256 }
 0x466   : > { %p3370_p0 = scmp.ne.s32.totalorder %s4197_s21, %s3369_s29  ;;  %p3374_p8 = scmp.lt.u32.totalorder %s4197_s21, %s4255_s10 }
 0x467   : > { %p3375_p11 = scmp.lt.u32.totalorder %s3373_s30, %s3369_s29  ;;  %p3377_p1 = scmp.lt.u32.totalorder %s3369_s29, %s4197_s21 }
 0x468   : > { %p3371_p2 = pnand %p3370_p0, %p4271_p10 }
 0x469   : > { %p3376_p13 = por %p3375_p11, %p3374_p8 }
 0x46a   : > { %p3372_p4 = pneg %p3371_p2 }
 0x46b   : > { %p3378_p3 = por %p3377_p1, %p3376_p13 }
 0x46d   : > { %p3379_p5 = pnand %p3378_p3, %p3372_p4 }
 0x46f   : > { %3382 = shalt.err (!%p3379_p5)
}
 0x470   : > { %3217 = dma.vmem_to_hbm [thread:$0]  (%p4271_p10), %s4199_s20, 128, %s4197_s21, %s2708_s16  }
 0x471 PF: > { %p3233_p6 = scmp.ge.s32.totalorder %s3441_s18, 2  ;;  %s2753_s28 = sand.u32 1, %s3421_s13  }
 0x472   : > { %p4272_p7 = scmp.ne.s32.totalorder %s4265_s25, 0  ;;  %s2754_s22 = scalar_lea.sflag [#allocation4], %s2753_s28 }
 0x474   : > { %p3225_p9 = pnand %p3233_p6, %p4272_p7 }
 0x476   : > { %3412 = dma.done.wait (!%p3225_p9), %s2754_s22, 8192  }
 0x477   : > { %3414 = vsyncadd (!%p3225_p9), %s2754_s22, 4294959104  ;;  %s2763_s27 = scalar_lea.sflag [#allocation7], %s2753_s28 }
 0x478   : > { %3416 = dma.done.wait (!%p3225_p9), %s2763_s27, 128  }
 0x479   : > { %3418 = vsyncadd (!%p3225_p9), %s2763_s27, 4294967168  ;;  %s28_s18 = sadd.s32 1, %s3441_s18   ;;  %s4273_s16 = sld [smem:[#allocation11_spill]] }
 0x47a   : > { %p25_p12 = scmp.ge.s32.totalorder %s28_s18, 4   ;;  %s4274_s17 = sld [smem:[#allocation12_spill]] }
 0x47b   : > { %s4275_s13 = smov %s3425_s14  ;;  %s4276_s14 = smov %s3429_s15 }
 0x47c   : > { %s4277_s15 = smov %s3561_s26  ;;  %27 = sbr.rel (!%p25_p12) target bundleno = 7 (0x7), region = 121 }
 0x483   :  { %2768 = vsyncpa [#allocation3], 1 }
 0x484   :  { %2770 = vsyncpa [#allocation3 + $0x1], 1 }
 0x485   :  { %2771 = vsyncpa [#allocation4], 1 }
 0x486   :  { %2773 = vsyncpa [#allocation4 + $0x1], 1 }
 0x487   :  { %2774 = vsyncpa [#allocation7], 1 }
 0x488   :  { %2776 = vsyncpa [#allocation7 + $0x1], 1 }

// kernel: tpu_custom_call.1
= control target key start
LH: loop header
LB: loop body
LE: loop exit
PB: predicated region body
PF: predicated region fallthrough
CT: control target
= control target key end

     0   :  { %16 = vsyncpa [#allocation3], 0  ;;  %s4245_s0 = inlined_call_operand.vmem [shape: f32[2,128,9], index: 0, kind: input, shape index: {}]   ;;  %s4246_s1 = inlined_call_operand.vmem [shape: bf16[9,64], index: 1, kind: input, shape index: {}]   ;;  %s4247_s2 = inlined_call_operand.vmem [shape: f32[1,64], index: 2, kind: input, shape index: {}]   ;;  %s4248_s3 = inlined_call_operand.vmem [shape: bf16[64,64], index: 3, kind: input, shape index: {}]   ;;  %s4249_s4 = inlined_call_operand.vmem [shape: f32[1,64], index: 4, kind: input, shape index: {}]   ;;  %s4250_s5 = inlined_call_operand.vmem [shape: bf16[64,128], index: 5, kind: input, shape index: {}]   ;;  %s4251_s6 = inlined_call_operand.vmem [shape: f32[1,128], index: 6, kind: input, shape index: {}]   ;;  %s4252_s7 = inlined_call_operand.hbm [shape: bf16[128,1024], index: 7, kind: input, shape index: {}]   ;;  %s4253_s8 = inlined_call_operand.vmem [shape: f32[1,1024], index: 8, kind: input, shape index: {}]   ;;  %s4254_s9 = inlined_call_operand.hbm [shape: bf16[2,128,1024], index: 9, kind: output, shape index: {0}]   ;;  %s4255_s10 = inlined_call_operand.hbm [shape: f32[2,1,1024], index: 10, kind: output, shape index: {1}]  }
   0x1   :  { %17 = vsyncpa [#allocation4], 0 }
   0x2   :  { %19 = vsyncpa [#allocation4 + $0x1], 0 }
   0x3   :  { %20 = vsyncpa [#allocation7], 0 }
   0x4   :  { %22 = vsyncpa [#allocation7 + $0x1], 0  ;;  %s3508_s13 = smov 0   ;;  %s3510_s14 = smov 0  }
   0x5   :  { %s3512_s15 = smov 0   ;;  %s3514_s16 = smov 0  }
   0x6   :  { %s3516_s17 = smov 0   ;;  %s3518_s18 = smov 0  }
   0x7 LB: > { %4262 = sst [smem:[#allocation11_spill]] %s3437_s17  ;;  %s2861_s19 = sadd.s32 4294967295, %s3441_s18   ;;  %s3441_s18 = sphi %s3518_s18, %s28_s18   ;;  %s3437_s17 = sphi %s3516_s17, %s4274_s17   ;;  %s3433_s16 = sphi %s3514_s16, %s4273_s16   ;;  %s3429_s15 = sphi %s3512_s15, %s4277_s15   ;;  %s3425_s14 = sphi %s3510_s14, %s4276_s14   ;;  %s3421_s13 = sphi %s3508_s13, %s4275_s13  }
   0x8   : > { %s2862_s20 = sadd.s32 4294967294, %s3441_s18   ;;  %s40_s21 = sadd.s32 1, %s3437_s17 }
   0x9   : > { %s245_s22 = sadd.s32 1, %s3429_s15  ;;  %p42_p0 = scmp.ge.s32.totalorder %s40_s21, 2 }
   0xa   : > { %p255_p1 = scmp.ne.s32.totalorder %s3429_s15, %s3425_s14  ;;  %p256_p2 = scmp.eq.s32.totalorder %s2861_s19, 1 }
   0xb   : > { %p261_p3 = scmp.ne.s32.totalorder %s3425_s14, %s3421_s13  ;;  %s4279_s21 = smov (%p42_p0, %s40_s21), 0 }
   0xc   : > { %4263 = sst [smem:[#allocation12_spill]] %s4279_s21  ;;  %p3548_p4 = por %p256_p2, %p255_p1 }
   0xd   : > { %p262_p5 = scmp.eq.s32.totalorder %s2862_s20, 1  ;;  %s240_s24 = ssub.s32 %s3437_s17, %s4279_s21 }
   0xe   : > { %s4264_s23 = scalar_select %p3548_p4, 1, 0 }
   0xf   : > { %p2863_p6 = scmp.ge.s32.totalorder %s3441_s18, 1  ;;  %p243_p7 = scmp.eq.s32.totalorder %s240_s24, 0 }
  0x10   : > { %p3555_p8 = por %p262_p5, %p261_p3  ;;  %p295_p9 = scmp.lt.s32.totalorder %s3441_s18, 3 }
  0x11   : > { %s3561_s26 = scalar_select %p243_p7, %s3429_s15, %s245_s22  }
  0x12   : > { %s4265_s25 = scalar_select %p3555_p8, 1, 0 }
  0x13   : > { %p3563_p10 = pnand %p2863_p6, %p295_p9  ;;  %p3567_p11 = scmp.eq.s32.totalorder %s2861_s19, 0 }
  0x14   : > { %s3443_s29 = smov [#allocation2]   ;;  %s3299_s22 = scalar_lea.hbm %s4252_s7, 8192 }
  0x15   : > { %s4266_s27 = scalar_select %p3563_p10, 1, 0 }
  0x16   : > { %s4267_s28 = scalar_select %p3567_p11, 1, 0 }
  0x17   : > { %p3220_p12 = pneg %p3563_p10  ;;  %s325_s30 = sshll.u32 %s3443_s29, 4  ;;  %s326_s30 = int_to_ptr.vmem [resolvable:$true] %s325_s30 }
  0x18   : > { %p3300_p0 = scmp.ne.s32.totalorder %s4252_s7, %s3299_s22  ;;  %p3306_p5 = scmp.lt.u32.totalorder %s3299_s22, %s4252_s7 }
  0x19   : > { %p3575_p13 = pnand %p3567_p11, %p3220_p12 }
  0x1b   : > { %p3301_p1 = pneg %p3575_p13 }
  0x1d   : > { %p3302_p2 = pnand %p3301_p1, %p3300_p0 }
  0x1f   : > { %p3303_p3 = pneg %p3302_p2 }
  0x21   : > { %p3308_p6 = pnand %p3306_p5, %p3303_p3 }
  0x23   : > { %3311 = shalt.err (!%p3308_p6)
}
  0x24   : > { %s3312_s17 = scalar_lea.vmem %s326_s30, 8192  ;;  %p3320_p8 = scmp.lt.s32.totalorder %s326_s30, %s326_s30 }
  0x25   : > { %p3313_p7 = scmp.ne.s32.totalorder %s326_s30, %s3312_s17  ;;  %p3321_p4 = scmp.lt.s32.totalorder %s3312_s17, %s3312_s17 }
  0x27   : > { %p3315_p9 = pnand %p3313_p7, %p3301_p1  ;;  %p3322_p11 = por %p3321_p4, %p3320_p8 }
  0x29   : > { %p3316_p12 = pneg %p3315_p9 }
  0x2b   : > { %p3323_p10 = pnand %p3322_p11, %p3316_p12 }
  0x2d   : > { %3326 = shalt.err (!%p3323_p10)
}
  0x2e   : > { %s3444_s12 = smov 512   ;;  %s3445_s20 = smov 32  }
  0x2f   : > { %3223 = dma.hbm_to_vmem [thread:$0]  (!%p3575_p13), %s4252_s7, 8192, %s326_s30, [#allocation3], %s3444_s12, %s3444_s12, %s3445_s20  }
  0x30   : > { %p4269_p0 = scmp.ne.s32.totalorder %s4266_s27, 0 }
  0x31   : > { %p4270_p2 = scmp.ne.s32.totalorder (!%p4269_p0), %s4267_s28, 0 }
  0x32   : > { %357 = sbr.rel (%p4269_p0) target bundleno = 1137 (0x471), region = 56 }
  0x39   : > { %3408 = dma.done.wait (%p4270_p2), [#allocation3], 8192  }
  0x3a   : > { %3410 = vsyncadd (%p4270_p2), [#allocation3], 4294959104  ;;  %vm479_vm0 = vcmask 1043456   ;;  %p405_p4 = scmp.lt.s32.totalorder %s3433_s16, 1  ;;  %vm480_vm1 = vcmask 1044480   ;;  %v3446_v0 = vmov 65535  }
  0x3b   : > { %v481_v1 = vsel %vm479_vm0, 4294967295, %v3446_v0  ;;  %v3290_v3 = vld [vmem:[%s4246_s1] sm:$0x1f]   ;;  %vm454_vm2 = vcmask 72704   ;;  %v3292_v28 = vld [vmem:[%s4248_s3 + $0x8] sm:$0xff]   ;;  %v3293_v31 = vld [vmem:[%s4248_s3 + $0x10] sm:$0xff]  }
  0x3c   : > { %s406_s17 = scalar_select %p405_p4, %s3433_s16, 1  ;;  %v482_v2 = vsel %vm480_vm1, %v481_v1, 0  ;;  %v3291_v25 = vld [vmem:[%s4248_s3] sm:$0xff]   ;;  %v3294_v32 = vld [vmem:[%s4248_s3 + $0x18] sm:$0xff]   ;;  %v3296_v34 = vld [vmem:[%s4250_s5 + $0x8] sm:$0xff]   ;;  %vm646_vm3 = vcmask 523264  }
  0x3d   : > { %v484_v7 = vand.u32 %v3290_v3, %v482_v2  ;;  %v3295_v33 = vld [vmem:[%s4250_s5] sm:$0xff]   ;;  %s3829_s29 = sand.u32 1, %s3425_s14   ;;  %s3109_s19 = sshll.u32 %s3433_s16, 13 }
  0x3e   : > { %s3044_s21 = sshll.u32 %s406_s17, 7  ;;  %v2872_v35 = vld [vmem:[%s4247_s2] ss:$0 sm:$0xff]  ;;  %s2868_s12 = sshll.u32 %s3829_s29, 9 }
  0x3f   : > { %s3606_s27 = scalar_lea.vmem %s4245_s0, %s3044_s21  ;;  %3144 = vmatprep.subr.bf16.mxu0 %v484_v7  ;;  %3210 = vmatprep.subr.bf16.mxu1 %v484_v7  ;;  %s3844_s20 = scalar_lea.vmem [#allocation5], %s2868_s12 }
  0x40   : > { %v416_v4 = vld [vmem:[%s3606_s27] sm:$0xff]  ;;  %v417_v5 = vld [vmem:[%s3606_s27 + $0x8] sm:$0xff]  ;;  %v418_v6 = vld [vmem:[%s3606_s27 + $0x10] sm:$0xff]  ;;  %3145 = vmatpush3.bf16.msra.mxu0 %v484_v7  ;;  %3211 = vmatpush3.bf16.msra.mxu1 %v484_v7  ;;  %s2724_s24 = sshll.u32 %s3844_s20, 4  ;;  %s4153_s11 = scalar_lea.hbm %s4254_s9, %s3109_s19  ;;  %s4155_s24 = int_to_ptr.vmem [resolvable:$true] %s2724_s24 }
  0x41   : > { %v432_v8 = vpack.c.bf16 %v417_v5, %v416_v4  ;;  %v419_v9 = vld [vmem:[%s3606_s27 + $0x18] sm:$0xff]  ;;  %v420_v10 = vld [vmem:[%s3606_s27 + $0x20] sm:$0xff]  ;;  %v421_v11 = vld [vmem:[%s3606_s27 + $0x28] sm:$0xff]  ;;  %3162 = vmatprep.subr.bf16.mxu1 %v3291_v25  ;;  %3186 = vmatprep.subr.bf16.mxu0 %v3295_v33  ;;  %s2703_s30 = scalar_lea.sflag [#allocation4], %s3829_s29  ;;  %p4271_p10 = scmp.ne.s32.totalorder %s4264_s23, 0 }
  0x42   : > { %v424_v12 = vld [vmem:[%s3606_s27 + $0x40] sm:$0xff]  ;;  %v433_v13 = vpack.c.bf16 %v419_v9, %v418_v6  ;;  %v425_v14 = vld [vmem:[%s3606_s27 + $0x48] sm:$0xff]  ;;  %v426_v15 = vld [vmem:[%s3606_s27 + $0x50] sm:$0xff]  ;;  %v434_v17 = vpack.c.bf16 %v421_v11, %v420_v10  ;;  %s3449_s28 = smov [#allocation5]  }
  0x43   : > { %3146 = vmatprep.mubr.msk.bf16.mxu0 %vm454_vm2, %v432_v8  ;;  %v427_v16 = vld [vmem:[%s3606_s27 + $0x58] sm:$0xff]  ;;  %v436_v18 = vpack.c.bf16 %v425_v14, %v424_v12  ;;  %v428_v20 = vld [vmem:[%s3606_s27 + $0x60] sm:$0xff]  ;;  %v429_v21 = vld [vmem:[%s3606_s27 + $0x68] sm:$0xff]  ;;  %s3331_s22 = sshll.u32 %s3449_s28, 4  ;;  %s3332_s22 = int_to_ptr.vmem [resolvable:$false] %s3331_s22 }
  0x44   : > { %v437_v19 = vpack.c.bf16 %v427_v16, %v426_v15  ;;  %v438_v22 = vpack.c.bf16 %v429_v21, %v428_v20  ;;  %v422_v23 = vld [vmem:[%s3606_s27 + $0x30] sm:$0xff]  ;;  %v423_v24 = vld [vmem:[%s3606_s27 + $0x38] sm:$0xff]  ;;  %3147 = vmatmul.mubr.msk.bf16.vlgmr.msra.gmra.mrb[0].mxu0 %vm454_vm2, %v433_v13  ;;  %s3333_s12 = scalar_lea.vmem %s3332_s22, 16384  ;;  %p3334_p1 = scmp.lt.s32.totalorder %s4155_s24, %s3332_s22 }
  0x45   : > { %3154 = vmatprep.mubr.msk.bf16.mxu1 %vm454_vm2, %v436_v18  ;;  %v430_v26 = vld [vmem:[%s3606_s27 + $0x70] sm:$0xff]  ;;  %v431_v27 = vld [vmem:[%s3606_s27 + $0x78] sm:$0xff]  ;;  %3150 = vmatprep.mubr.msk.bf16.mxu0 %vm454_vm2, %v434_v17  ;;  %v435_v29 = vpack.c.bf16 %v423_v24, %v422_v23  ;;  %s3327_s27 = scalar_lea.vmem %s4155_s24, 8192 }
  0x46   : > { %3155 = vmatmul.mubr.msk.bf16.vlgmr.msra.gmra.mrb[0].mxu1 %vm454_vm2, %v437_v19  ;;  %v439_v30 = vpack.c.bf16 %v431_v27, %v430_v26  ;;  %3187 = vmatpush3.bf16.msra.mxu0 %v3295_v33  ;;  %p3328_p8 = scmp.ne.s32.totalorder %s4155_s24, %s3327_s27  ;;  %p3335_p3 = scmp.lt.s32.totalorder %s3333_s12, %s3327_s27 }
  0x47   : > { %3158 = vmatprep.mubr.msk.bf16.mxu1 %vm454_vm2, %v438_v22  ;;  %3163 = vmatpush3.bf16.msra.mxu1 %v3291_v25 }
  0x48   : > { %3164 = vmatprep.subr.bf16.mxu1 %v3292_v28  ;;  %3188 = vmatprep.subr.bf16.mxu0 %v3296_v34  ;;  %p3329_p11 = pnand %p3328_p8, %p4271_p10  ;;  %p3336_p5 = por %p3335_p3, %p3334_p1 }
  0x4a   : > { %3189 = vmatpush3.bf16.msra.mxu0 %v3296_v34  ;;  %p3330_p13 = pneg %p3329_p11 }
  0x4b   : > { %3165 = vmatpush3.bf16.msra.mxu1 %v3292_v28  ;;  %v3297_v28 = vld [vmem:[%s4250_s5 + $0x10] sm:$0xff]  }
  0x4c   : > { %3151 = vmatmul.mubr.msk.bf16.gmra.mrb[4].mxu0 %vm454_vm2, %v435_v29  ;;  %3166 = vmatprep.subr.bf16.mxu1 %v3293_v31  ;;  %v3298_v29 = vld [vmem:[%s4250_s5 + $0x18] sm:$0xff]   ;;  %p3337_p6 = pnand %p3336_p5, %p3330_p13 }
  0x4d   : > { %3190 = vmatprep.subr.bf16.mxu0 %v3297_v28 }
  0x4e   : > { %3159 = vmatmul.mubr.msk.bf16.gmra.mrb[4].mxu1 %vm454_vm2, %v439_v30  ;;  %3191 = vmatpush3.bf16.msra.mxu0 %v3297_v28  ;;  %v976_v30 = vld [vmem:[#allocation2] sm:$0xff]  ;;  %v1001_v28 = vld [vmem:[#allocation2 + $0xc8] sm:$0xff] }
  0x4f   : > { %3167 = vmatpush3.bf16.msra.mxu1 %v3293_v31  ;;  %3192 = vmatprep.subr.bf16.mxu0 %v3298_v29  ;;  %v980_v31 = vld [vmem:[#allocation2 + $0x20] sm:$0xff] }
  0x50   : > { %3168 = vmatprep.subr.bf16.mxu1 %v3294_v32  ;;  %v2908_v33 = vcombine.low %v976_v30, %v980_v31  ;;  %v2909_v34 = vcombine.high %v976_v30, %v980_v31 }
  0x52   : > { %3193 = vmatpush3.bf16.msra.mxu0 %v3298_v29  ;;  %v1005_v29 = vld [vmem:[#allocation2 + $0xe8] sm:$0xff] }
  0x53   : > { %3169 = vmatpush3.bf16.msra.mxu1 %v3294_v32  ;;  %v3670_v32 = vld [vmem:[#allocation2 + $0x8] sm:$0xff] }
  0x54   : > { %1402 = vmatprep.subr.bf16.mxu1 %v2909_v34 }
 0x117   : > { %v3148_v36 = vpop.f32.mrb[0].mxu0 }
 0x118   : > { %v529_v37 = vadd.f32 %v3148_v36, %v2872_v35  ;;  %v520_v38 = vpop.f32.mrb[1].mxu0  ;;  %v984_v36 = vld [vmem:[#allocation2 + $0x40] sm:$0xff] }
 0x119   : > { %v3156_v39 = vpop.f32.mrb[0].mxu1  ;;  %v521_v40 = vadd.f32 %v2872_v35, %v520_v38  ;;  %v3149_v41 = vpop.f32.mrb[2].mxu0 }
 0x11a   : > { %v561_v42 = vadd.f32 %v3156_v39, %v2872_v35  ;;  %v552_v43 = vpop.f32.mrb[1].mxu1  ;;  %v532_v44 = vadd.f32 %v3149_v41, %v2872_v35  ;;  %v523_v45 = vpop.f32.mrb[3].mxu0  ;;  %v585_v52 = vmax.f32 %v529_v37, 0.0  ;;  %v988_v37 = vld [vmem:[#allocation2 + $0x60] sm:$0xff] }
 0x11b   : > { %v553_v46 = vadd.f32 %v2872_v35, %v552_v43  ;;  %v3157_v47 = vpop.f32.mrb[2].mxu1  ;;  %v524_v48 = vadd.f32 %v2872_v35, %v523_v45  ;;  %v583_v56 = vmax.f32 %v521_v40, 0.0  ;;  %v2917_v40 = vcombine.high %v984_v36, %v988_v37  ;;  %v992_v41 = vld [vmem:[#allocation2 + $0x80] sm:$0xff] }
 0x11c   : > { %v593_v49 = vmax.f32 %v561_v42, 0.0  ;;  %v564_v50 = vadd.f32 %v3157_v47, %v2872_v35  ;;  %v555_v51 = vpop.f32.mrb[3].mxu1  ;;  %v586_v53 = vmax.f32 %v532_v44, 0.0  ;;  %v996_v42 = vld [vmem:[#allocation2 + $0xa0] sm:$0xff]  ;;  %v2916_v43 = vcombine.low %v984_v36, %v988_v37 }
 0x11d   : > { %v591_v54 = vmax.f32 %v553_v46, 0.0  ;;  %v556_v55 = vadd.f32 %v2872_v35, %v555_v51  ;;  %v584_v57 = vmax.f32 %v524_v48, 0.0  ;;  %v2925_v44 = vcombine.high %v992_v41, %v996_v42  ;;  %v1000_v45 = vld [vmem:[#allocation2 + $0xc0] sm:$0xff] }
 0x11e   : > { %v594_v58 = vmax.f32 %v564_v50, 0.0  ;;  %v600_v59 = vpack.c.bf16 %v586_v53, %v585_v52  ;;  %v1004_v46 = vld [vmem:[#allocation2 + $0xe0] sm:$0xff]  ;;  %v2924_v47 = vcombine.low %v992_v41, %v996_v42 }
 0x11f   : > { %v592_v60 = vmax.f32 %v556_v55, 0.0  ;;  %v599_v61 = vpack.c.bf16 %v584_v57, %v583_v56  ;;  %v3152_v62 = vpop.f32.mrb[4].mxu0  ;;  %v2933_v48 = vcombine.high %v1000_v45, %v1004_v46  ;;  %v1012_v50 = vld [vmem:[#allocation2 + $0x120] sm:$0xff]  ;;  %v2932_v51 = vcombine.low %v1000_v45, %v1004_v46 }
 0x120   : > { %v604_v63 = vpack.c.bf16 %v594_v58, %v593_v49  ;;  %v545_v0 = vadd.f32 %v3152_v62, %v2872_v35  ;;  %v536_v1 = vpop.f32.mrb[5].mxu0  ;;  %v1008_v49 = vld [vmem:[#allocation2 + $0x100] sm:$0xff]  ;;  %v2934_v46 = vcombine.low %v1001_v28, %v1005_v29 }
 0x121   : > { %v603_v2 = vpack.c.bf16 %v592_v60, %v591_v54  ;;  %v3160_v3 = vpop.f32.mrb[4].mxu1  ;;  %v537_v4 = vadd.f32 %v2872_v35, %v536_v1  ;;  %v3153_v5 = vpop.f32.mrb[6].mxu0  ;;  %3170 = vmatprep.mubr.msk.bf16.mxu1 %vm646_vm3, %v599_v61  ;;  %v2941_v52 = vcombine.high %v1008_v49, %v1012_v50  ;;  %v1016_v53 = vld [vmem:[#allocation2 + $0x140] sm:$0xff]  ;;  %v2940_v55 = vcombine.low %v1008_v49, %v1012_v50  ;;  %v1017_v50 = vld [vmem:[#allocation2 + $0x148] sm:$0xff] }
 0x122   : > { %v577_v6 = vadd.f32 %v3160_v3, %v2872_v35  ;;  %v568_v7 = vpop.f32.mrb[5].mxu1  ;;  %v589_v8 = vmax.f32 %v545_v0, 0.0  ;;  %v548_v9 = vadd.f32 %v3153_v5, %v2872_v35  ;;  %v539_v10 = vpop.f32.mrb[7].mxu0  ;;  %3171 = vmatmul.mubr.msk.bf16.vlgmr.msra.gmra.mrb[8].mxu1 %vm646_vm3, %v600_v59  ;;  %v1020_v54 = vld [vmem:[#allocation2 + $0x160] sm:$0xff] }
 0x123   : > { %v569_v11 = vadd.f32 %v2872_v35, %v568_v7  ;;  %v3161_v12 = vpop.f32.mrb[6].mxu1  ;;  %v587_v13 = vmax.f32 %v537_v4, 0.0  ;;  %v540_v14 = vadd.f32 %v2872_v35, %v539_v10  ;;  %1403 = vmatpush1.bf16.msra.mxu1 %v2908_v33  ;;  %v2949_v56 = vcombine.high %v1016_v53, %v1020_v54  ;;  %v3681_v58 = vld [vmem:[%s4249_s4] ss:$0 sm:$0xff]  ;;  %v985_v7 = vld [vmem:[#allocation2 + $0x48] sm:$0xff] }
 0x124   : > { %v597_v15 = vmax.f32 %v577_v6, 0.0  ;;  %v580_v16 = vadd.f32 %v3161_v12, %v2872_v35  ;;  %v571_v17 = vpop.f32.mrb[7].mxu1  ;;  %v590_v18 = vmax.f32 %v548_v9, 0.0  ;;  %1404 = vmatprep.subr.bf16.mxu1 %v2917_v40  ;;  %v2948_v57 = vcombine.low %v1016_v53, %v1020_v54  ;;  %v1013_v40 = vld [vmem:[#allocation2 + $0x128] sm:$0xff] }
 0x125   : > { %v595_v19 = vmax.f32 %v569_v11, 0.0  ;;  %v572_v20 = vadd.f32 %v2872_v35, %v571_v17  ;;  %v588_v21 = vmax.f32 %v540_v14, 0.0  ;;  %v3672_v35 = vld [vmem:[#allocation2 + $0x28] sm:$0xff] }
 0x126   : > { %v598_v22 = vmax.f32 %v580_v16, 0.0  ;;  %v602_v23 = vpack.c.bf16 %v590_v18, %v589_v8  ;;  %v2910_v38 = vcombine.low %v3670_v32, %v3672_v35  ;;  %v2911_v39 = vcombine.high %v3670_v32, %v3672_v35  ;;  %v989_v8 = vld [vmem:[#allocation2 + $0x68] sm:$0xff] }
 0x127   : > { %v596_v24 = vmax.f32 %v572_v20, 0.0  ;;  %v601_v25 = vpack.c.bf16 %v588_v21, %v587_v13  ;;  %1405 = vmatpush1.bf16.msra.mxu1 %v2916_v43  ;;  %v2919_v14 = vcombine.high %v985_v7, %v989_v8  ;;  %v993_v17 = vld [vmem:[#allocation2 + $0x88] sm:$0xff] }
 0x128   : > { %v606_v26 = vpack.c.bf16 %v598_v22, %v597_v15  ;;  %1515 = vmatprep.subr.bf16.mxu0 %v2911_v39  ;;  %1406 = vmatprep.subr.bf16.mxu1 %v2925_v44  ;;  %v997_v18 = vld [vmem:[#allocation2 + $0xa8] sm:$0xff]  ;;  %v2935_v39 = vcombine.high %v1001_v28, %v1005_v29  ;;  %v983_v29 = vld [vmem:[#allocation2 + $0x38] sm:$0xff] }
 0x129   : > { %v605_v27 = vpack.c.bf16 %v596_v24, %v595_v19  ;;  %3174 = vmatprep.mubr.msk.bf16.mxu1 %vm646_vm3, %v601_v25  ;;  %v2918_v24 = vcombine.low %v985_v7, %v989_v8  ;;  %v2926_v34 = vcombine.low %v993_v17, %v997_v18  ;;  %v1024_v8 = vld [vmem:[#allocation2 + $0x180] sm:$0xff] }
 0x12a   : > { %3175 = vmatmul.mubr.msk.bf16.gmra.mrb[12].mxu1 %vm646_vm3, %v602_v23 }
 0x12b   : > { %3178 = vmatprep.mubr.msk.bf16.mxu1 %vm646_vm3, %v603_v2  ;;  %1407 = vmatpush1.bf16.msra.mxu1 %v2924_v47 }
 0x12c   : > { %1408 = vmatprep.subr.bf16.mxu1 %v2933_v48 }
 0x12f   : > { %1409 = vmatpush1.bf16.msra.mxu1 %v2932_v51  ;;  %v1021_v51 = vld [vmem:[#allocation2 + $0x168] sm:$0xff] }
 0x130   : > { %1410 = vmatprep.subr.bf16.mxu1 %v2941_v52 }
 0x132   : > { %3179 = vmatmul.mubr.msk.bf16.gmra.mrb[16].mxu1 %vm646_vm3, %v604_v63 }
 0x133   : > { %3182 = vmatprep.mubr.msk.bf16.mxu1 %vm646_vm3, %v605_v27  ;;  %1411 = vmatpush1.bf16.msra.mxu1 %v2940_v55 }
 0x134   : > { %1412 = vmatprep.subr.bf16.mxu1 %v2949_v56 }
 0x137   : > { %1413 = vmatpush1.bf16.msra.mxu1 %v2948_v57 }
 0x13a   : > { %3183 = vmatmul.mubr.msk.bf16.gmra.mrb[20].mxu1 %vm646_vm3, %v606_v26  ;;  %v2927_v26 = vcombine.high %v993_v17, %v997_v18  ;;  %v1033_v17 = vld [vmem:[#allocation2 + $0x1c8] sm:$0xff] }
 0x1f5   : > { %v3172_v59 = vpop.f32.mrb[8].mxu1 }
 0x1f6   : > { %v714_v60 = vadd.f32 %v3172_v59, %v3681_v58  ;;  %v705_v61 = vpop.f32.mrb[9].mxu1  ;;  %v2951_v59 = vcombine.high %v1017_v50, %v1021_v51 }
 0x1f7   : > { %v706_v62 = vadd.f32 %v3681_v58, %v705_v61  ;;  %v3173_v63 = vpop.f32.mrb[10].mxu1 }
 0x1f8   : > { %v717_v0 = vadd.f32 %v3173_v63, %v3681_v58  ;;  %v708_v1 = vpop.f32.mrb[11].mxu1  ;;  %v770_v3 = vmax.f32 %v714_v60, 0.0 }
 0x1f9   : > { %v709_v2 = vadd.f32 %v3681_v58, %v708_v1  ;;  %v768_v5 = vmax.f32 %v706_v62, 0.0 }
 0x1fa   : > { %v771_v4 = vmax.f32 %v717_v0, 0.0 }
 0x1fb   : > { %v769_v6 = vmax.f32 %v709_v2, 0.0 }
 0x1fc   : > { %v785_v9 = vpack.c.bf16 %v771_v4, %v770_v3  ;;  %v2950_v3 = vcombine.low %v1017_v50, %v1021_v51 }
 0x1fd   : > { %v784_v10 = vpack.c.bf16 %v769_v6, %v768_v5  ;;  %v3176_v11 = vpop.f32.mrb[12].mxu1 }
 0x1fe   : > { %v730_v12 = vadd.f32 %v3176_v11, %v3681_v58  ;;  %v721_v13 = vpop.f32.mrb[13].mxu1 }
 0x1ff   : > { %v722_v15 = vadd.f32 %v3681_v58, %v721_v13  ;;  %v3177_v16 = vpop.f32.mrb[14].mxu1  ;;  %3194 = vmatprep.mubr.msk.bf16.mxu0 %vm646_vm3, %v784_v10  ;;  %v1025_v10 = vld [vmem:[#allocation2 + $0x188] sm:$0xff] }
 0x200   : > { %v774_v19 = vmax.f32 %v730_v12, 0.0  ;;  %v733_v20 = vadd.f32 %v3177_v16, %v3681_v58  ;;  %v724_v21 = vpop.f32.mrb[15].mxu1  ;;  %3195 = vmatmul.mubr.msk.bf16.vlgmr.msra.gmra.mrb[8].mxu0 %vm646_vm3, %v785_v9  ;;  %v1028_v9 = vld [vmem:[#allocation2 + $0x1a0] sm:$0xff]  ;;  %v1029_v12 = vld [vmem:[#allocation2 + $0x1a8] sm:$0xff] }
 0x201   : > { %v772_v22 = vmax.f32 %v722_v15, 0.0  ;;  %v725_v23 = vadd.f32 %v3681_v58, %v724_v21  ;;  %1516 = vmatpush1.bf16.msra.mxu0 %v2910_v38  ;;  %v1009_v38 = vld [vmem:[#allocation2 + $0x108] sm:$0xff]  ;;  %v2957_v11 = vcombine.high %v1024_v8, %v1028_v9  ;;  %v2956_v13 = vcombine.low %v1024_v8, %v1028_v9  ;;  %v1032_v15 = vld [vmem:[#allocation2 + $0x1c0] sm:$0xff]  ;;  %v1002_v8 = vld [vmem:[#allocation2 + $0xd0] sm:$0xff] }
 0x202   : > { %v775_v25 = vmax.f32 %v733_v20, 0.0  ;;  %1517 = vmatprep.subr.bf16.mxu0 %v2919_v14  ;;  %v2943_v48 = vcombine.high %v1009_v38, %v1013_v40  ;;  %v2942_v55 = vcombine.low %v1009_v38, %v1013_v40  ;;  %v2958_v14 = vcombine.low %v1025_v10, %v1029_v12  ;;  %v1036_v16 = vld [vmem:[#allocation2 + $0x1e0] sm:$0xff] }
 0x203   : > { %v773_v27 = vmax.f32 %v725_v23, 0.0  ;;  %1414 = vmatprep.subr.bf16.mxu1 %v2957_v11  ;;  %v2965_v18 = vcombine.high %v1032_v15, %v1036_v16  ;;  %v2964_v20 = vcombine.low %v1032_v15, %v1036_v16  ;;  %v3447_v23 = vmov 0   ;;  %v1006_v11 = vld [vmem:[#allocation2 + $0xf0] sm:$0xff] }
 0x204   : > { %v787_v30 = vpack.c.bf16 %v775_v25, %v774_v19  ;;  %1415 = vmatpush1.bf16.msra.mxu1 %v2956_v13  ;;  %v1037_v19 = vld [vmem:[#allocation2 + $0x1e8] sm:$0xff]  ;;  %1434 = vmatprep.mubr.bf16.mxu1 %v3447_v23  ;;  %v982_v25 = vld [vmem:[#allocation2 + $0x30] sm:$0xff]  ;;  %v1007_v13 = vld [vmem:[#allocation2 + $0xf8] sm:$0xff] }
 0x205   : > { %v786_v31 = vpack.c.bf16 %v773_v27, %v772_v22  ;;  %v3180_v33 = vpop.f32.mrb[16].mxu1  ;;  %1518 = vmatpush1.bf16.msra.mxu0 %v2918_v24  ;;  %v2966_v21 = vcombine.low %v1033_v17, %v1037_v19  ;;  %v2967_v22 = vcombine.high %v1033_v17, %v1037_v19  ;;  %1416 = vmatprep.subr.bf16.mxu1 %v2965_v18  ;;  %v978_v24 = vld [vmem:[#allocation2 + $0x10] sm:$0xff] }
 0x206   : > { %v746_v36 = vadd.f32 %v3180_v33, %v3681_v58  ;;  %v737_v37 = vpop.f32.mrb[17].mxu1  ;;  %1519 = vmatprep.subr.bf16.mxu0 %v2927_v26  ;;  %v979_v26 = vld [vmem:[#allocation2 + $0x18] sm:$0xff]  ;;  %v2912_v27 = vcombine.low %v978_v24, %v982_v25  ;;  %v2913_v28 = vcombine.high %v978_v24, %v982_v25  ;;  %v3715_v33 = vld [vmem:[%s4251_s6] ss:$0 sm:$0xff] }
 0x207   : > { %3198 = vmatprep.mubr.msk.bf16.mxu0 %vm646_vm3, %v786_v31  ;;  %v738_v32 = vadd.f32 %v3681_v58, %v737_v37  ;;  %v3181_v35 = vpop.f32.mrb[18].mxu1  ;;  %v2915_v31 = vcombine.high %v979_v26, %v983_v29 }
 0x208   : > { %3199 = vmatmul.mubr.msk.bf16.gmra.mrb[12].mxu0 %vm646_vm3, %v787_v30  ;;  %v778_v41 = vmax.f32 %v746_v36, 0.0  ;;  %v749_v42 = vadd.f32 %v3181_v35, %v3681_v58  ;;  %v740_v43 = vpop.f32.mrb[19].mxu1  ;;  %1417 = vmatpush1.bf16.msra.mxu1 %v2964_v20  ;;  %v2914_v30 = vcombine.low %v979_v26, %v983_v29  ;;  %v2937_v20 = vcombine.high %v1002_v8, %v1006_v11  ;;  %v1014_v26 = vld [vmem:[#allocation2 + $0x130] sm:$0xff] }
 0x209   : > { %v776_v44 = vmax.f32 %v738_v32, 0.0  ;;  %v741_v45 = vadd.f32 %v3681_v58, %v740_v43  ;;  %1520 = vmatpush1.bf16.msra.mxu0 %v2926_v34  ;;  %1628 = vmatprep.subr.bf16.mxu1 %v2913_v28  ;;  %v986_v43 = vld [vmem:[#allocation2 + $0x50] sm:$0xff]  ;;  %v1015_v28 = vld [vmem:[#allocation2 + $0x138] sm:$0xff] }
 0x20a   : > { %v779_v47 = vmax.f32 %v749_v42, 0.0  ;;  %1521 = vmatprep.subr.bf16.mxu0 %v2935_v39 }
 0x20b   : > { %v777_v49 = vmax.f32 %v741_v45, 0.0 }
 0x20c   : > { %v789_v52 = vpack.c.bf16 %v779_v47, %v778_v41  ;;  %v987_v47 = vld [vmem:[#allocation2 + $0x58] sm:$0xff] }
 0x20d   : > { %v788_v53 = vpack.c.bf16 %v777_v49, %v776_v44  ;;  %v3184_v54 = vpop.f32.mrb[20].mxu1  ;;  %1522 = vmatpush1.bf16.msra.mxu0 %v2934_v46  ;;  %v990_v46 = vld [vmem:[#allocation2 + $0x70] sm:$0xff] }
 0x20e   : > { %v762_v56 = vadd.f32 %v3184_v54, %v3681_v58  ;;  %v753_v57 = vpop.f32.mrb[21].mxu1  ;;  %1523 = vmatprep.subr.bf16.mxu0 %v2943_v48  ;;  %v991_v48 = vld [vmem:[#allocation2 + $0x78] sm:$0xff] }
 0x20f   : > { %3202 = vmatprep.mubr.msk.bf16.mxu0 %vm646_vm3, %v788_v53  ;;  %v754_v60 = vadd.f32 %v3681_v58, %v753_v57  ;;  %v3185_v61 = vpop.f32.mrb[22].mxu1  ;;  %v998_v57 = vld [vmem:[#allocation2 + $0xb0] sm:$0xff] }
 0x210   : > { %3203 = vmatmul.mubr.msk.bf16.gmra.mrb[16].mxu0 %vm646_vm3, %v789_v52  ;;  %v782_v62 = vmax.f32 %v762_v56, 0.0  ;;  %v765_v63 = vadd.f32 %v3185_v61, %v3681_v58  ;;  %v756_v0 = vpop.f32.mrb[23].mxu1  ;;  %v994_v52 = vld [vmem:[#allocation2 + $0x90] sm:$0xff]  ;;  %v2923_v56 = vcombine.high %v987_v47, %v991_v48 }
 0x211   : > { %v780_v1 = vmax.f32 %v754_v60, 0.0  ;;  %v757_v2 = vadd.f32 %v3681_v58, %v756_v0  ;;  %1524 = vmatpush1.bf16.msra.mxu0 %v2942_v55  ;;  %v2959_v58 = vcombine.high %v1025_v10, %v1029_v12  ;;  %v2921_v55 = vcombine.high %v986_v43, %v990_v46  ;;  %v999_v60 = vld [vmem:[#allocation2 + $0xb8] sm:$0xff] }
 0x212   : > { %v783_v4 = vmax.f32 %v765_v63, 0.0  ;;  %1525 = vmatprep.subr.bf16.mxu0 %v2951_v59  ;;  %v995_v59 = vld [vmem:[#allocation2 + $0x98] sm:$0xff]  ;;  %v2928_v16 = vcombine.low %v994_v52, %v998_v57 }
 0x213   : > { %v781_v5 = vmax.f32 %v757_v2, 0.0  ;;  %v2922_v2 = vcombine.low %v987_v47, %v991_v48  ;;  %v1003_v12 = vld [vmem:[#allocation2 + $0xd8] sm:$0xff]  ;;  %v2930_v17 = vcombine.low %v995_v59, %v999_v60 }
 0x214   : > { %v791_v6 = vpack.c.bf16 %v783_v4, %v782_v62  ;;  %v2929_v4 = vcombine.high %v994_v52, %v998_v57 }
 0x215   : > { %v790_v7 = vpack.c.bf16 %v781_v5, %v780_v1  ;;  %1526 = vmatpush1.bf16.msra.mxu0 %v2950_v3  ;;  %v2920_v1 = vcombine.low %v986_v43, %v990_v46  ;;  %v2931_v5 = vcombine.high %v995_v59, %v999_v60  ;;  %v1019_v43 = vld [vmem:[#allocation2 + $0x158] sm:$0xff]  ;;  %v1030_v60 = vld [vmem:[#allocation2 + $0x1b0] sm:$0xff] }
 0x216   : > { %1527 = vmatprep.subr.bf16.mxu0 %v2959_v58 }
 0x217   : > { %3206 = vmatprep.mubr.msk.bf16.mxu0 %vm646_vm3, %v790_v7 }
 0x218   : > { %3207 = vmatmul.mubr.msk.bf16.gmra.mrb[20].mxu0 %vm646_vm3, %v791_v6 }
 0x219   : > { %1528 = vmatpush1.bf16.msra.mxu0 %v2958_v14  ;;  %1547 = vmatprep.mubr.bf16.mxu0 %v3447_v23 }
 0x21a   : > { %1529 = vmatprep.subr.bf16.mxu0 %v2967_v22  ;;  %v1010_v22 = vld [vmem:[#allocation2 + $0x110] sm:$0xff] }
 0x21b   : > { %v2944_v48 = vcombine.low %v1010_v22, %v1014_v26 }
 0x21d   : > { %1530 = vmatpush1.bf16.msra.mxu0 %v2966_v21  ;;  %v2939_v21 = vcombine.high %v1003_v12, %v1007_v13 }
 0x21e   : > { %1741 = vmatprep.subr.bf16.mxu0 %v2915_v31 }
 0x2d3   : > { %v3196_v34 = vpop.f32.mrb[8].mxu0 }
 0x2d4   : > { %v898_v36 = vadd.f32 %v3196_v34, %v3715_v33  ;;  %v889_v37 = vpop.f32.mrb[9].mxu0 }
 0x2d5   : > { %v890_v39 = vadd.f32 %v3715_v33, %v889_v37  ;;  %v3197_v32 = vpop.f32.mrb[10].mxu0  ;;  %v2936_v37 = vcombine.low %v1002_v8, %v1006_v11  ;;  %v1038_v11 = vld [vmem:[#allocation2 + $0x1f0] sm:$0xff] }
 0x2d6   : > { %v901_v35 = vadd.f32 %v3197_v32, %v3715_v33  ;;  %v892_v38 = vpop.f32.mrb[11].mxu0  ;;  %v954_v41 = vmax.f32 %v898_v36, 0.0 }
 0x2d7   : > { %v893_v40 = vadd.f32 %v3715_v33, %v892_v38  ;;  %v952_v44 = vmax.f32 %v890_v39, 0.0  ;;  %v2938_v39 = vcombine.low %v1003_v12, %v1007_v13  ;;  %v1035_v12 = vld [vmem:[#allocation2 + $0x1d8] sm:$0xff] }
 0x2d8   : > { %v955_v42 = vmax.f32 %v901_v35, 0.0  ;;  %v2945_v35 = vcombine.high %v1010_v22, %v1014_v26  ;;  %v1039_v13 = vld [vmem:[#allocation2 + $0x1f8] sm:$0xff]  ;;  %v3812_v22 = vld [vmem:[%s4253_s8] sm:$0xff] }
 0x2d9   : > { %v953_v45 = vmax.f32 %v893_v40, 0.0  ;;  %v1018_v40 = vld [vmem:[#allocation2 + $0x150] sm:$0xff] }
 0x2da   : > { %v3721_v49 = vpack.c.bf16 %v955_v42, %v954_v41  ;;  %v1022_v42 = vld [vmem:[#allocation2 + $0x170] sm:$0xff] }
 0x2db   : > { %v3723_v50 = vpack.c.bf16 %v953_v45, %v952_v44  ;;  %v3200_v51 = vpop.f32.mrb[12].mxu0  ;;  %v1023_v44 = vld [vmem:[#allocation2 + $0x178] sm:$0xff] }
 0x2dc   : > { %v914_v53 = vadd.f32 %v3200_v51, %v3715_v33  ;;  %v905_v54 = vpop.f32.mrb[13].mxu0 }
 0x2dd   : > { %v906_v61 = vadd.f32 %v3715_v33, %v905_v54  ;;  %v3201_v62 = vpop.f32.mrb[14].mxu0  ;;  %1435 = vmatmul.mubr.bf16.vlgmr.msra.gmra.mrb[24].mxu1 %v3723_v50  ;;  %1548 = vmatmul.mubr.bf16.vlgmr.msra.gmra.mrb[24].mxu0 %v3723_v50  ;;  %v2953_v54 = vcombine.high %v1018_v40, %v1022_v42 }
 0x2de   : > { %v917_v63 = vadd.f32 %v3201_v62, %v3715_v33  ;;  %1629 = vmatpush1.bf16.msra.mxu1 %v2912_v27  ;;  %1742 = vmatpush1.bf16.msra.mxu0 %v2914_v30  ;;  %v908_v0 = vpop.f32.mrb[15].mxu0  ;;  %v958_v6 = vmax.f32 %v914_v53, 0.0  ;;  %v1011_v27 = vld [vmem:[#allocation2 + $0x118] sm:$0xff] }
 0x2df   : > { %v909_v3 = vadd.f32 %v3715_v33, %v908_v0  ;;  %1444 = vmatprep.mubr.bf16.mxu1 %v3447_v23  ;;  %1557 = vmatprep.mubr.bf16.mxu0 %v3447_v23  ;;  %v956_v9 = vmax.f32 %v906_v61, 0.0  ;;  %v2947_v38 = vcombine.high %v1011_v27, %v1015_v28  ;;  %v2946_v51 = vcombine.low %v1011_v27, %v1015_v28  ;;  %v1027_v61 = vld [vmem:[#allocation2 + $0x198] sm:$0xff] }
 0x2e0   : > { %v959_v7 = vmax.f32 %v917_v63, 0.0  ;;  %1630 = vmatprep.subr.bf16.mxu1 %v2921_v55  ;;  %1743 = vmatprep.subr.bf16.mxu0 %v2923_v56  ;;  %v2955_v55 = vcombine.high %v1019_v43, %v1023_v44  ;;  %v1026_v56 = vld [vmem:[#allocation2 + $0x190] sm:$0xff]  ;;  %v1031_v62 = vld [vmem:[#allocation2 + $0x1b8] sm:$0xff] }
 0x2e1   : > { %v957_v10 = vmax.f32 %v909_v3, 0.0  ;;  %v2963_v8 = vcombine.high %v1027_v61, %v1031_v62 }
 0x2e2   : > { %v3733_v14 = vpack.c.bf16 %v959_v7, %v958_v6  ;;  %1631 = vmatpush1.bf16.msra.mxu1 %v2920_v1  ;;  %1744 = vmatpush1.bf16.msra.mxu0 %v2922_v2  ;;  %v2961_v7 = vcombine.high %v1026_v56, %v1030_v60 }
 0x2e3   : > { %v3735_v58 = vpack.c.bf16 %v957_v10, %v956_v9  ;;  %v3204_v15 = vpop.f32.mrb[16].mxu0  ;;  %1632 = vmatprep.subr.bf16.mxu1 %v2929_v4  ;;  %1745 = vmatprep.subr.bf16.mxu0 %v2931_v5  ;;  %v2952_v4 = vcombine.low %v1018_v40, %v1022_v42  ;;  %v2954_v5 = vcombine.low %v1019_v43, %v1023_v44  ;;  %v1034_v9 = vld [vmem:[#allocation2 + $0x1d0] sm:$0xff] }
 0x2e4   : > { %v930_v18 = vadd.f32 %v3204_v15, %v3715_v33  ;;  %v921_v19 = vpop.f32.mrb[17].mxu0 }
 0x2e5   : > { %1445 = vmatmul.mubr.bf16.gmra.mrb[28].mxu1 %v3721_v49  ;;  %1558 = vmatmul.mubr.bf16.gmra.mrb[28].mxu0 %v3721_v49  ;;  %v922_v24 = vadd.f32 %v3715_v33, %v921_v19  ;;  %v3205_v25 = vpop.f32.mrb[18].mxu0  ;;  %v2971_v19 = vcombine.high %v1035_v12, %v1039_v13 }
 0x2e6   : > { %v962_v29 = vmax.f32 %v930_v18, 0.0  ;;  %v933_v30 = vadd.f32 %v3205_v25, %v3715_v33  ;;  %v924_v31 = vpop.f32.mrb[19].mxu0  ;;  %1454 = vmatprep.mubr.bf16.mxu1 %v3447_v23  ;;  %1567 = vmatprep.mubr.bf16.mxu0 %v3447_v23  ;;  %v2969_v18 = vcombine.high %v1034_v9, %v1038_v11 }
 0x2e7   : > { %v960_v34 = vmax.f32 %v922_v24, 0.0  ;;  %v925_v36 = vadd.f32 %v3715_v33, %v924_v31  ;;  %1633 = vmatpush1.bf16.msra.mxu1 %v2928_v16  ;;  %1746 = vmatpush1.bf16.msra.mxu0 %v2930_v17  ;;  %v2962_v17 = vcombine.low %v1027_v61, %v1031_v62 }
 0x2e8   : > { %v963_v32 = vmax.f32 %v933_v30, 0.0  ;;  %1634 = vmatprep.subr.bf16.mxu1 %v2937_v20  ;;  %1747 = vmatprep.subr.bf16.mxu0 %v2939_v21  ;;  %v2968_v20 = vcombine.low %v1034_v9, %v1038_v11  ;;  %v2970_v21 = vcombine.low %v1035_v12, %v1039_v13 }
 0x2e9   : > { %v961_v41 = vmax.f32 %v925_v36, 0.0 }
 0x2ea   : > { %v3745_v45 = vpack.c.bf16 %v963_v32, %v962_v29 }
 0x2eb   : > { %v3747_v46 = vpack.c.bf16 %v961_v41, %v960_v34  ;;  %1635 = vmatpush1.bf16.msra.mxu1 %v2936_v37  ;;  %1748 = vmatpush1.bf16.msra.mxu0 %v2938_v39  ;;  %v3208_v47 = vpop.f32.mrb[20].mxu0 }
 0x2ec   : > { %v946_v52 = vadd.f32 %v3208_v47, %v3715_v33  ;;  %v937_v53 = vpop.f32.mrb[21].mxu0  ;;  %1636 = vmatprep.subr.bf16.mxu1 %v2945_v35  ;;  %1749 = vmatprep.subr.bf16.mxu0 %v2947_v38 }
 0x2ed   : > { %1455 = vmatmul.mubr.bf16.gmra.mrb[32].mxu1 %v3735_v58  ;;  %1568 = vmatmul.mubr.bf16.gmra.mrb[32].mxu0 %v3735_v58  ;;  %v938_v57 = vadd.f32 %v3715_v33, %v937_v53  ;;  %v3209_v59 = vpop.f32.mrb[22].mxu0 }
 0x2ee   : > { %1464 = vmatprep.mubr.bf16.mxu1 %v3447_v23  ;;  %1577 = vmatprep.mubr.bf16.mxu0 %v3447_v23  ;;  %v966_v63 = vmax.f32 %v946_v52, 0.0  ;;  %v949_v0 = vadd.f32 %v3209_v59, %v3715_v33  ;;  %v940_v1 = vpop.f32.mrb[23].mxu0 }
 0x2ef   : > { %v964_v2 = vmax.f32 %v938_v57, 0.0  ;;  %v941_v3 = vadd.f32 %v3715_v33, %v940_v1  ;;  %1637 = vmatpush1.bf16.msra.mxu1 %v2944_v48  ;;  %1750 = vmatpush1.bf16.msra.mxu0 %v2946_v51  ;;  %v2960_v33 = vcombine.low %v1026_v56, %v1030_v60 }
 0x2f0   : > { %v967_v6 = vmax.f32 %v949_v0, 0.0  ;;  %1638 = vmatprep.subr.bf16.mxu1 %v2953_v54  ;;  %1751 = vmatprep.subr.bf16.mxu0 %v2955_v55 }
 0x2f1   : > { %v965_v10 = vmax.f32 %v941_v3, 0.0 }
 0x2f2   : > { %v3757_v15 = vpack.c.bf16 %v967_v6, %v966_v63 }
 0x2f3   : > { %v974_v16 = vpack.c.bf16 %v965_v10, %v964_v2  ;;  %1639 = vmatpush1.bf16.msra.mxu1 %v2952_v4  ;;  %1752 = vmatpush1.bf16.msra.mxu0 %v2954_v5 }
 0x2f4   : > { %1640 = vmatprep.subr.bf16.mxu1 %v2961_v7  ;;  %1753 = vmatprep.subr.bf16.mxu0 %v2963_v8 }
 0x2f5   : > { %1465 = vmatmul.mubr.bf16.gmra.mrb[36].mxu1 %v3733_v14  ;;  %1578 = vmatmul.mubr.bf16.gmra.mrb[36].mxu0 %v3733_v14 }
 0x2f6   : > { %1474 = vmatprep.mubr.bf16.mxu1 %v3447_v23  ;;  %1587 = vmatprep.mubr.bf16.mxu0 %v3447_v23 }
 0x2f7   : > { %1641 = vmatpush1.bf16.msra.mxu1 %v2960_v33  ;;  %1754 = vmatpush1.bf16.msra.mxu0 %v2962_v17 }
 0x2f8   : > { %1642 = vmatprep.subr.bf16.mxu1 %v2969_v18  ;;  %1755 = vmatprep.subr.bf16.mxu0 %v2971_v19 }
 0x2fb   : > { %1643 = vmatpush1.bf16.msra.mxu1 %v2968_v20  ;;  %1756 = vmatpush1.bf16.msra.mxu0 %v2970_v21 }
 0x2fd   : > { %1475 = vmatmul.mubr.bf16.gmra.mrb[40].mxu1 %v3747_v46  ;;  %1588 = vmatmul.mubr.bf16.gmra.mrb[40].mxu0 %v3747_v46 }
 0x2fe   : > { %1484 = vmatprep.mubr.bf16.mxu1 %v3447_v23  ;;  %1597 = vmatprep.mubr.bf16.mxu0 %v3447_v23 }
 0x305   : > { %1485 = vmatmul.mubr.bf16.gmra.mrb[44].mxu1 %v3745_v45  ;;  %1598 = vmatmul.mubr.bf16.gmra.mrb[44].mxu0 %v3745_v45 }
 0x306   : > { %1494 = vmatprep.mubr.bf16.mxu1 %v3447_v23  ;;  %1607 = vmatprep.mubr.bf16.mxu0 %v3447_v23 }
 0x30d   : > { %1495 = vmatmul.mubr.bf16.gmra.mrb[48].mxu1 %v974_v16  ;;  %1608 = vmatmul.mubr.bf16.gmra.mrb[48].mxu0 %v974_v16 }
 0x30e   : > { %1504 = vmatprep.mubr.bf16.mxu1 %v3447_v23  ;;  %1617 = vmatprep.mubr.bf16.mxu0 %v3447_v23 }
 0x315   : > { %1505 = vmatmul.mubr.bf16.gmra.mrb[52].mxu1 %v3757_v15  ;;  %1618 = vmatmul.mubr.bf16.gmra.mrb[52].mxu0 %v3757_v15 }
 0x316   : > { %1660 = vmatprep.mubr.bf16.mxu1 %v3447_v23  ;;  %1773 = vmatprep.mubr.bf16.mxu0 %v3447_v23 }
 0x31d   : > { %1661 = vmatmul.mubr.bf16.vlgmr.msra.gmra.mrb[56].mxu1 %v3723_v50  ;;  %1774 = vmatmul.mubr.bf16.vlgmr.msra.gmra.mrb[56].mxu0 %v3723_v50 }
 0x31e   : > { %1670 = vmatprep.mubr.bf16.mxu1 %v3447_v23  ;;  %1783 = vmatprep.mubr.bf16.mxu0 %v3447_v23 }
 0x325   : > { %1671 = vmatmul.mubr.bf16.gmra.mrb[60].mxu1 %v3721_v49  ;;  %1784 = vmatmul.mubr.bf16.gmra.mrb[60].mxu0 %v3721_v49  ;;  %v1042_v49 = vlaneseq }
 0x326   : > { %1680 = vmatprep.mubr.bf16.mxu1 %v3447_v23  ;;  %1793 = vmatprep.mubr.bf16.mxu0 %v3447_v23 }
 0x327   : > { %v3805_v50 = vshrl.u32 %v1042_v49, 7 }
 0x329   : > { %v1048_v24 = vsub.s32 1, %v3805_v50 }
 0x32b   : > { %v3823_v27 = vrot.slane %v3812_v22, %v1048_v24 }
 0x32d   : > { %1681 = vmatmul.mubr.bf16.gmra.mrb[64].mxu1 %v3735_v58  ;;  %1794 = vmatmul.mubr.bf16.gmra.mrb[64].mxu0 %v3735_v58  ;;  %v1052_v58 = vsub.s32 2, %v3805_v50 }
 0x32e   : > { %1690 = vmatprep.mubr.bf16.mxu1 %v3447_v23  ;;  %1803 = vmatprep.mubr.bf16.mxu0 %v3447_v23 }
 0x32f   : > { %v3820_v26 = vrot.slane %v3812_v22, %v1052_v58 }
 0x335   : > { %1691 = vmatmul.mubr.bf16.gmra.mrb[68].mxu1 %v3733_v14  ;;  %1804 = vmatmul.mubr.bf16.gmra.mrb[68].mxu0 %v3733_v14  ;;  %v1044_v14 = vsub.s32 0, %v3805_v50 }
 0x336   : > { %1700 = vmatprep.mubr.bf16.mxu1 %v3447_v23  ;;  %1813 = vmatprep.mubr.bf16.mxu0 %v3447_v23 }
 0x337   : > { %v3817_v25 = vrot.slane %v3812_v22, %v1044_v14 }
 0x33d   : > { %1701 = vmatmul.mubr.bf16.gmra.mrb[72].mxu1 %v3747_v46  ;;  %1814 = vmatmul.mubr.bf16.gmra.mrb[72].mxu0 %v3747_v46 }
 0x33e   : > { %1710 = vmatprep.mubr.bf16.mxu1 %v3447_v23  ;;  %1823 = vmatprep.mubr.bf16.mxu0 %v3447_v23 }
 0x345   : > { %1711 = vmatmul.mubr.bf16.gmra.mrb[76].mxu1 %v3745_v45  ;;  %1824 = vmatmul.mubr.bf16.gmra.mrb[76].mxu0 %v3745_v45 }
 0x346   : > { %1720 = vmatprep.mubr.bf16.mxu1 %v3447_v23  ;;  %1833 = vmatprep.mubr.bf16.mxu0 %v3447_v23 }
 0x34d   : > { %1721 = vmatmul.mubr.bf16.gmra.mrb[80].mxu1 %v974_v16  ;;  %1834 = vmatmul.mubr.bf16.gmra.mrb[80].mxu0 %v974_v16 }
 0x34e   : > { %1730 = vmatprep.mubr.bf16.mxu1 %v3447_v23  ;;  %1843 = vmatprep.mubr.bf16.mxu0 %v3447_v23  ;;  %v1056_v23 = vsub.s32 3, %v3805_v50 }
 0x350   : > { %v3826_v28 = vrot.slane %v3812_v22, %v1056_v23 }
 0x355   : > { %1731 = vmatmul.mubr.bf16.gmra.mrb[84].mxu1 %v3757_v15  ;;  %1844 = vmatmul.mubr.bf16.gmra.mrb[84].mxu0 %v3757_v15 }
 0x3b0   : > { %v1436_v29 = vpop.f32.mrb[24].mxu1  ;;  %v1549_v30 = vpop.f32.mrb[24].mxu0 }
 0x3b1   : > { %v1437_v31 = vadd.f32 %v1436_v29, %v3817_v25  ;;  %v1550_v34 = vadd.f32 %v1549_v30, %v3820_v26  ;;  %v1438_v36 = vpop.f32.mrb[25].mxu1  ;;  %v1551_v37 = vpop.f32.mrb[25].mxu0 }
 0x3b2   : > { %v1439_v39 = vadd.f32 %v1438_v36, %v3823_v27  ;;  %v1552_v32 = vadd.f32 %v1551_v37, %v3826_v28  ;;  %v1440_v35 = vpop.f32.mrb[26].mxu1  ;;  %v1553_v38 = vpop.f32.mrb[26].mxu0 }
 0x3b3   : > { %v1854_v40 = vmax.f32 %v1437_v31, 0.0  ;;  %v1856_v41 = vmax.f32 %v1550_v34, 0.0  ;;  %v1441_v42 = vadd.f32 %v1440_v35, %v3817_v25  ;;  %v1554_v43 = vadd.f32 %v1553_v38, %v3820_v26  ;;  %v1442_v44 = vpop.f32.mrb[27].mxu1  ;;  %v1555_v45 = vpop.f32.mrb[27].mxu0 }
 0x3b4   : > { %v1855_v46 = vmax.f32 %v1439_v39, 0.0  ;;  %v1857_v47 = vmax.f32 %v1552_v32, 0.0  ;;  %v1443_v48 = vadd.f32 %v1442_v44, %v3823_v27  ;;  %v1556_v51 = vadd.f32 %v1555_v45, %v3826_v28 }
 0x3b5   : > { %v1862_v52 = vmax.f32 %v1441_v42, 0.0  ;;  %v1864_v53 = vmax.f32 %v1554_v43, 0.0 }
 0x3b6   : > { %v3045_v54 = vpack.c.bf16 %v1855_v46, %v1854_v40  ;;  %v3046_v55 = vpack.c.bf16 %v1857_v47, %v1856_v41  ;;  %v1863_v56 = vmax.f32 %v1443_v48, 0.0  ;;  %v1865_v57 = vmax.f32 %v1556_v51, 0.0 }
 0x3b7   : > { %v3840_v59 = vpack.c.bf16 %v1862_v52, %v1854_v40  ;;  %v3842_v60 = vpack.c.bf16 %v1864_v53, %v1856_v41 }
 0x3b8   : > { %2366 = vst [vmem:[%s3844_s20] sm:$0xff] %v3045_v54  ;;  %2367 = vst [vmem:[%s3844_s20 + $0x8] sm:$0xff] %v3046_v55  ;;  %v3848_v61 = vpack.c.bf16 %v1863_v56, %v1855_v46  ;;  %v3049_v62 = vpack.c.bf16 %v1863_v56, %v1862_v52  ;;  %v3850_v63 = vpack.c.bf16 %v1865_v57, %v1857_v47  ;;  %v1446_v1 = vpop.f32.mrb[28].mxu1  ;;  %v1559_v2 = vpop.f32.mrb[28].mxu0 }
 0x3b9   : > { %v3050_v0 = vpack.c.bf16 %v1865_v57, %v1864_v53  ;;  %v1447_v3 = vadd.f32 %v1446_v1, %v3817_v25  ;;  %v1560_v4 = vadd.f32 %v1559_v2, %v3820_v26  ;;  %v1448_v5 = vpop.f32.mrb[29].mxu1  ;;  %v1561_v6 = vpop.f32.mrb[29].mxu0 }
 0x3ba   : > { %2370 = vst [vmem:[%s3844_s20 + $0x20] sm:$0xff] %v3049_v62  ;;  %v1449_v7 = vadd.f32 %v1448_v5, %v3823_v27  ;;  %v1562_v8 = vadd.f32 %v1561_v6, %v3826_v28  ;;  %v1450_v9 = vpop.f32.mrb[30].mxu1  ;;  %v1563_v10 = vpop.f32.mrb[30].mxu0 }
 0x3bb   : > { %2371 = vst [vmem:[%s3844_s20 + $0x28] sm:$0xff] %v3050_v0  ;;  %v1870_v11 = vmax.f32 %v1447_v3, 0.0  ;;  %v1872_v12 = vmax.f32 %v1560_v4, 0.0  ;;  %v1451_v13 = vadd.f32 %v1450_v9, %v3817_v25  ;;  %v1564_v15 = vadd.f32 %v1563_v10, %v3820_v26  ;;  %v1452_v16 = vpop.f32.mrb[31].mxu1  ;;  %v1565_v33 = vpop.f32.mrb[31].mxu0 }
 0x3bc   : > { %v1871_v17 = vmax.f32 %v1449_v7, 0.0  ;;  %v1873_v18 = vmax.f32 %v1562_v8, 0.0  ;;  %v1453_v19 = vadd.f32 %v1452_v16, %v3823_v27  ;;  %v1566_v20 = vadd.f32 %v1565_v33, %v3826_v28 }
 0x3bd   : > { %v1878_v21 = vmax.f32 %v1451_v13, 0.0  ;;  %v1880_v49 = vmax.f32 %v1564_v15, 0.0 }
 0x3be   : > { %v3053_v14 = vpack.c.bf16 %v1871_v17, %v1870_v11  ;;  %v3054_v58 = vpack.c.bf16 %v1873_v18, %v1872_v12  ;;  %v1879_v24 = vmax.f32 %v1453_v19, 0.0  ;;  %v1881_v23 = vmax.f32 %v1566_v20, 0.0 }
 0x3bf   : > { %v1990_v29 = vpack.c.bf16 %v1878_v21, %v1870_v11  ;;  %v1992_v30 = vpack.c.bf16 %v1880_v49, %v1872_v12 }
 0x3c0   : > { %2374 = vst [vmem:[%s3844_s20 + $0x40] sm:$0xff] %v3053_v14  ;;  %2375 = vst [vmem:[%s3844_s20 + $0x48] sm:$0xff] %v3054_v58  ;;  %v1991_v31 = vpack.c.bf16 %v1879_v24, %v1871_v17  ;;  %v3057_v34 = vpack.c.bf16 %v1879_v24, %v1878_v21  ;;  %v1993_v36 = vpack.c.bf16 %v1881_v23, %v1873_v18  ;;  %v1456_v39 = vpop.f32.mrb[32].mxu1  ;;  %v1569_v32 = vpop.f32.mrb[32].mxu0 }
 0x3c1   : > { %v3058_v37 = vpack.c.bf16 %v1881_v23, %v1880_v49  ;;  %v2430_v35 = vmax.bf16 %v1990_v29, %v3840_v59  ;;  %v2464_v38 = vmax.bf16 %v1992_v30, %v3842_v60  ;;  %v1457_v40 = vadd.f32 %v1456_v39, %v3817_v25  ;;  %v1458_v42 = vpop.f32.mrb[33].mxu1  ;;  %v1571_v43 = vpop.f32.mrb[33].mxu0 }
 0x3c2   : > { %v1570_v41 = vadd.f32 %v1569_v32, %v3820_v26  ;;  %2378 = vst [vmem:[%s3844_s20 + $0x60] sm:$0xff] %v3057_v34  ;;  %v2447_v44 = vmax.bf16 %v1991_v31, %v3848_v61  ;;  %v2481_v45 = vmax.bf16 %v1993_v36, %v3850_v63  ;;  %v1459_v46 = vadd.f32 %v1458_v42, %v3823_v27  ;;  %v1460_v48 = vpop.f32.mrb[34].mxu1  ;;  %v1573_v51 = vpop.f32.mrb[34].mxu0 }
 0x3c3   : > { %2379 = vst [vmem:[%s3844_s20 + $0x68] sm:$0xff] %v3058_v37  ;;  %v1572_v47 = vadd.f32 %v1571_v43, %v3826_v28  ;;  %v1886_v52 = vmax.f32 %v1457_v40, 0.0  ;;  %v1461_v54 = vadd.f32 %v1460_v48, %v3817_v25  ;;  %v1574_v55 = vadd.f32 %v1573_v51, %v3820_v26  ;;  %v1462_v56 = vpop.f32.mrb[35].mxu1  ;;  %v1575_v57 = vpop.f32.mrb[35].mxu0 }
 0x3c4   : > { %v1888_v53 = vmax.f32 %v1570_v41, 0.0  ;;  %v1887_v59 = vmax.f32 %v1459_v46, 0.0  ;;  %v1463_v61 = vadd.f32 %v1462_v56, %v3823_v27  ;;  %v1576_v62 = vadd.f32 %v1575_v57, %v3826_v28 }
 0x3c5   : > { %v1889_v60 = vmax.f32 %v1572_v47, 0.0  ;;  %v1894_v63 = vmax.f32 %v1461_v54, 0.0  ;;  %v1896_v0 = vmax.f32 %v1574_v55, 0.0 }
 0x3c6   : > { %v3061_v1 = vpack.c.bf16 %v1887_v59, %v1886_v52  ;;  %v1895_v3 = vmax.f32 %v1463_v61, 0.0  ;;  %v1897_v4 = vmax.f32 %v1576_v62, 0.0 }
 0x3c7   : > { %v3062_v2 = vpack.c.bf16 %v1889_v60, %v1888_v53  ;;  %v1998_v5 = vpack.c.bf16 %v1894_v63, %v1886_v52  ;;  %v2000_v6 = vpack.c.bf16 %v1896_v0, %v1888_v53 }
 0x3c8   : > { %2382 = vst [vmem:[%s3844_s20 + $0x80] sm:$0xff] %v3061_v1  ;;  %v1999_v7 = vpack.c.bf16 %v1895_v3, %v1887_v59  ;;  %v3065_v8 = vpack.c.bf16 %v1895_v3, %v1894_v63  ;;  %v2001_v9 = vpack.c.bf16 %v1897_v4, %v1889_v60  ;;  %v3066_v10 = vpack.c.bf16 %v1897_v4, %v1896_v0  ;;  %v1466_v11 = vpop.f32.mrb[36].mxu1  ;;  %v1579_v12 = vpop.f32.mrb[36].mxu0 }
 0x3c9   : > { %2383 = vst [vmem:[%s3844_s20 + $0x88] sm:$0xff] %v3062_v2  ;;  %v3880_v13 = vmax.bf16 %v2430_v35, %v1998_v5  ;;  %v3882_v15 = vmax.bf16 %v2464_v38, %v2000_v6  ;;  %v1467_v16 = vadd.f32 %v1466_v11, %v3817_v25  ;;  %v1580_v33 = vadd.f32 %v1579_v12, %v3820_v26  ;;  %v1468_v17 = vpop.f32.mrb[37].mxu1  ;;  %v1581_v18 = vpop.f32.mrb[37].mxu0 }
 0x3ca   : > { %2386 = vst [vmem:[%s3844_s20 + $0xa0] sm:$0xff] %v3065_v8  ;;  %v3887_v19 = vmax.bf16 %v2447_v44, %v1999_v7  ;;  %2387 = vst [vmem:[%s3844_s20 + $0xa8] sm:$0xff] %v3066_v10  ;;  %v3890_v20 = vmax.bf16 %v2481_v45, %v2001_v9  ;;  %v1469_v21 = vadd.f32 %v1468_v17, %v3823_v27  ;;  %v1470_v14 = vpop.f32.mrb[38].mxu1  ;;  %v1583_v58 = vpop.f32.mrb[38].mxu0 }
 0x3cb   : > { %v1582_v49 = vadd.f32 %v1581_v18, %v3826_v28  ;;  %v1902_v24 = vmax.f32 %v1467_v16, 0.0  ;;  %v1904_v23 = vmax.f32 %v1580_v33, 0.0  ;;  %v1471_v29 = vadd.f32 %v1470_v14, %v3817_v25  ;;  %v1472_v31 = vpop.f32.mrb[39].mxu1  ;;  %v1585_v34 = vpop.f32.mrb[39].mxu0 }
 0x3cc   : > { %v1584_v30 = vadd.f32 %v1583_v58, %v3820_v26  ;;  %v1903_v36 = vmax.f32 %v1469_v21, 0.0  ;;  %v1473_v39 = vadd.f32 %v1472_v31, %v3823_v27  ;;  %v1586_v32 = vadd.f32 %v1585_v34, %v3826_v28 }
 0x3cd   : > { %v1905_v37 = vmax.f32 %v1582_v49, 0.0  ;;  %v1910_v35 = vmax.f32 %v1471_v29, 0.0  ;;  %v1060_v21 = vsub.s32 4, %v3805_v50 }
 0x3ce   : > { %v1912_v38 = vmax.f32 %v1584_v30, 0.0  ;;  %v3069_v40 = vpack.c.bf16 %v1903_v36, %v1902_v24  ;;  %v1911_v42 = vmax.f32 %v1473_v39, 0.0  ;;  %v1913_v43 = vmax.f32 %v1586_v32, 0.0 }
 0x3cf   : > { %v3070_v41 = vpack.c.bf16 %v1905_v37, %v1904_v23  ;;  %v2006_v44 = vpack.c.bf16 %v1910_v35, %v1902_v24 }
 0x3d0   : > { %v2008_v45 = vpack.c.bf16 %v1912_v38, %v1904_v23  ;;  %2390 = vst [vmem:[%s3844_s20 + $0xc0] sm:$0xff] %v3069_v40  ;;  %v2007_v46 = vpack.c.bf16 %v1911_v42, %v1903_v36  ;;  %v3073_v47 = vpack.c.bf16 %v1911_v42, %v1910_v35  ;;  %v2009_v48 = vpack.c.bf16 %v1913_v43, %v1905_v37  ;;  %v1476_v52 = vpop.f32.mrb[40].mxu1  ;;  %v1589_v53 = vpop.f32.mrb[40].mxu0 }
 0x3d1   : > { %2391 = vst [vmem:[%s3844_s20 + $0xc8] sm:$0xff] %v3070_v41  ;;  %v3074_v51 = vpack.c.bf16 %v1913_v43, %v1912_v38  ;;  %v2432_v54 = vmax.bf16 %v3880_v13, %v2006_v44  ;;  %v1477_v56 = vadd.f32 %v1476_v52, %v3817_v25  ;;  %v1590_v57 = vadd.f32 %v1589_v53, %v3820_v26  ;;  %v1478_v59 = vpop.f32.mrb[41].mxu1  ;;  %v1591_v60 = vpop.f32.mrb[41].mxu0 }
 0x3d2   : > { %v2466_v55 = vmax.bf16 %v3882_v15, %v2008_v45  ;;  %2394 = vst [vmem:[%s3844_s20 + $0xe0] sm:$0xff] %v3073_v47  ;;  %v2449_v61 = vmax.bf16 %v3887_v19, %v2007_v46  ;;  %v2483_v62 = vmax.bf16 %v3890_v20, %v2009_v48  ;;  %v1479_v63 = vadd.f32 %v1478_v59, %v3823_v27  ;;  %v1480_v1 = vpop.f32.mrb[42].mxu1  ;;  %v1593_v2 = vpop.f32.mrb[42].mxu0 }
 0x3d3   : > { %2395 = vst [vmem:[%s3844_s20 + $0xe8] sm:$0xff] %v3074_v51  ;;  %v1592_v0 = vadd.f32 %v1591_v60, %v3826_v28  ;;  %v1918_v3 = vmax.f32 %v1477_v56, 0.0  ;;  %v1920_v4 = vmax.f32 %v1590_v57, 0.0  ;;  %v1481_v5 = vadd.f32 %v1480_v1, %v3817_v25  ;;  %v1482_v7 = vpop.f32.mrb[43].mxu1  ;;  %v1595_v8 = vpop.f32.mrb[43].mxu0 }
 0x3d4   : > { %v1594_v6 = vadd.f32 %v1593_v2, %v3820_v26  ;;  %v1919_v9 = vmax.f32 %v1479_v63, 0.0  ;;  %v1483_v11 = vadd.f32 %v1482_v7, %v3823_v27  ;;  %v1596_v12 = vadd.f32 %v1595_v8, %v3826_v28 }
 0x3d5   : > { %v1921_v10 = vmax.f32 %v1592_v0, 0.0  ;;  %v1926_v13 = vmax.f32 %v1481_v5, 0.0  ;;  %v3936_v57 = vrot.slane %v3812_v22, %v1060_v21  ;;  %v1068_v1 = vsub.s32 6, %v3805_v50 }
 0x3d6   : > { %v1928_v15 = vmax.f32 %v1594_v6, 0.0  ;;  %v3077_v16 = vpack.c.bf16 %v1919_v9, %v1918_v3  ;;  %v1927_v17 = vmax.f32 %v1483_v11, 0.0  ;;  %v1929_v18 = vmax.f32 %v1596_v12, 0.0 }
 0x3d7   : > { %v3078_v33 = vpack.c.bf16 %v1921_v10, %v1920_v4  ;;  %v2014_v19 = vpack.c.bf16 %v1926_v13, %v1918_v3  ;;  %v3448_v2 = vmov 1966171168  }
 0x3d8   : > { %v2016_v20 = vpack.c.bf16 %v1928_v15, %v1920_v4  ;;  %2398 = vst [vmem:[%s3844_s20 + $0x100] sm:$0xff] %v3077_v16  ;;  %v2015_v49 = vpack.c.bf16 %v1927_v17, %v1919_v9  ;;  %v3081_v14 = vpack.c.bf16 %v1927_v17, %v1926_v13  ;;  %v2017_v58 = vpack.c.bf16 %v1929_v18, %v1921_v10  ;;  %v1486_v23 = vpop.f32.mrb[44].mxu1  ;;  %v1599_v29 = vpop.f32.mrb[44].mxu0 }
 0x3d9   : > { %2399 = vst [vmem:[%s3844_s20 + $0x108] sm:$0xff] %v3078_v33  ;;  %v3082_v24 = vpack.c.bf16 %v1929_v18, %v1928_v15  ;;  %v3917_v30 = vmax.bf16 %v2432_v54, %v2014_v19  ;;  %v1487_v34 = vadd.f32 %v1486_v23, %v3817_v25  ;;  %v1600_v36 = vadd.f32 %v1599_v29, %v3820_v26  ;;  %v1488_v37 = vpop.f32.mrb[45].mxu1  ;;  %v1601_v39 = vpop.f32.mrb[45].mxu0 }
 0x3da   : > { %v3919_v31 = vmax.bf16 %v2466_v55, %v2016_v20  ;;  %2402 = vst [vmem:[%s3844_s20 + $0x120] sm:$0xff] %v3081_v14  ;;  %v3924_v32 = vmax.bf16 %v2449_v61, %v2015_v49  ;;  %v3927_v35 = vmax.bf16 %v2483_v62, %v2017_v58  ;;  %v1489_v38 = vadd.f32 %v1488_v37, %v3823_v27  ;;  %v1490_v41 = vpop.f32.mrb[46].mxu1  ;;  %v1603_v42 = vpop.f32.mrb[46].mxu0 }
 0x3db   : > { %2403 = vst [vmem:[%s3844_s20 + $0x128] sm:$0xff] %v3082_v24  ;;  %v1602_v40 = vadd.f32 %v1601_v39, %v3826_v28  ;;  %v1934_v43 = vmax.f32 %v1487_v34, 0.0  ;;  %v1936_v44 = vmax.f32 %v1600_v36, 0.0  ;;  %v1491_v45 = vadd.f32 %v1490_v41, %v3817_v25  ;;  %v1492_v47 = vpop.f32.mrb[47].mxu1  ;;  %v1605_v48 = vpop.f32.mrb[47].mxu0 }
 0x3dc   : > { %v1604_v46 = vadd.f32 %v1603_v42, %v3820_v26  ;;  %v1935_v51 = vmax.f32 %v1489_v38, 0.0  ;;  %v1493_v53 = vadd.f32 %v1492_v47, %v3823_v27  ;;  %v1606_v54 = vadd.f32 %v1605_v48, %v3826_v28 }
 0x3dd   : > { %v1937_v52 = vmax.f32 %v1602_v40, 0.0  ;;  %v1942_v55 = vmax.f32 %v1491_v45, 0.0  ;;  %v3939_v3 = vunpack.c.l.s4 %v3448_v2  ;;  %v3960_v45 = vrot.slane %v3812_v22, %v1068_v1 }
 0x3de   : > { %v1944_v56 = vmax.f32 %v1604_v46, 0.0  ;;  %v3085_v59 = vpack.c.bf16 %v1935_v51, %v1934_v43  ;;  %v1943_v61 = vmax.f32 %v1493_v53, 0.0  ;;  %v1945_v62 = vmax.f32 %v1606_v54, 0.0 }
 0x3df   : > { %v3086_v60 = vpack.c.bf16 %v1937_v52, %v1936_v44  ;;  %v2022_v63 = vpack.c.bf16 %v1942_v55, %v1934_v43  ;;  %v2592_v46 = vunpack.c.0.s8 %v3939_v3 }
 0x3e0   : > { %v2024_v0 = vpack.c.bf16 %v1944_v56, %v1936_v44  ;;  %2406 = vst [vmem:[%s3844_s20 + $0x140] sm:$0xff] %v3085_v59  ;;  %v2023_v4 = vpack.c.bf16 %v1943_v61, %v1935_v51  ;;  %v3089_v5 = vpack.c.bf16 %v1943_v61, %v1942_v55  ;;  %v2025_v6 = vpack.c.bf16 %v1945_v62, %v1937_v52  ;;  %v1496_v8 = vpop.f32.mrb[48].mxu1  ;;  %v1609_v9 = vpop.f32.mrb[48].mxu0 }
 0x3e1   : > { %2407 = vst [vmem:[%s3844_s20 + $0x148] sm:$0xff] %v3086_v60  ;;  %v3090_v7 = vpack.c.bf16 %v1945_v62, %v1944_v56  ;;  %v2434_v10 = vmax.bf16 %v3917_v30, %v2022_v63  ;;  %v1497_v12 = vadd.f32 %v1496_v8, %v3817_v25  ;;  %v1610_v13 = vadd.f32 %v1609_v9, %v3820_v26  ;;  %v1498_v15 = vpop.f32.mrb[49].mxu1  ;;  %v1611_v16 = vpop.f32.mrb[49].mxu0 }
 0x3e2   : > { %v2468_v11 = vmax.bf16 %v3919_v31, %v2024_v0  ;;  %2410 = vst [vmem:[%s3844_s20 + $0x160] sm:$0xff] %v3089_v5  ;;  %v2451_v33 = vmax.bf16 %v3924_v32, %v2023_v4  ;;  %v2485_v17 = vmax.bf16 %v3927_v35, %v2025_v6  ;;  %v1499_v18 = vadd.f32 %v1498_v15, %v3823_v27  ;;  %v1500_v20 = vpop.f32.mrb[50].mxu1  ;;  %v1613_v21 = vpop.f32.mrb[50].mxu0 }
 0x3e3   : > { %2411 = vst [vmem:[%s3844_s20 + $0x168] sm:$0xff] %v3090_v7  ;;  %v1612_v19 = vadd.f32 %v1611_v16, %v3826_v28  ;;  %v1950_v49 = vmax.f32 %v1497_v12, 0.0  ;;  %v1952_v14 = vmax.f32 %v1610_v13, 0.0  ;;  %v1501_v58 = vadd.f32 %v1500_v20, %v3817_v25  ;;  %v1502_v23 = vpop.f32.mrb[51].mxu1  ;;  %v1615_v29 = vpop.f32.mrb[51].mxu0 }
 0x3e4   : > { %v1614_v24 = vadd.f32 %v1613_v21, %v3820_v26  ;;  %v1951_v30 = vmax.f32 %v1499_v18, 0.0  ;;  %v1503_v34 = vadd.f32 %v1502_v23, %v3823_v27  ;;  %v1616_v36 = vadd.f32 %v1615_v29, %v3826_v28 }
 0x3e5   : > { %v1953_v31 = vmax.f32 %v1612_v19, 0.0  ;;  %v1958_v37 = vmax.f32 %v1501_v58, 0.0  ;;  %v1064_v32 = vsub.s32 5, %v3805_v50  ;;  %v1072_v35 = vsub.s32 7, %v3805_v50 }
 0x3e6   : > { %v1960_v39 = vmax.f32 %v1614_v24, 0.0  ;;  %v3093_v38 = vpack.c.bf16 %v1951_v30, %v1950_v49  ;;  %v1959_v41 = vmax.f32 %v1503_v34, 0.0  ;;  %v1961_v42 = vmax.f32 %v1616_v36, 0.0 }
 0x3e7   : > { %v3094_v40 = vpack.c.bf16 %v1953_v31, %v1952_v14  ;;  %v2030_v43 = vpack.c.bf16 %v1958_v37, %v1950_v49  ;;  %v3979_v18 = vrot.slane %v3812_v22, %v1072_v35 }
 0x3e8   : > { %v2032_v44 = vpack.c.bf16 %v1960_v39, %v1952_v14  ;;  %2414 = vst [vmem:[%s3844_s20 + $0x180] sm:$0xff] %v3093_v38  ;;  %v2031_v47 = vpack.c.bf16 %v1959_v41, %v1951_v30  ;;  %v3097_v48 = vpack.c.bf16 %v1959_v41, %v1958_v37  ;;  %v2033_v51 = vpack.c.bf16 %v1961_v42, %v1953_v31  ;;  %v1506_v53 = vpop.f32.mrb[52].mxu1  ;;  %v1619_v54 = vpop.f32.mrb[52].mxu0 }
 0x3e9   : > { %2415 = vst [vmem:[%s3844_s20 + $0x188] sm:$0xff] %v3094_v40  ;;  %v3098_v52 = vpack.c.bf16 %v1961_v42, %v1960_v39  ;;  %v2435_v55 = vmax.bf16 %v2434_v10, %v2030_v43  ;;  %v1507_v59 = vadd.f32 %v1506_v53, %v3817_v25  ;;  %v1620_v60 = vadd.f32 %v1619_v54, %v3820_v26  ;;  %v1508_v61 = vpop.f32.mrb[53].mxu1  ;;  %v1621_v62 = vpop.f32.mrb[53].mxu0 }
 0x3ea   : > { %v2469_v56 = vmax.bf16 %v2468_v11, %v2032_v44  ;;  %2418 = vst [vmem:[%s3844_s20 + $0x1a0] sm:$0xff] %v3097_v48  ;;  %v2452_v63 = vmax.bf16 %v2451_v33, %v2031_v47  ;;  %v2486_v0 = vmax.bf16 %v2485_v17, %v2033_v51  ;;  %v1509_v1 = vadd.f32 %v1508_v61, %v3823_v27  ;;  %v1510_v3 = vpop.f32.mrb[54].mxu1  ;;  %v1623_v4 = vpop.f32.mrb[54].mxu0 }
 0x3eb   : > { %2419 = vst [vmem:[%s3844_s20 + $0x1a8] sm:$0xff] %v3098_v52  ;;  %v1622_v2 = vadd.f32 %v1621_v62, %v3826_v28  ;;  %v1966_v5 = vmax.f32 %v1507_v59, 0.0  ;;  %v1968_v6 = vmax.f32 %v1620_v60, 0.0  ;;  %v1511_v7 = vadd.f32 %v1510_v3, %v3817_v25  ;;  %v1512_v9 = vpop.f32.mrb[55].mxu1  ;;  %v1625_v10 = vpop.f32.mrb[55].mxu0 }
 0x3ec   : > { %v1624_v8 = vadd.f32 %v1623_v4, %v3820_v26  ;;  %v1967_v11 = vmax.f32 %v1509_v1, 0.0  ;;  %v1513_v13 = vadd.f32 %v1512_v9, %v3823_v27  ;;  %v1626_v15 = vadd.f32 %v1625_v10, %v3826_v28 }
 0x3ed   : > { %v1969_v12 = vmax.f32 %v1622_v2, 0.0  ;;  %v1974_v16 = vmax.f32 %v1511_v7, 0.0  ;;  %v3976_v17 = vrot.slane %v3812_v22, %v1064_v32  ;;  %v3982_v14 = vsub.s32 %v2592_v46, %v3805_v50 }
 0x3ee   : > { %v1976_v33 = vmax.f32 %v1624_v8, 0.0  ;;  %v3101_v25 = vpack.c.bf16 %v1967_v11, %v1966_v5  ;;  %v1975_v19 = vmax.f32 %v1513_v13, 0.0  ;;  %v1977_v20 = vmax.f32 %v1626_v15, 0.0 }
 0x3ef   : > { %v3102_v26 = vpack.c.bf16 %v1969_v12, %v1968_v6  ;;  %v2038_v21 = vpack.c.bf16 %v1974_v16, %v1966_v5 }
 0x3f0   : > { %v2040_v49 = vpack.c.bf16 %v1976_v33, %v1968_v6  ;;  %2422 = vst [vmem:[%s3844_s20 + $0x1c0] sm:$0xff] %v3101_v25  ;;  %v2039_v27 = vpack.c.bf16 %v1975_v19, %v1967_v11  ;;  %v3105_v28 = vpack.c.bf16 %v1975_v19, %v1974_v16  ;;  %v2041_v58 = vpack.c.bf16 %v1977_v20, %v1969_v12  ;;  %v1662_v23 = vpop.f32.mrb[56].mxu1  ;;  %v1775_v22 = vpop.f32.mrb[56].mxu0 }
 0x3f1   : > { %2423 = vst [vmem:[%s3844_s20 + $0x1c8] sm:$0xff] %v3102_v26  ;;  %v3106_v24 = vpack.c.bf16 %v1977_v20, %v1976_v33  ;;  %v2436_v29 = vmax.bf16 %v2435_v55, %v2038_v21  ;;  %v1663_v31 = vadd.f32 %v1662_v23, %v3936_v57  ;;  %v1776_v34 = vadd.f32 %v1775_v22, %v3960_v45  ;;  %v1664_v36 = vpop.f32.mrb[57].mxu1  ;;  %v1777_v37 = vpop.f32.mrb[57].mxu0 }
 0x3f2   : > { %v2470_v30 = vmax.bf16 %v2469_v56, %v2040_v49  ;;  %2426 = vst [vmem:[%s3844_s20 + $0x1e0] sm:$0xff] %v3105_v28  ;;  %v2453_v50 = vmax.bf16 %v2452_v63, %v2039_v27  ;;  %v2487_v39 = vmax.bf16 %v2486_v0, %v2041_v58  ;;  %v3991_v32 = vadd.f32 %v1664_v36, %v3976_v17  ;;  %v1666_v38 = vpop.f32.mrb[58].mxu1  ;;  %v1779_v40 = vpop.f32.mrb[58].mxu0 }
 0x3f3   : > { %2427 = vst [vmem:[%s3844_s20 + $0x1e8] sm:$0xff] %v3106_v24  ;;  %v3994_v35 = vadd.f32 %v1777_v37, %v3979_v18  ;;  %v2437_v41 = vunpack.i.l.bf16 %v2436_v29  ;;  %v2438_v42 = vunpack.i.h.bf16 %v2436_v29  ;;  %v1668_v46 = vpop.f32.mrb[59].mxu1  ;;  %v1781_v47 = vpop.f32.mrb[59].mxu0  ;;  %v1858_v56 = vmax.f32 %v1663_v31, 0.0 }
 0x3f4   : > { %v2471_v43 = vunpack.i.l.bf16 %v2470_v30  ;;  %v2472_v44 = vunpack.i.h.bf16 %v2470_v30  ;;  %v2454_v48 = vunpack.i.l.bf16 %v2453_v50  ;;  %v2455_v51 = vunpack.i.h.bf16 %v2453_v50 }
 0x3f5   : > { %v2488_v52 = vunpack.i.l.bf16 %v2487_v39  ;;  %v2489_v53 = vunpack.i.h.bf16 %v2487_v39  ;;  %v2439_v54 = vmax.f32 %v2437_v41, %v2438_v42  ;;  %v1860_v59 = vmax.f32 %v1776_v34, 0.0 }
 0x3f6   : > { %v2473_v55 = vmax.f32 %v2471_v43, %v2472_v44  ;;  %v2456_v60 = vmax.f32 %v2454_v48, %v2455_v51  ;;  %v1859_v62 = vmax.f32 %v3991_v32, 0.0  ;;  %v1861_v63 = vmax.f32 %v3994_v35, 0.0 }
 0x3f7   : > { %v2490_v61 = vmax.f32 %v2488_v52, %v2489_v53  ;;  %v2440_v0 = vrot.slane %v2439_v54, 4  ;;  %v1667_v2 = vadd.f32 %v1666_v38, %v3936_v57  ;;  %v1780_v3 = vadd.f32 %v1779_v40, %v3960_v45 }
 0x3f8   : > { %v2474_v1 = vrot.slane %v2473_v55, 4  ;;  %v2457_v4 = vrot.slane %v2456_v60, 4  ;;  %v3047_v6 = vpack.c.bf16 %v1859_v62, %v1858_v56  ;;  %v3048_v7 = vpack.c.bf16 %v1861_v63, %v1860_v59  ;;  %v1672_v8 = vpop.f32.mrb[60].mxu1  ;;  %v1785_v9 = vpop.f32.mrb[60].mxu0 }
 0x3f9   : > { %v2491_v5 = vrot.slane %v2490_v61, 4  ;;  %v2441_v10 = vmax.f32 %v2439_v54, %v2440_v0  ;;  %v1866_v12 = vmax.f32 %v1667_v2, 0.0  ;;  %v1868_v13 = vmax.f32 %v1780_v3, 0.0  ;;  %v1674_v15 = vpop.f32.mrb[61].mxu1  ;;  %v1787_v16 = vpop.f32.mrb[61].mxu0 }
 0x3fa   : > { %v2475_v11 = vmax.f32 %v2473_v55, %v2474_v1  ;;  %v2458_v33 = vmax.f32 %v2456_v60, %v2457_v4  ;;  %2368 = vst [vmem:[%s3844_s20 + $0x10] sm:$0xff] %v3047_v6  ;;  %2369 = vst [vmem:[%s3844_s20 + $0x18] sm:$0xff] %v3048_v7  ;;  %v1669_v26 = vadd.f32 %v1668_v46, %v3976_v17  ;;  %v1676_v20 = vpop.f32.mrb[62].mxu1  ;;  %v1789_v21 = vpop.f32.mrb[62].mxu0 }
 0x3fb   : > { %v2492_v25 = vmax.f32 %v2490_v61, %v2491_v5  ;;  %v1782_v19 = vadd.f32 %v1781_v47, %v3979_v18  ;;  %v2442_v49 = vrot.slane %v2441_v10, 2  ;;  %v4004_v28 = vpack.c.bf16 %v1866_v12, %v1858_v56  ;;  %v1678_v24 = vpop.f32.mrb[63].mxu1  ;;  %v1791_v23 = vpop.f32.mrb[63].mxu0 }
 0x3fc   : > { %v2476_v27 = vrot.slane %v2475_v11, 2  ;;  %v4006_v58 = vpack.c.bf16 %v1868_v13, %v1860_v59  ;;  %v2459_v22 = vrot.slane %v2458_v33, 2  ;;  %v1867_v30 = vmax.f32 %v1669_v26, 0.0 }
 0x3fd   : > { %v2493_v29 = vrot.slane %v2492_v25, 2  ;;  %v1869_v31 = vmax.f32 %v1782_v19, 0.0  ;;  %v2443_v34 = vmax.f32 %v2441_v10, %v2442_v49  ;;  %v1673_v37 = vadd.f32 %v1672_v8, %v3936_v57 }
 0x3fe   : > { %v2477_v36 = vmax.f32 %v2475_v11, %v2476_v27  ;;  %v1786_v50 = vadd.f32 %v1785_v9, %v3960_v45  ;;  %v2460_v39 = vmax.f32 %v2458_v33, %v2459_v22  ;;  %v4010_v35 = vpack.c.bf16 %v1867_v30, %v1859_v62 }
 0x3ff   : > { %v2494_v32 = vmax.f32 %v2492_v25, %v2493_v29  ;;  %v3051_v38 = vpack.c.bf16 %v1867_v30, %v1866_v12  ;;  %v2444_v40 = vrot.slane %v2443_v34, 1  ;;  %v4012_v42 = vpack.c.bf16 %v1869_v31, %v1861_v63 }
 0x400   : > { %v2478_v41 = vrot.slane %v2477_v36, 1  ;;  %v3052_v43 = vpack.c.bf16 %v1869_v31, %v1868_v13  ;;  %v2461_v44 = vrot.slane %v2460_v39, 1  ;;  %v1874_v47 = vmax.f32 %v1673_v37, 0.0  ;;  %v1682_v51 = vpop.f32.mrb[64].mxu1  ;;  %v1795_v52 = vpop.f32.mrb[64].mxu0 }
 0x401   : > { %v2495_v46 = vrot.slane %v2494_v32, 1  ;;  %2372 = vst [vmem:[%s3844_s20 + $0x30] sm:$0xff] %v3051_v38  ;;  %v1876_v48 = vmax.f32 %v1786_v50, 0.0  ;;  %v2445_v53 = vmax.f32 %v2443_v34, %v2444_v40  ;;  %v1675_v55 = vadd.f32 %v1674_v15, %v3976_v17  ;;  %v1684_v59 = vpop.f32.mrb[65].mxu1  ;;  %v1797_v60 = vpop.f32.mrb[65].mxu0 }
 0x402   : > { %v2479_v54 = vmax.f32 %v2477_v36, %v2478_v41  ;;  %2373 = vst [vmem:[%s3844_s20 + $0x38] sm:$0xff] %v3052_v43  ;;  %v1788_v56 = vadd.f32 %v1787_v16, %v3979_v18  ;;  %v2462_v61 = vmax.f32 %v2460_v39, %v2461_v44  ;;  %v1677_v63 = vadd.f32 %v1676_v20, %v3936_v57  ;;  %v1686_v1 = vpop.f32.mrb[66].mxu1  ;;  %v1799_v2 = vpop.f32.mrb[66].mxu0 }
 0x403   : > { %v2496_v62 = vmax.f32 %v2494_v32, %v2495_v46  ;;  %v1790_v0 = vadd.f32 %v1789_v21, %v3960_v45  ;;  %v2446_v3 = vpack.i.bf16 %v2445_v53, %v2445_v53  ;;  %v1875_v5 = vmax.f32 %v1675_v55, 0.0  ;;  %v1688_v7 = vpop.f32.mrb[67].mxu1  ;;  %v1801_v8 = vpop.f32.mrb[67].mxu0 }
 0x404   : > { %v2480_v4 = vpack.i.bf16 %v2479_v54, %v2479_v54  ;;  %v1877_v6 = vmax.f32 %v1788_v56, 0.0  ;;  %v2463_v9 = vpack.i.bf16 %v2462_v61, %v2462_v61  ;;  %v1882_v11 = vmax.f32 %v1677_v63, 0.0 }
 0x405   : > { %v2497_v10 = vpack.i.bf16 %v2496_v62, %v2496_v62  ;;  %v1884_v12 = vmax.f32 %v1790_v0, 0.0  ;;  %v4020_v13 = vunpack.c.l.bf16 %v2446_v3  ;;  %v3055_v16 = vpack.c.bf16 %v1875_v5, %v1874_v47 }
 0x406   : > { %v4022_v15 = vunpack.c.l.bf16 %v2480_v4  ;;  %v3056_v33 = vpack.c.bf16 %v1877_v6, %v1876_v48  ;;  %v4024_v25 = vunpack.c.l.bf16 %v2463_v9  ;;  %v1994_v19 = vpack.c.bf16 %v1882_v11, %v1874_v47 }
 0x407   : > { %v4026_v26 = vunpack.c.l.bf16 %v2497_v10  ;;  %v1996_v20 = vpack.c.bf16 %v1884_v12, %v1876_v48  ;;  %2376 = vst [vmem:[%s3844_s20 + $0x50] sm:$0xff] %v3055_v16  ;;  %v1679_v21 = vadd.f32 %v1678_v24, %v3976_v17  ;;  %v1792_v49 = vadd.f32 %v1791_v23, %v3979_v18 }
 0x408   : > { %2377 = vst [vmem:[%s3844_s20 + $0x58] sm:$0xff] %v3056_v33  ;;  %v1683_v27 = vadd.f32 %v1682_v51, %v3936_v57  ;;  %v1796_v22 = vadd.f32 %v1795_v52, %v3960_v45  ;;  %v2586_v29 = vcombine.low %v4020_v13, %v4024_v25  ;;  %v2498_v31 = vmax.bf16 %v1994_v19, %v4004_v28  ;;  %v1692_v36 = vpop.f32.mrb[68].mxu1  ;;  %v1805_v37 = vpop.f32.mrb[68].mxu0 }
 0x409   : > { %v2587_v30 = vcombine.low %v4022_v15, %v4026_v26  ;;  %v2532_v34 = vmax.bf16 %v1996_v20, %v4006_v58  ;;  %v1883_v50 = vmax.f32 %v1679_v21, 0.0  ;;  %v1885_v24 = vmax.f32 %v1792_v49, 0.0  ;;  %v1694_v32 = vpop.f32.mrb[69].mxu1  ;;  %v1807_v38 = vpop.f32.mrb[69].mxu0 }
 0x40a   : > { %v1890_v39 = vmax.f32 %v1683_v27, 0.0  ;;  %v1892_v23 = vmax.f32 %v1796_v22, 0.0  ;;  %v1685_v40 = vadd.f32 %v1684_v59, %v3976_v17  ;;  %v1798_v41 = vadd.f32 %v1797_v60, %v3979_v18  ;;  %v1696_v44 = vpop.f32.mrb[70].mxu1  ;;  %v1809_v58 = vpop.f32.mrb[70].mxu0 }
 0x40b   : > { %v1687_v43 = vadd.f32 %v1686_v1, %v3936_v57  ;;  %v1800_v28 = vadd.f32 %v1799_v2, %v3960_v45  ;;  %v1995_v46 = vpack.c.bf16 %v1883_v50, %v1875_v5  ;;  %v3059_v47 = vpack.c.bf16 %v1883_v50, %v1882_v11  ;;  %v1698_v52 = vpop.f32.mrb[71].mxu1  ;;  %v1811_v53 = vpop.f32.mrb[71].mxu0 }
 0x40c   : > { %v1997_v48 = vpack.c.bf16 %v1885_v24, %v1877_v6  ;;  %v3060_v51 = vpack.c.bf16 %v1885_v24, %v1884_v12  ;;  %v1891_v54 = vmax.f32 %v1685_v40, 0.0  ;;  %v1893_v55 = vmax.f32 %v1798_v41, 0.0 }
 0x40d   : > { %v1898_v56 = vmax.f32 %v1687_v43, 0.0  ;;  %v1900_v59 = vmax.f32 %v1800_v28, 0.0  ;;  %2380 = vst [vmem:[%s3844_s20 + $0x70] sm:$0xff] %v3059_v47  ;;  %v2515_v60 = vmax.bf16 %v1995_v46, %v4010_v35  ;;  %v1689_v62 = vadd.f32 %v1688_v7, %v3976_v17 }
 0x40e   : > { %2381 = vst [vmem:[%s3844_s20 + $0x78] sm:$0xff] %v3060_v51  ;;  %v2549_v61 = vmax.bf16 %v1997_v48, %v4012_v42  ;;  %v1802_v63 = vadd.f32 %v1801_v8, %v3979_v18  ;;  %v3063_v0 = vpack.c.bf16 %v1891_v54, %v1890_v39  ;;  %v3064_v1 = vpack.c.bf16 %v1893_v55, %v1892_v23 }
 0x40f   : > { %v2002_v2 = vpack.c.bf16 %v1898_v56, %v1890_v39  ;;  %v2004_v3 = vpack.c.bf16 %v1900_v59, %v1892_v23  ;;  %v1899_v4 = vmax.f32 %v1689_v62, 0.0  ;;  %v1693_v6 = vadd.f32 %v1692_v36, %v3936_v57 }
 0x410   : > { %v1901_v5 = vmax.f32 %v1802_v63, 0.0  ;;  %v1806_v9 = vadd.f32 %v1805_v37, %v3960_v45  ;;  %2384 = vst [vmem:[%s3844_s20 + $0x90] sm:$0xff] %v3063_v0  ;;  %2385 = vst [vmem:[%s3844_s20 + $0x98] sm:$0xff] %v3064_v1  ;;  %v1695_v42 = vadd.f32 %v1694_v32, %v3976_v17  ;;  %v1808_v7 = vadd.f32 %v1807_v38, %v3979_v18  ;;  %v1702_v8 = vpop.f32.mrb[72].mxu1  ;;  %v1815_v11 = vpop.f32.mrb[72].mxu0 }
 0x411   : > { %v4054_v35 = vmax.bf16 %v2498_v31, %v2002_v2  ;;  %v4056_v10 = vmax.bf16 %v2532_v34, %v2004_v3  ;;  %v2003_v12 = vpack.c.bf16 %v1899_v4, %v1891_v54  ;;  %v3067_v16 = vpack.c.bf16 %v1899_v4, %v1898_v56  ;;  %v1704_v20 = vpop.f32.mrb[73].mxu1  ;;  %v1817_v21 = vpop.f32.mrb[73].mxu0 }
 0x412   : > { %v2005_v33 = vpack.c.bf16 %v1901_v5, %v1893_v55  ;;  %v3068_v19 = vpack.c.bf16 %v1901_v5, %v1900_v59  ;;  %v1906_v49 = vmax.f32 %v1693_v6, 0.0  ;;  %v1908_v27 = vmax.f32 %v1806_v9, 0.0  ;;  %v1706_v34 = vpop.f32.mrb[74].mxu1  ;;  %v1819_v36 = vpop.f32.mrb[74].mxu0 }
 0x413   : > { %v1907_v22 = vmax.f32 %v1695_v42, 0.0  ;;  %v1909_v31 = vmax.f32 %v1808_v7, 0.0  ;;  %2388 = vst [vmem:[%s3844_s20 + $0xb0] sm:$0xff] %v3067_v16  ;;  %v4061_v37 = vmax.bf16 %v2515_v60, %v2003_v12  ;;  %v1697_v24 = vadd.f32 %v1696_v44, %v3936_v57  ;;  %v1708_v23 = vpop.f32.mrb[75].mxu1  ;;  %v1821_v32 = vpop.f32.mrb[75].mxu0 }
 0x414   : > { %2389 = vst [vmem:[%s3844_s20 + $0xb8] sm:$0xff] %v3068_v19  ;;  %v4064_v50 = vmax.bf16 %v2549_v61, %v2005_v33  ;;  %v1810_v39 = vadd.f32 %v1809_v58, %v3960_v45  ;;  %v1699_v41 = vadd.f32 %v1698_v52, %v3976_v17  ;;  %v1812_v43 = vadd.f32 %v1811_v53, %v3979_v18 }
 0x415   : > { %v3071_v38 = vpack.c.bf16 %v1907_v22, %v1906_v49  ;;  %v3072_v40 = vpack.c.bf16 %v1909_v31, %v1908_v27  ;;  %v1914_v28 = vmax.f32 %v1697_v24, 0.0  ;;  %v1703_v47 = vadd.f32 %v1702_v8, %v3936_v57 }
 0x416   : > { %v1916_v46 = vmax.f32 %v1810_v39, 0.0  ;;  %v1816_v48 = vadd.f32 %v1815_v11, %v3960_v45  ;;  %v1915_v51 = vmax.f32 %v1699_v41, 0.0  ;;  %v1917_v44 = vmax.f32 %v1812_v43, 0.0 }
 0x417   : > { %2392 = vst [vmem:[%s3844_s20 + $0xd0] sm:$0xff] %v3071_v38  ;;  %2393 = vst [vmem:[%s3844_s20 + $0xd8] sm:$0xff] %v3072_v40  ;;  %v1705_v58 = vadd.f32 %v1704_v20, %v3976_v17  ;;  %v1818_v54 = vadd.f32 %v1817_v21, %v3979_v18  ;;  %v2010_v55 = vpack.c.bf16 %v1914_v28, %v1906_v49  ;;  %v1922_v52 = vmax.f32 %v1703_v47, 0.0 }
 0x418   : > { %v2012_v56 = vpack.c.bf16 %v1916_v46, %v1908_v27  ;;  %v1924_v53 = vmax.f32 %v1816_v48, 0.0  ;;  %v2011_v59 = vpack.c.bf16 %v1915_v51, %v1907_v22  ;;  %v3075_v60 = vpack.c.bf16 %v1915_v51, %v1914_v28  ;;  %v1712_v63 = vpop.f32.mrb[76].mxu1  ;;  %v1825_v0 = vpop.f32.mrb[76].mxu0 }
 0x419   : > { %v2013_v61 = vpack.c.bf16 %v1917_v44, %v1909_v31  ;;  %v3076_v62 = vpack.c.bf16 %v1917_v44, %v1916_v46  ;;  %v2500_v1 = vmax.bf16 %v4054_v35, %v2010_v55  ;;  %v1923_v3 = vmax.f32 %v1705_v58, 0.0  ;;  %v1714_v5 = vpop.f32.mrb[77].mxu1  ;;  %v1827_v6 = vpop.f32.mrb[77].mxu0 }
 0x41a   : > { %v2534_v2 = vmax.bf16 %v4056_v10, %v2012_v56  ;;  %v1925_v4 = vmax.f32 %v1818_v54, 0.0  ;;  %2396 = vst [vmem:[%s3844_s20 + $0xf0] sm:$0xff] %v3075_v60  ;;  %v2517_v9 = vmax.bf16 %v4061_v37, %v2011_v59  ;;  %v1707_v7 = vadd.f32 %v1706_v34, %v3936_v57  ;;  %v1716_v11 = vpop.f32.mrb[78].mxu1  ;;  %v1829_v35 = vpop.f32.mrb[78].mxu0 }
 0x41b   : > { %2397 = vst [vmem:[%s3844_s20 + $0xf8] sm:$0xff] %v3076_v62  ;;  %v2551_v42 = vmax.bf16 %v4064_v50, %v2013_v61  ;;  %v1820_v8 = vadd.f32 %v1819_v36, %v3960_v45  ;;  %v3079_v12 = vpack.c.bf16 %v1923_v3, %v1922_v52  ;;  %v1709_v16 = vadd.f32 %v1708_v23, %v3976_v17  ;;  %v1718_v19 = vpop.f32.mrb[79].mxu1  ;;  %v1831_v20 = vpop.f32.mrb[79].mxu0 }
 0x41c   : > { %v3080_v10 = vpack.c.bf16 %v1925_v4, %v1924_v53  ;;  %v1822_v33 = vadd.f32 %v1821_v32, %v3979_v18  ;;  %v1930_v21 = vmax.f32 %v1707_v7, 0.0  ;;  %v1713_v27 = vadd.f32 %v1712_v63, %v3936_v57 }
 0x41d   : > { %v1932_v49 = vmax.f32 %v1820_v8, 0.0  ;;  %v1826_v22 = vadd.f32 %v1825_v0, %v3960_v45  ;;  %2400 = vst [vmem:[%s3844_s20 + $0x110] sm:$0xff] %v3079_v12  ;;  %v1931_v31 = vmax.f32 %v1709_v16, 0.0  ;;  %v1715_v36 = vadd.f32 %v1714_v5, %v3976_v17 }
 0x41e   : > { %2401 = vst [vmem:[%s3844_s20 + $0x118] sm:$0xff] %v3080_v10  ;;  %v1933_v34 = vmax.f32 %v1822_v33, 0.0  ;;  %v1828_v37 = vadd.f32 %v1827_v6, %v3979_v18  ;;  %v2018_v50 = vpack.c.bf16 %v1930_v21, %v1922_v52  ;;  %v1938_v39 = vmax.f32 %v1713_v27, 0.0 }
 0x41f   : > { %v2020_v24 = vpack.c.bf16 %v1932_v49, %v1924_v53  ;;  %v1940_v23 = vmax.f32 %v1826_v22, 0.0  ;;  %v2019_v32 = vpack.c.bf16 %v1931_v31, %v1923_v3  ;;  %v3083_v38 = vpack.c.bf16 %v1931_v31, %v1930_v21 }
 0x420   : > { %v2021_v40 = vpack.c.bf16 %v1933_v34, %v1925_v4  ;;  %v3084_v41 = vpack.c.bf16 %v1933_v34, %v1932_v49  ;;  %v4092_v43 = vmax.bf16 %v2500_v1, %v2018_v50  ;;  %v1939_v46 = vmax.f32 %v1715_v36, 0.0  ;;  %v1722_v48 = vpop.f32.mrb[80].mxu1  ;;  %v1835_v51 = vpop.f32.mrb[80].mxu0 }
 0x421   : > { %v4094_v28 = vmax.bf16 %v2534_v2, %v2020_v24  ;;  %v1941_v47 = vmax.f32 %v1828_v37, 0.0  ;;  %2404 = vst [vmem:[%s3844_s20 + $0x130] sm:$0xff] %v3083_v38  ;;  %v4097_v44 = vmax.bf16 %v2517_v9, %v2019_v32  ;;  %v1717_v54 = vadd.f32 %v1716_v11, %v3936_v57  ;;  %v1724_v56 = vpop.f32.mrb[81].mxu1  ;;  %v1837_v52 = vpop.f32.mrb[81].mxu0 }
 0x422   : > { %2405 = vst [vmem:[%s3844_s20 + $0x138] sm:$0xff] %v3084_v41  ;;  %v4100_v58 = vmax.bf16 %v2551_v42, %v2021_v40  ;;  %v1830_v55 = vadd.f32 %v1829_v35, %v3960_v45  ;;  %v3087_v53 = vpack.c.bf16 %v1939_v46, %v1938_v39  ;;  %v1719_v60 = vadd.f32 %v1718_v19, %v3976_v17  ;;  %v1726_v62 = vpop.f32.mrb[82].mxu1  ;;  %v1839_v63 = vpop.f32.mrb[82].mxu0 }
 0x423   : > { %v3088_v59 = vpack.c.bf16 %v1941_v47, %v1940_v23  ;;  %v1832_v61 = vadd.f32 %v1831_v20, %v3979_v18  ;;  %v1946_v0 = vmax.f32 %v1717_v54, 0.0  ;;  %v1723_v2 = vadd.f32 %v1722_v48, %v3936_v57  ;;  %v1728_v4 = vpop.f32.mrb[83].mxu1  ;;  %v1841_v5 = vpop.f32.mrb[83].mxu0 }
 0x424   : > { %v1948_v1 = vmax.f32 %v1830_v55, 0.0  ;;  %v1836_v3 = vadd.f32 %v1835_v51, %v3960_v45  ;;  %2408 = vst [vmem:[%s3844_s20 + $0x150] sm:$0xff] %v3087_v53  ;;  %v1947_v6 = vmax.f32 %v1719_v60, 0.0  ;;  %v1725_v42 = vadd.f32 %v1724_v56, %v3976_v17 }
 0x425   : > { %2409 = vst [vmem:[%s3844_s20 + $0x158] sm:$0xff] %v3088_v59  ;;  %v1949_v9 = vmax.f32 %v1832_v61, 0.0  ;;  %v1838_v7 = vadd.f32 %v1837_v52, %v3979_v18  ;;  %v2026_v8 = vpack.c.bf16 %v1946_v0, %v1938_v39  ;;  %v1954_v35 = vmax.f32 %v1723_v2, 0.0 }
 0x426   : > { %v2028_v11 = vpack.c.bf16 %v1948_v1, %v1940_v23  ;;  %v1956_v12 = vmax.f32 %v1836_v3, 0.0  ;;  %v2027_v10 = vpack.c.bf16 %v1947_v6, %v1939_v46  ;;  %v3091_v16 = vpack.c.bf16 %v1947_v6, %v1946_v0 }
 0x427   : > { %v2029_v33 = vpack.c.bf16 %v1949_v9, %v1941_v47  ;;  %v3092_v19 = vpack.c.bf16 %v1949_v9, %v1948_v1  ;;  %v2502_v20 = vmax.bf16 %v4092_v43, %v2026_v8  ;;  %v1955_v49 = vmax.f32 %v1725_v42, 0.0 }
 0x428   : > { %v2536_v21 = vmax.bf16 %v4094_v28, %v2028_v11  ;;  %v1957_v27 = vmax.f32 %v1838_v7, 0.0  ;;  %2412 = vst [vmem:[%s3844_s20 + $0x170] sm:$0xff] %v3091_v16  ;;  %v2519_v22 = vmax.bf16 %v4097_v44, %v2027_v10  ;;  %v1727_v34 = vadd.f32 %v1726_v62, %v3936_v57  ;;  %v1732_v37 = vpop.f32.mrb[84].mxu1  ;;  %v1845_v50 = vpop.f32.mrb[84].mxu0 }
 0x429   : > { %2413 = vst [vmem:[%s3844_s20 + $0x178] sm:$0xff] %v3092_v19  ;;  %v2553_v31 = vmax.bf16 %v4100_v58, %v2029_v33  ;;  %v1840_v36 = vadd.f32 %v1839_v63, %v3960_v45  ;;  %v3095_v24 = vpack.c.bf16 %v1955_v49, %v1954_v35  ;;  %v1729_v23 = vadd.f32 %v1728_v4, %v3976_v17  ;;  %v1734_v38 = vpop.f32.mrb[85].mxu1  ;;  %v1847_v40 = vpop.f32.mrb[85].mxu0 }
 0x42a   : > { %v3096_v39 = vpack.c.bf16 %v1957_v27, %v1956_v12  ;;  %v1842_v32 = vadd.f32 %v1841_v5, %v3979_v18  ;;  %v1962_v41 = vmax.f32 %v1727_v34, 0.0  ;;  %v1733_v28 = vadd.f32 %v1732_v37, %v3936_v57  ;;  %v1736_v47 = vpop.f32.mrb[86].mxu1  ;;  %v1849_v48 = vpop.f32.mrb[86].mxu0 }
 0x42b   : > { %v1964_v43 = vmax.f32 %v1840_v36, 0.0  ;;  %v1846_v46 = vadd.f32 %v1845_v50, %v3960_v45  ;;  %2416 = vst [vmem:[%s3844_s20 + $0x190] sm:$0xff] %v3095_v24  ;;  %v1963_v51 = vmax.f32 %v1729_v23, 0.0  ;;  %v1735_v58 = vadd.f32 %v1734_v38, %v3976_v17  ;;  %v1738_v55 = vpop.f32.mrb[87].mxu1  ;;  %v1851_v56 = vpop.f32.mrb[87].mxu0 }
 0x42c   : > { %2417 = vst [vmem:[%s3844_s20 + $0x198] sm:$0xff] %v3096_v39  ;;  %v1965_v44 = vmax.f32 %v1842_v32, 0.0  ;;  %v1848_v54 = vadd.f32 %v1847_v40, %v3979_v18  ;;  %v2034_v52 = vpack.c.bf16 %v1962_v41, %v1954_v35  ;;  %v1970_v59 = vmax.f32 %v1733_v28, 0.0 }
 0x42d   : > { %v2036_v53 = vpack.c.bf16 %v1964_v43, %v1956_v12  ;;  %v1972_v60 = vmax.f32 %v1846_v46, 0.0  ;;  %v2035_v61 = vpack.c.bf16 %v1963_v51, %v1955_v49  ;;  %v3099_v62 = vpack.c.bf16 %v1963_v51, %v1962_v41 }
 0x42e   : > { %v2037_v63 = vpack.c.bf16 %v1965_v44, %v1957_v27  ;;  %v3100_v0 = vpack.c.bf16 %v1965_v44, %v1964_v43  ;;  %v2503_v1 = vmax.bf16 %v2502_v20, %v2034_v52  ;;  %v1971_v3 = vmax.f32 %v1735_v58, 0.0 }
 0x42f   : > { %v2537_v2 = vmax.bf16 %v2536_v21, %v2036_v53  ;;  %v1973_v4 = vmax.f32 %v1848_v54, 0.0  ;;  %2420 = vst [vmem:[%s3844_s20 + $0x1b0] sm:$0xff] %v3099_v62  ;;  %v2520_v5 = vmax.bf16 %v2519_v22, %v2035_v61  ;;  %v1737_v9 = vadd.f32 %v1736_v47, %v3936_v57 }
 0x430   : > { %2421 = vst [vmem:[%s3844_s20 + $0x1b8] sm:$0xff] %v3100_v0  ;;  %v2554_v6 = vmax.bf16 %v2553_v31, %v2037_v63  ;;  %v1850_v42 = vadd.f32 %v1849_v48, %v3960_v45  ;;  %v3103_v7 = vpack.c.bf16 %v1971_v3, %v1970_v59  ;;  %v1739_v11 = vadd.f32 %v1738_v55, %v3976_v17 }
 0x431   : > { %v3104_v8 = vpack.c.bf16 %v1973_v4, %v1972_v60  ;;  %v1852_v35 = vadd.f32 %v1851_v56, %v3979_v18  ;;  %v1978_v12 = vmax.f32 %v1737_v9, 0.0  ;;  %v4140_v16 = vrot.slane %v2586_v29, %v3982_v14 }
 0x432   : > { %v1980_v10 = vmax.f32 %v1850_v42, 0.0  ;;  %v4146_v57 = vrot.slane %v2587_v30, %v3982_v14  ;;  %2424 = vst [vmem:[%s3844_s20 + $0x1d0] sm:$0xff] %v3103_v7  ;;  %v1979_v45 = vmax.f32 %v1739_v11, 0.0 }
 0x433   : > { %2425 = vst [vmem:[%s3844_s20 + $0x1d8] sm:$0xff] %v3104_v8  ;;  %v1981_v17 = vmax.f32 %v1852_v35, 0.0  ;;  %v2042_v18 = vpack.c.bf16 %v1978_v12, %v1970_v59 }
 0x434   : > { %v2044_v33 = vpack.c.bf16 %v1980_v10, %v1972_v60  ;;  %v2618_v13 = vcombine.low %v4140_v16, %v4146_v57  ;;  %v2043_v15 = vpack.c.bf16 %v1979_v45, %v1971_v3  ;;  %v3107_v25 = vpack.c.bf16 %v1979_v45, %v1978_v12 }
 0x435   : > { %v2045_v26 = vpack.c.bf16 %v1981_v17, %v1973_v4  ;;  %v3108_v29 = vpack.c.bf16 %v1981_v17, %v1980_v10  ;;  %v2504_v30 = vmax.bf16 %v2503_v1, %v2042_v18 }
 0x436   : > { %v2538_v19 = vmax.bf16 %v2537_v2, %v2044_v33  ;;  %2428 = vst [vmem:[%s3844_s20 + $0x1f0] sm:$0xff] %v3107_v25  ;;  %v2521_v20 = vmax.bf16 %v2520_v5, %v2043_v15 }
 0x437   : > { %2429 = vst [vmem:[%s3844_s20 + $0x1f8] sm:$0xff] %v3108_v29  ;;  %v2555_v21 = vmax.bf16 %v2554_v6, %v2045_v26  ;;  %v2505_v49 = vunpack.i.l.bf16 %v2504_v30  ;;  %v2506_v27 = vunpack.i.h.bf16 %v2504_v30 }
 0x438   : > { %v2539_v22 = vunpack.i.l.bf16 %v2538_v19  ;;  %v2540_v31 = vunpack.i.h.bf16 %v2538_v19 }
 0x439   : > { %3340 = shalt.err (!%p3337_p6)
}
 0x43a   : > { %s3341_s20 = scalar_lea.hbm %s4153_s11, 8192  ;;  %s3345_s21 = scalar_lea.hbm %s4254_s9, 16384 }
 0x43b   : > { %p3342_p7 = scmp.ne.s32.totalorder %s4153_s11, %s3341_s20  ;;  %p3346_p0 = scmp.lt.u32.totalorder %s4153_s11, %s4254_s9 }
 0x43c   : > { %p3347_p2 = scmp.lt.u32.totalorder %s3345_s21, %s3341_s20  ;;  %p3349_p8 = scmp.lt.u32.totalorder %s3341_s20, %s4153_s11 }
 0x43d   : > { %p3343_p9 = pnand %p3342_p7, %p4271_p10 }
 0x43e   : > { %p3348_p4 = por %p3347_p2, %p3346_p0 }
 0x43f   : > { %p3344_p12 = pneg %p3343_p9 }
 0x440   : > { %p3350_p11 = por %p3349_p8, %p3348_p4 }
 0x442   : > { %p3351_p13 = pnand %p3350_p11, %p3344_p12 }
 0x444   : > { %3354 = shalt.err (!%p3351_p13)
}
 0x445   : > { %s3450_s27 = smov 512   ;;  %s3451_s12 = smov 32   ;;  %v2522_v34 = vunpack.i.l.bf16 %v2521_v20  ;;  %v2523_v36 = vunpack.i.h.bf16 %v2521_v20  ;;  %v2556_v37 = vunpack.i.l.bf16 %v2555_v21  ;;  %v2557_v50 = vunpack.i.h.bf16 %v2555_v21 }
 0x446   : > { %3216 = dma.vmem_to_hbm [thread:$0]  (%p4271_p10), %s4155_s24, 8192, %s4153_s11, %s2703_s30, %s3450_s27, %s3450_s27, %s3451_s12   ;;  %v2507_v24 = vmax.f32 %v2505_v49, %v2506_v27  ;;  %v2541_v39 = vmax.f32 %v2539_v22, %v2540_v31  ;;  %v2626_v17 = vrot.slane %v2618_v13, %v3982_v14 }
 0x447   : > { %v2524_v23 = vmax.f32 %v2522_v34, %v2523_v36  ;;  %v2558_v32 = vmax.f32 %v2556_v37, %v2557_v50  ;;  %s2869_s24 = sshll.u32 %s3829_s29, 3  ;;  %s3110_s11 = sshll.u32 %s3433_s16, 7 }
 0x448   : > { %v2508_v38 = vrot.slane %v2507_v24, 4  ;;  %v2542_v40 = vrot.slane %v2541_v39, 4  ;;  %s403_s30 = scalar_lea.vmem [#allocation6], %s2869_s24  ;;  %s4197_s21 = scalar_lea.hbm %s4255_s10, %s3110_s11 }
 0x449   : > { %v2525_v41 = vrot.slane %v2524_v23, 4  ;;  %v2559_v43 = vrot.slane %v2558_v32, 4  ;;  %s2741_s20 = sshll.u32 %s403_s30, 4  ;;  %s2708_s16 = scalar_lea.sflag [#allocation7], %s3829_s29  ;;  %s4199_s20 = int_to_ptr.vmem [resolvable:$true] %s2741_s20 }
 0x44a   : > { %v2509_v28 = vmax.f32 %v2507_v24, %v2508_v38  ;;  %v2543_v46 = vmax.f32 %v2541_v39, %v2542_v40  ;;  %s3355_s28 = scalar_lea.vmem %s4199_s20, 128  ;;  %s3452_s22 = smov [#allocation6]  }
 0x44b   : > { %v2526_v47 = vmax.f32 %v2524_v23, %v2525_v41  ;;  %v2560_v48 = vmax.f32 %v2558_v32, %v2559_v43  ;;  %p3356_p1 = scmp.ne.s32.totalorder %s4199_s20, %s3355_s28  ;;  %s3359_s27 = sshll.u32 %s3452_s22, 4  ;;  %s3360_s27 = int_to_ptr.vmem [resolvable:$false] %s3359_s27 }
 0x44c   : > { %v2510_v51 = vrot.slane %v2509_v28, 2  ;;  %v2544_v44 = vrot.slane %v2543_v46, 2  ;;  %s3361_s12 = scalar_lea.vmem %s3360_s27, 256  ;;  %p3362_p6 = scmp.lt.s32.totalorder %s4199_s20, %s3360_s27 }
 0x44d   : > { %v2527_v58 = vrot.slane %v2526_v47, 2  ;;  %v2561_v54 = vrot.slane %v2560_v48, 2  ;;  %p3357_p3 = pnand %p3356_p1, %p4271_p10  ;;  %p3363_p7 = scmp.lt.s32.totalorder %s3361_s12, %s3355_s28 }
 0x44e   : > { %v2511_v55 = vmax.f32 %v2509_v28, %v2510_v51  ;;  %v2545_v56 = vmax.f32 %v2543_v46, %v2544_v44 }
 0x44f   : > { %v2528_v52 = vmax.f32 %v2526_v47, %v2527_v58  ;;  %v2562_v53 = vmax.f32 %v2560_v48, %v2561_v54  ;;  %p3358_p5 = pneg %p3357_p3  ;;  %p3364_p9 = por %p3363_p7, %p3362_p6 }
 0x450   : > { %v2512_v59 = vrot.slane %v2511_v55, 1  ;;  %v2546_v60 = vrot.slane %v2545_v56, 1 }
 0x451   : > { %v2529_v61 = vrot.slane %v2528_v52, 1  ;;  %v2563_v62 = vrot.slane %v2562_v53, 1  ;;  %p3365_p12 = pnand %p3364_p9, %p3358_p5 }
 0x452   : > { %v2513_v63 = vmax.f32 %v2511_v55, %v2512_v59  ;;  %v2547_v0 = vmax.f32 %v2545_v56, %v2546_v60 }
 0x453   : > { %v2530_v1 = vmax.f32 %v2528_v52, %v2529_v61  ;;  %v2564_v2 = vmax.f32 %v2562_v53, %v2563_v62 }
 0x454   : > { %v2514_v3 = vpack.i.bf16 %v2513_v63, %v2513_v63  ;;  %v2548_v4 = vpack.i.bf16 %v2547_v0, %v2547_v0 }
 0x455   : > { %v2531_v5 = vpack.i.bf16 %v2530_v1, %v2530_v1  ;;  %v2565_v6 = vpack.i.bf16 %v2564_v2, %v2564_v2 }
 0x456   : > { %v2570_v9 = vunpack.c.l.bf16 %v2514_v3  ;;  %v2572_v42 = vunpack.c.l.bf16 %v2548_v4 }
 0x457   : > { %v2571_v7 = vunpack.c.l.bf16 %v2531_v5  ;;  %v2573_v8 = vunpack.c.l.bf16 %v2565_v6 }
 0x459   : > { %v2588_v11 = vcombine.low %v2570_v9, %v2571_v7  ;;  %v2589_v35 = vcombine.low %v2572_v42, %v2573_v8 }
 0x45b   : > { %v2610_v12 = vrot.slane %v2588_v11, %v3982_v14  ;;  %v2617_v10 = vrot.slane %v2589_v35, %v3982_v14 }
 0x45d   : > { %v2619_v45 = vcombine.low %v2610_v12, %v2617_v10 }
 0x45f   : > { %v2633_v18 = vrot.slane %v2619_v45, %v3982_v14 }
 0x461   : > { %v2634_v33 = vcombine.low %v2626_v17, %v2633_v18 }
 0x463   : > { %2636 = vst [vmem:[%s403_s30] sm:$0xff] %v2634_v33 }
 0x464   : > { %3368 = shalt.err (!%p3365_p12)
}
 0x465   : > { %s3369_s29 = scalar_lea.hbm %s4197_s21, 128  ;;  %s3373_s30 = scalar_lea.hbm %s4255_s10, 256 }
 0x466   : > { %p3370_p0 = scmp.ne.s32.totalorder %s4197_s21, %s3369_s29  ;;  %p3374_p8 = scmp.lt.u32.totalorder %s4197_s21, %s4255_s10 }
 0x467   : > { %p3375_p11 = scmp.lt.u32.totalorder %s3373_s30, %s3369_s29  ;;  %p3377_p1 = scmp.lt.u32.totalorder %s3369_s29, %s4197_s21 }
 0x468   : > { %p3371_p2 = pnand %p3370_p0, %p4271_p10 }
 0x469   : > { %p3376_p13 = por %p3375_p11, %p3374_p8 }
 0x46a   : > { %p3372_p4 = pneg %p3371_p2 }
 0x46b   : > { %p3378_p3 = por %p3377_p1, %p3376_p13 }
 0x46d   : > { %p3379_p5 = pnand %p3378_p3, %p3372_p4 }
 0x46f   : > { %3382 = shalt.err (!%p3379_p5)
}
 0x470   : > { %3217 = dma.vmem_to_hbm [thread:$0]  (%p4271_p10), %s4199_s20, 128, %s4197_s21, %s2708_s16  }
 0x471 PF: > { %p3233_p6 = scmp.ge.s32.totalorder %s3441_s18, 2  ;;  %s2753_s28 = sand.u32 1, %s3421_s13  }
 0x472   : > { %p4272_p7 = scmp.ne.s32.totalorder %s4265_s25, 0  ;;  %s2754_s22 = scalar_lea.sflag [#allocation4], %s2753_s28 }
 0x474   : > { %p3225_p9 = pnand %p3233_p6, %p4272_p7 }
 0x476   : > { %3412 = dma.done.wait (!%p3225_p9), %s2754_s22, 8192  }
 0x477   : > { %3414 = vsyncadd (!%p3225_p9), %s2754_s22, 4294959104  ;;  %s2763_s27 = scalar_lea.sflag [#allocation7], %s2753_s28 }
 0x478   : > { %3416 = dma.done.wait (!%p3225_p9), %s2763_s27, 128  }
 0x479   : > { %3418 = vsyncadd (!%p3225_p9), %s2763_s27, 4294967168  ;;  %s28_s18 = sadd.s32 1, %s3441_s18   ;;  %s4273_s16 = sld [smem:[#allocation11_spill]] }
 0x47a   : > { %p25_p12 = scmp.ge.s32.totalorder %s28_s18, 4   ;;  %s4274_s17 = sld [smem:[#allocation12_spill]] }
 0x47b   : > { %s4275_s13 = smov %s3425_s14  ;;  %s4276_s14 = smov %s3429_s15 }
 0x47c   : > { %s4277_s15 = smov %s3561_s26  ;;  %27 = sbr.rel (!%p25_p12) target bundleno = 7 (0x7), region = 121 }
 0x483   :  { %2768 = vsyncpa [#allocation3], 1 }
 0x484   :  { %2770 = vsyncpa [#allocation3 + $0x1], 1 }
 0x485   :  { %2771 = vsyncpa [#allocation4], 1 }
 0x486   :  { %2773 = vsyncpa [#allocation4 + $0x1], 1 }
 0x487   :  { %2774 = vsyncpa [#allocation7], 1 }
 0x488   :  { %2776 = vsyncpa [#allocation7 + $0x1], 1 }

</bundles_post_ra>
